<compile_context>
chip_gen: v7x
topology: tpu7x:2x2x1
jax: 0.10.0
libtpu: 0.0.40
codegen_flags: <defaults>
</compile_context>

<pallas_src>
import math

import jax
import jax.numpy as jnp
from jax.experimental import pallas as pl
from jax.experimental.pallas import tpu as pltpu


IN_FEATURES = 15 * 15 * 128   # 28800
N1, N2, N3 = 256, 64, 10
N3_PAD = 128                  # lane-dense output width


# ----------------------------- Pallas kernel ------------------------------- #

def _mlp_fused_kernel(x_ref, w1_ref, b1_ref, w2_ref, b2_ref, w3_ref, b3_ref,
                      o_ref, acc_ref):
    # Grid: (K tiles of fc1's contraction [outer], M batch tiles [inner]).
    # With K outer, W1's block index is constant across the inner M loop, so
    # Pallas fetches each W1 tile from HBM exactly once regardless of batch.
    k = pl.program_id(0)
    m = pl.program_id(1)

    @pl.when(k == 0)
    def _():
        # Initialize this batch tile's accumulator with the broadcast fc1 bias
        # (removes the "+ b1" from the last-step epilogue).
        acc_ref[m] = jnp.broadcast_to(b1_ref[...], acc_ref.shape[1:])

    # fc1 partial accumulation on the MXU: bf16 x bf16 -> f32 accumulate.
    acc_ref[m] += jnp.dot(x_ref[...], w1_ref[...],
                          preferred_element_type=jnp.float32)

    @pl.when(k == pl.num_programs(0) - 1)
    def _():
        h1 = jnp.maximum(acc_ref[m], 0.0)                              # (tm, 256)
        h2 = jnp.maximum(
            jnp.dot(h1, w2_ref[...], preferred_element_type=jnp.float32)
            + b2_ref[...], 0.0)                                        # (tm, 64)
        o_ref[...] = (
            jnp.dot(h2, w3_ref[...], preferred_element_type=jnp.float32)
            + b3_ref[...]).astype(o_ref.dtype)                         # (tm, 128)


# ------------------------------ wrapper glue -------------------------------- #

def _pick_tm(b_pad):
    """Largest batch tile <= 128 (epilogue stays register-resident) dividing
    the (multiple-of-16) padded batch."""
    for t in (128, 64, 32, 16):
        if b_pad % t == 0:
            return t
    return 16


def _pick_tk(k_total, n_out, tm, budget_bytes=20 * 1024 * 1024):
    """Largest multiple of 128 dividing k_total whose double-buffered bf16
    W1 tile + bf16 x tile fit the streaming-VMEM budget."""
    best = 128
    for tk in range(128, k_total + 1, 128):
        if k_total % tk == 0:
            need = 2 * tk * n_out * 2 + 2 * tm * tk * 2   # W1 d.b. + x d.b. (bf16)
            if need <= budget_bytes:
                best = max(best, tk)
    return best


def mlp_block1_forward(x, params):
    """Pallas implementation of MLPBlock1.forward. x: any shape with
    prod(shape[1:]) == 15*15*128 (e.g. (B, 128, 15, 15) NCHW)."""
    B = x.shape[0]
    xf = x.reshape(B, IN_FEATURES)          # matches torch .view(-1, 15*15*128)

    # Pad batch to a multiple of 16 (bf16 sublane-aligned MXU LHS).
    b_pad = max(16, ((B + 15) // 16) * 16)
    if b_pad != B:
        xf = jnp.pad(xf, ((0, b_pad - B), (0, 0)))

    # bf16 streams for the big fc1 operands; f32 accumulation inside.
    xf = xf.astype(jnp.bfloat16)
    w1 = params["w1"].astype(jnp.bfloat16)

    tm = _pick_tm(b_pad)
    tk = _pick_tk(IN_FEATURES, N1, tm)      # -> 9600: 3 K steps
    num_m = b_pad // tm
    num_k = IN_FEATURES // tk
    grid = (num_k, num_m)                   # K outer, M inner (W1 streamed once)

    # Zero-pad fc3 to 128 output lanes (unmasked lane-dense store).
    w3p = jnp.pad(params["w3"], ((0, 0), (0, N3_PAD - N3)))
    b3p = jnp.pad(params["b3"], ((0, 0), (0, N3_PAD - N3)))

    out_pad = pl.pallas_call(
        _mlp_fused_kernel,
        out_shape=jax.ShapeDtypeStruct((b_pad, N3_PAD), jnp.float32),
        grid=grid,
        in_specs=[
            pl.BlockSpec((tm, tk), lambda k, m: (m, k)),        # x tile (bf16)
            pl.BlockSpec((tk, N1), lambda k, m: (k, 0)),        # W1 tile (bf16, streamed once)
            pl.BlockSpec((1, N1), lambda k, m: (0, 0)),         # b1 (f32)
            pl.BlockSpec((N1, N2), lambda k, m: (0, 0)),        # W2 (f32, resident)
            pl.BlockSpec((1, N2), lambda k, m: (0, 0)),         # b2
            pl.BlockSpec((N2, N3_PAD), lambda k, m: (0, 0)),    # W3 padded
            pl.BlockSpec((1, N3_PAD), lambda k, m: (0, 0)),     # b3 padded
        ],
        out_specs=pl.BlockSpec((tm, N3_PAD), lambda k, m: (m, 0)),
        scratch_shapes=[pltpu.VMEM((num_m, tm, N1), jnp.float32)],  # fc1 accumulators
        compiler_params=pltpu.CompilerParams(
            dimension_semantics=("arbitrary", "arbitrary"),
            vmem_limit_bytes=32 * 1024 * 1024),
    )(xf, w1, params["b1"], params["w2"], params["b2"], w3p, b3p)

    return out_pad[:B, :N3]


def init_params(key):
    """PyTorch nn.Linear default init: uniform(+-1/sqrt(fan_in)). Weights are
    stored already transposed to (in_features, out_features)."""
    k = jax.random.split(key, 6)
    bnd1 = 1.0 / math.sqrt(IN_FEATURES)
    bnd2 = 1.0 / math.sqrt(N1)
    bnd3 = 1.0 / math.sqrt(N2)
    return {
        "w1": jax.random.uniform(k[0], (IN_FEATURES, N1), jnp.float32, -bnd1, bnd1),
        "b1": jax.random.uniform(k[1], (1, N1), jnp.float32, -bnd1, bnd1),
        "w2": jax.random.uniform(k[2], (N1, N2), jnp.float32, -bnd2, bnd2),
        "b2": jax.random.uniform(k[3], (1, N2), jnp.float32, -bnd2, bnd2),
        "w3": jax.random.uniform(k[4], (N2, N3), jnp.float32, -bnd3, bnd3),
        "b3": jax.random.uniform(k[5], (1, N3), jnp.float32, -bnd3, bnd3),
    }


def reference_forward(x, params):
    """Pure-JAX f32 reference for correctness checking."""
    B = x.shape[0]
    xf = x.reshape(B, IN_FEATURES)
    h1 = jax.nn.relu(xf @ params["w1"] + params["b1"])
    h2 = jax.nn.relu(h1 @ params["w2"] + params["b2"])
    return h2 @ params["w3"] + params["b3"]


if __name__ == "__main__":
    key = jax.random.PRNGKey(0)
    kx, kp = jax.random.split(key)

    # Shapes consistent with the module: the forward implies 15*15*128 = 28800
    # input features, i.e. a (B, 128, 15, 15) NCHW feature map. batch=2.
    x = jax.random.normal(kx, (2, 128, 15, 15), jnp.float32)
    params = init_params(kp)

    out = jax.block_until_ready(jax.jit(mlp_block1_forward)(x, params))
    assert out.shape == (2, 10), out.shape

    ref = jax.block_until_ready(reference_forward(x, params))
    max_err = float(jnp.max(jnp.abs(out - ref)))
    assert jnp.allclose(out, ref, atol=2e-2, rtol=2e-2), max_err

    print("KERNEL_OK")
</pallas_src>

<mosaic_0001>
module attributes {stable_mosaic.version = 11 : i64} {
  func.func @_mlp_fused_kernel(%arg0: i32, %arg1: i32, %arg2: memref<16x9600xbf16, #tpu.memory_space<vmem>>, %arg3: memref<9600x256xbf16, #tpu.memory_space<vmem>>, %arg4: memref<1x256xf32, #tpu.memory_space<vmem>>, %arg5: memref<256x64xf32, #tpu.memory_space<vmem>>, %arg6: memref<1x64xf32, #tpu.memory_space<vmem>>, %arg7: memref<64x128xf32, #tpu.memory_space<vmem>>, %arg8: memref<1x128xf32, #tpu.memory_space<vmem>>, %arg9: memref<16x128xf32, #tpu.memory_space<vmem>>, %arg10: memref<1x16x256xf32, #tpu.memory_space<vmem>>) attributes {dimension_semantics = [#tpu.dimension_semantics<arbitrary>, #tpu.dimension_semantics<arbitrary>], iteration_bounds = array<i64: 3, 1>, scalar_prefetch = 0 : i64, scratch_operands = 1 : i64, tpu.core_type = #tpu.core_type<tc>, window_params = [{transform_indices = @transform_0, window_bounds = array<i64: 16, 9600>}, {transform_indices = @transform_1, window_bounds = array<i64: 9600, 256>}, {pipeline_mode = #tpu.pipeline_mode<synchronous>, transform_indices = @transform_2, window_bounds = array<i64: 1, 256>}, {pipeline_mode = #tpu.pipeline_mode<synchronous>, transform_indices = @transform_3, window_bounds = array<i64: 256, 64>}, {pipeline_mode = #tpu.pipeline_mode<synchronous>, transform_indices = @transform_4, window_bounds = array<i64: 1, 64>}, {pipeline_mode = #tpu.pipeline_mode<synchronous>, transform_indices = @transform_5, window_bounds = array<i64: 64, 128>}, {pipeline_mode = #tpu.pipeline_mode<synchronous>, transform_indices = @transform_6, window_bounds = array<i64: 1, 128>}, {transform_indices = @transform_7, window_bounds = array<i64: 16, 128>}]} {
    %c0_i32 = arith.constant 0 : i32
    %0 = arith.cmpi eq, %arg0, %c0_i32 : i32
    %1 = arith.extui %0 : i1 to i32
    %c0_i32_0 = arith.constant 0 : i32
    %2 = arith.cmpi ne, %1, %c0_i32_0 : i32
    scf.if %2 {
      %c0_9 = arith.constant 0 : index
      %c0_10 = arith.constant 0 : index
      %17 = vector.load %arg4[%c0_9, %c0_10] : memref<1x256xf32, #tpu.memory_space<vmem>>, vector<1x256xf32>
      %18 = vector.shape_cast %17 : vector<1x256xf32> to vector<1x256xf32>
      %19 = vector.broadcast %18 : vector<1x256xf32> to vector<16x256xf32>
      %20 = arith.index_cast %arg1 : i32 to index
      %c0_11 = arith.constant 0 : index
      %c0_12 = arith.constant 0 : index
      %21 = vector.load %arg10[%20, %c0_11, %c0_12] : memref<1x16x256xf32, #tpu.memory_space<vmem>>, vector<1x16x256xf32>
      %22 = vector.shape_cast %21 : vector<1x16x256xf32> to vector<16x256xf32>
      %23 = vector.shape_cast %19 : vector<16x256xf32> to vector<1x16x256xf32>
      tpu.vector_store %arg10[%20, %c0_11, %c0_12], %23 {strides = array<i32>} : memref<1x16x256xf32, #tpu.memory_space<vmem>>, vector<1x16x256xf32>,
    } else {
    }
    %3 = arith.index_cast %arg1 : i32 to index
    %c0 = arith.constant 0 : index
    %c0_1 = arith.constant 0 : index
    %4 = vector.load %arg10[%3, %c0, %c0_1] : memref<1x16x256xf32, #tpu.memory_space<vmem>>, vector<1x16x256xf32>
    %5 = vector.shape_cast %4 : vector<1x16x256xf32> to vector<16x256xf32>
    %c0_2 = arith.constant 0 : index
    %c0_3 = arith.constant 0 : index
    %6 = vector.load %arg2[%c0_2, %c0_3] : memref<16x9600xbf16, #tpu.memory_space<vmem>>, vector<16x9600xbf16>
    %c0_4 = arith.constant 0 : index
    %c0_5 = arith.constant 0 : index
    %7 = vector.load %arg3[%c0_4, %c0_5] : memref<9600x256xbf16, #tpu.memory_space<vmem>>, vector<9600x256xbf16>
    %cst = arith.constant dense<0.000000e+00> : vector<16x256xf32>
    %8 = tpu.matmul %6, %7, %cst {dimension_numbers = #tpu.dot_dimension_numbers<[1], [0], [0], [1], [0, 0, 1, 1], [], []>} : vector<16x9600xbf16>, vector<9600x256xbf16>, vector<16x256xf32> -> vector<16x256xf32>
    %9 = arith.addf %5, %8 : vector<16x256xf32>
    %10 = arith.index_cast %arg1 : i32 to index
    %c0_6 = arith.constant 0 : index
    %c0_7 = arith.constant 0 : index
    %11 = vector.load %arg10[%10, %c0_6, %c0_7] : memref<1x16x256xf32, #tpu.memory_space<vmem>>, vector<1x16x256xf32>
    %12 = vector.shape_cast %11 : vector<1x16x256xf32> to vector<16x256xf32>
    %13 = vector.shape_cast %9 : vector<16x256xf32> to vector<1x16x256xf32>
    tpu.vector_store %arg10[%10, %c0_6, %c0_7], %13 {strides = array<i32>} : memref<1x16x256xf32, #tpu.memory_space<vmem>>, vector<1x16x256xf32>,
    %c2_i32 = arith.constant 2 : i32
    %14 = arith.cmpi eq, %arg0, %c2_i32 : i32
    %15 = arith.extui %14 : i1 to i32
    %c0_i32_8 = arith.constant 0 : i32
    %16 = arith.cmpi ne, %15, %c0_i32_8 : i32
    scf.if %16 {
      %17 = arith.index_cast %arg1 : i32 to index
      %c0_9 = arith.constant 0 : index
      %c0_10 = arith.constant 0 : index
      %18 = vector.load %arg10[%17, %c0_9, %c0_10] : memref<1x16x256xf32, #tpu.memory_space<vmem>>, vector<1x16x256xf32>
      %19 = vector.shape_cast %18 : vector<1x16x256xf32> to vector<16x256xf32>
      %cst_11 = arith.constant 0.000000e+00 : f32
      %20 = vector.broadcast %cst_11 : f32 to vector<16x256xf32>
      %21 = arith.maximumf %19, %20 : vector<16x256xf32>
      %c0_12 = arith.constant 0 : index
      %c0_13 = arith.constant 0 : index
      %22 = vector.load %arg5[%c0_12, %c0_13] : memref<256x64xf32, #tpu.memory_space<vmem>>, vector<256x64xf32>
      %cst_14 = arith.constant dense<0.000000e+00> : vector<16x64xf32>
      %23 = tpu.matmul %21, %22, %cst_14 {dimension_numbers = #tpu.dot_dimension_numbers<[1], [0], [0], [1], [0, 0, 1, 1], [], []>} : vector<16x256xf32>, vector<256x64xf32>, vector<16x64xf32> -> vector<16x64xf32>
      %c0_15 = arith.constant 0 : index
      %c0_16 = arith.constant 0 : index
      %24 = vector.load %arg6[%c0_15, %c0_16] : memref<1x64xf32, #tpu.memory_space<vmem>>, vector<1x64xf32>
      %25 = vector.broadcast %24 : vector<1x64xf32> to vector<16x64xf32>
      %26 = arith.addf %23, %25 : vector<16x64xf32>
      %cst_17 = arith.constant 0.000000e+00 : f32
      %27 = vector.broadcast %cst_17 : f32 to vector<16x64xf32>
      %28 = arith.maximumf %26, %27 : vector<16x64xf32>
      %c0_18 = arith.constant 0 : index
      %c0_19 = arith.constant 0 : index
      %29 = vector.load %arg7[%c0_18, %c0_19] : memref<64x128xf32, #tpu.memory_space<vmem>>, vector<64x128xf32>
      %cst_20 = arith.constant dense<0.000000e+00> : vector<16x128xf32>
      %30 = tpu.matmul %28, %29, %cst_20 {dimension_numbers = #tpu.dot_dimension_numbers<[1], [0], [0], [1], [0, 0, 1, 1], [], []>} : vector<16x64xf32>, vector<64x128xf32>, vector<16x128xf32> -> vector<16x128xf32>
      %c0_21 = arith.constant 0 : index
      %c0_22 = arith.constant 0 : index
      %31 = vector.load %arg8[%c0_21, %c0_22] : memref<1x128xf32, #tpu.memory_space<vmem>>, vector<1x128xf32>
      %32 = vector.broadcast %31 : vector<1x128xf32> to vector<16x128xf32>
      %33 = arith.addf %30, %32 : vector<16x128xf32>
      %c0_23 = arith.constant 0 : index
      %c0_24 = arith.constant 0 : index
      %34 = vector.load %arg9[%c0_23, %c0_24] : memref<16x128xf32, #tpu.memory_space<vmem>>, vector<16x128xf32>
      tpu.vector_store %arg9[%c0_23, %c0_24], %33 {strides = array<i32>} : memref<16x128xf32, #tpu.memory_space<vmem>>, vector<16x128xf32>,
    } else {
    }
    return
  }
  func.func @transform_0(%arg0: i32, %arg1: i32) -> (i32, i32) {
    %c0_i32 = arith.constant 0 : i32
    return %arg1, %arg0 : i32, i32
  }
  func.func @transform_1(%arg0: i32, %arg1: i32) -> (i32, i32) {
    %c0_i32 = arith.constant 0 : i32
    %c0_i32_0 = arith.constant 0 : i32
    return %arg0, %c0_i32 : i32, i32
  }
  func.func @transform_2(%arg0: i32, %arg1: i32) -> (i32, i32) {
    %c0_i32 = arith.constant 0 : i32
    %c0_i32_0 = arith.constant 0 : i32
    %c0_i32_1 = arith.constant 0 : i32
    return %c0_i32, %c0_i32_0 : i32, i32
  }
  func.func @transform_3(%arg0: i32, %arg1: i32) -> (i32, i32) {
    %c0_i32 = arith.constant 0 : i32
    %c0_i32_0 = arith.constant 0 : i32
    %c0_i32_1 = arith.constant 0 : i32
    return %c0_i32, %c0_i32_0 : i32, i32
  }
  func.func @transform_4(%arg0: i32, %arg1: i32) -> (i32, i32) {
    %c0_i32 = arith.constant 0 : i32
    %c0_i32_0 = arith.constant 0 : i32
    %c0_i32_1 = arith.constant 0 : i32
    return %c0_i32, %c0_i32_0 : i32, i32
  }
  func.func @transform_5(%arg0: i32, %arg1: i32) -> (i32, i32) {
    %c0_i32 = arith.constant 0 : i32
    %c0_i32_0 = arith.constant 0 : i32
    %c0_i32_1 = arith.constant 0 : i32
    return %c0_i32, %c0_i32_0 : i32, i32
  }
  func.func @transform_6(%arg0: i32, %arg1: i32) -> (i32, i32) {
    %c0_i32 = arith.constant 0 : i32
    %c0_i32_0 = arith.constant 0 : i32
    %c0_i32_1 = arith.constant 0 : i32
    return %c0_i32, %c0_i32_0 : i32, i32
  }
  func.func @transform_7(%arg0: i32, %arg1: i32) -> (i32, i32) {
    %c0_i32 = arith.constant 0 : i32
    %c0_i32_0 = arith.constant 0 : i32
    return %arg1, %c0_i32 : i32, i32
  }
}

</mosaic_0001>

<bundles_post_ra>
// kernel: mlp_block1_forward.1
= control target key start
LH: loop header
LB: loop body
LE: loop exit
PB: predicated region body
PF: predicated region fallthrough
CT: control target
= control target key end

     0   :  { %s13743_s24 = smov 0   ;;  %s13745_s25 = smov 0   ;;  %s15380_s0 = inlined_call_operand.vmem [shape: bf16[16,28800], index: 0, kind: input, shape index: {}]   ;;  %s15381_s1 = inlined_call_operand.vmem [shape: bf16[28800,256], index: 1, kind: input, shape index: {}]   ;;  %s15382_s2 = inlined_call_operand.vmem [shape: f32[1,256], index: 2, kind: input, shape index: {}]   ;;  %s15383_s3 = inlined_call_operand.vmem [shape: f32[256,64], index: 3, kind: input, shape index: {}]   ;;  %s15384_s4 = inlined_call_operand.vmem [shape: f32[1,64], index: 4, kind: input, shape index: {}]   ;;  %s15385_s5 = inlined_call_operand.vmem [shape: f32[64,128], index: 5, kind: input, shape index: {}]   ;;  %s15386_s6 = inlined_call_operand.vmem [shape: f32[1,128], index: 6, kind: input, shape index: {}]   ;;  %s15387_s7 = inlined_call_operand.vmem [shape: f32[16,128], index: 7, kind: output, shape index: {}]  }
   0x1   :  { %s13747_s26 = smov 0   ;;  %s13749_s27 = smov 0  }
   0x2   :  { %s13751_s28 = smov 0  }
   0x3 LB: > { %s29_s29 = sadd.s32 1, %s13696_s27  ;;  %p45_p1 = scmp.ne.s32.totalorder %s13688_s25, %s13684_s24  ;;  %s13700_s28 = sphi %s13751_s28, %s17_s28   ;;  %s13696_s27 = sphi %s13749_s27, %s15391_s27   ;;  %s13692_s26 = sphi %s13747_s26, %s15390_s26   ;;  %s13688_s25 = sphi %s13745_s25, %s15389_s25   ;;  %s13684_s24 = sphi %s13743_s24, %s15388_s24  }
   0x4   : > { %p31_p0 = scmp.ge.s32.totalorder %s29_s29, 3  ;;  %p46_p2 = scmp.eq.s32.totalorder %s13700_s28, 0 }
   0x5   : > { %s38_s8 = sadd.s32 1, %s13688_s25  ;;  %p10148_p5 = scmp.ge.s32.totalorder %s13700_s28, 3 }
   0x6   : > { %s15393_s29 = smov (%p31_p0, %s29_s29), 0  ;;  %p47_p3 = por %p46_p2, %p45_p1 }
   0x7   : > { %s34_s30 = ssub.s32 %s13696_s27, %s15393_s29  ;;  %243 = sbr.rel (%p10148_p5) target bundleno = 57 (0x39), region = 36 }
   0x8   : > { %p36_p4 = scmp.eq.s32.totalorder %s34_s30, 0 }
   0xa   : > { %s13778_s9 = scalar_select %p36_p4, %s13688_s25, %s38_s8  }
   0xe   : > { %246 = sbr.rel (!%p47_p3) target bundleno = 57 (0x39), region = 40  ;;  %s248_s10 = sand.u32 (%p47_p3), 1, %s13688_s25  }
   0xf   : > { %s11442_s11 = smul.u32 (%p47_p3), 300, %s13696_s27 }
  0x10   : > { %s11707_s12 = smul.u32 (%p47_p3), 600, %s248_s10 }
  0x11   : > { %s13786_s15 = scalar_lea.vmem (%p47_p3), %s15380_s0, %s11442_s11 }
  0x12   : > { %v271_v0 = vld [vmem:[%s13786_s15] sm:$0xff] (%p47_p3)  ;;  %v273_v1 = vld [vmem:[%s13786_s15 + $0x8] sm:$0xff] (%p47_p3)  ;;  %v275_v2 = vld [vmem:[%s13786_s15 + $0x10] sm:$0xff] (%p47_p3)  ;;  %s13791_s16 = scalar_lea.vmem (%p47_p3), [#allocation3], %s11707_s12 }
  0x13   : > { %272 = vst [vmem:[%s13791_s16] sm:$0xff] (%p47_p3), %v271_v0  ;;  %274 = vst [vmem:[%s13791_s16 + $0x8] sm:$0xff] (%p47_p3), %v273_v1  ;;  %v277_v3 = vld [vmem:[%s13786_s15 + $0x18] sm:$0xff] (%p47_p3)  ;;  %v279_v4 = vld [vmem:[%s13786_s15 + $0x20] sm:$0xff] (%p47_p3) }
  0x14   : > { %276 = vst [vmem:[%s13791_s16 + $0x10] sm:$0xff] (%p47_p3), %v275_v2  ;;  %v281_v5 = vld [vmem:[%s13786_s15 + $0x28] sm:$0xff] (%p47_p3)  ;;  %278 = vst [vmem:[%s13791_s16 + $0x18] sm:$0xff] (%p47_p3), %v277_v3  ;;  %v283_v6 = vld [vmem:[%s13786_s15 + $0x30] sm:$0xff] (%p47_p3) }
  0x15   : > { %280 = vst [vmem:[%s13791_s16 + $0x20] sm:$0xff] %v279_v4  ;;  %282 = vst [vmem:[%s13791_s16 + $0x28] sm:$0xff] %v281_v5  ;;  %v285_v7 = vld [vmem:[%s13786_s15 + $0x38] sm:$0xff]  ;;  %v287_v8 = vld [vmem:[%s13786_s15 + $0x40] sm:$0xff] }
  0x16   : > { %284 = vst [vmem:[%s13791_s16 + $0x30] sm:$0xff] %v283_v6  ;;  %286 = vst [vmem:[%s13791_s16 + $0x38] sm:$0xff] %v285_v7  ;;  %v289_v9 = vld [vmem:[%s13786_s15 + $0x48] sm:$0xff]  ;;  %v291_v10 = vld [vmem:[%s13786_s15 + $0x50] sm:$0xff] }
  0x17   : > { %288 = vst [vmem:[%s13791_s16 + $0x40] sm:$0xff] %v287_v8  ;;  %v293_v11 = vld [vmem:[%s13786_s15 + $0x58] sm:$0xff]  ;;  %290 = vst [vmem:[%s13791_s16 + $0x48] sm:$0xff] %v289_v9  ;;  %v295_v12 = vld [vmem:[%s13786_s15 + $0x60] sm:$0xff] }
  0x18   : > { %292 = vst [vmem:[%s13791_s16 + $0x50] sm:$0xff] %v291_v10  ;;  %294 = vst [vmem:[%s13791_s16 + $0x58] sm:$0xff] %v293_v11  ;;  %v297_v13 = vld [vmem:[%s13786_s15 + $0x68] sm:$0xff]  ;;  %v299_v14 = vld [vmem:[%s13786_s15 + $0x70] sm:$0xff] }
  0x19   : > { %296 = vst [vmem:[%s13791_s16 + $0x60] sm:$0xff] %v295_v12  ;;  %298 = vst [vmem:[%s13791_s16 + $0x68] sm:$0xff] %v297_v13  ;;  %v301_v15 = vld [vmem:[%s13786_s15 + $0x78] sm:$0xff]  ;;  %v303_v16 = vld [vmem:[%s13786_s15 + $0x80] sm:$0xff] }
  0x1a   : > { %300 = vst [vmem:[%s13791_s16 + $0x70] sm:$0xff] %v299_v14  ;;  %v305_v17 = vld [vmem:[%s13786_s15 + $0x88] sm:$0xff]  ;;  %302 = vst [vmem:[%s13791_s16 + $0x78] sm:$0xff] %v301_v15  ;;  %v307_v18 = vld [vmem:[%s13786_s15 + $0x90] sm:$0xff] }
  0x1b   : > { %304 = vst [vmem:[%s13791_s16 + $0x80] sm:$0xff] %v303_v16  ;;  %306 = vst [vmem:[%s13791_s16 + $0x88] sm:$0xff] %v305_v17  ;;  %v309_v19 = vld [vmem:[%s13786_s15 + $0x98] sm:$0xff]  ;;  %v311_v20 = vld [vmem:[%s13786_s15 + $0xa0] sm:$0xff] }
  0x1c   : > { %308 = vst [vmem:[%s13791_s16 + $0x90] sm:$0xff] %v307_v18  ;;  %310 = vst [vmem:[%s13791_s16 + $0x98] sm:$0xff] %v309_v19  ;;  %v313_v21 = vld [vmem:[%s13786_s15 + $0xa8] sm:$0xff]  ;;  %v315_v22 = vld [vmem:[%s13786_s15 + $0xb0] sm:$0xff] }
  0x1d   : > { %312 = vst [vmem:[%s13791_s16 + $0xa0] sm:$0xff] %v311_v20  ;;  %v317_v23 = vld [vmem:[%s13786_s15 + $0xb8] sm:$0xff]  ;;  %314 = vst [vmem:[%s13791_s16 + $0xa8] sm:$0xff] %v313_v21  ;;  %v319_v24 = vld [vmem:[%s13786_s15 + $0xc0] sm:$0xff] }
  0x1e   : > { %316 = vst [vmem:[%s13791_s16 + $0xb0] sm:$0xff] %v315_v22  ;;  %318 = vst [vmem:[%s13791_s16 + $0xb8] sm:$0xff] %v317_v23  ;;  %v321_v25 = vld [vmem:[%s13786_s15 + $0xc8] sm:$0xff]  ;;  %v323_v26 = vld [vmem:[%s13786_s15 + $0xd0] sm:$0xff] }
  0x1f   : > { %320 = vst [vmem:[%s13791_s16 + $0xc0] sm:$0xff] %v319_v24  ;;  %322 = vst [vmem:[%s13791_s16 + $0xc8] sm:$0xff] %v321_v25  ;;  %v325_v27 = vld [vmem:[%s13786_s15 + $0xd8] sm:$0xff]  ;;  %v327_v28 = vld [vmem:[%s13786_s15 + $0xe0] sm:$0xff] }
  0x20   : > { %324 = vst [vmem:[%s13791_s16 + $0xd0] sm:$0xff] %v323_v26  ;;  %v329_v29 = vld [vmem:[%s13786_s15 + $0xe8] sm:$0xff]  ;;  %326 = vst [vmem:[%s13791_s16 + $0xd8] sm:$0xff] %v325_v27  ;;  %v331_v30 = vld [vmem:[%s13786_s15 + $0xf0] sm:$0xff] }
  0x21   : > { %328 = vst [vmem:[%s13791_s16 + $0xe0] sm:$0xff] %v327_v28  ;;  %330 = vst [vmem:[%s13791_s16 + $0xe8] sm:$0xff] %v329_v29  ;;  %v333_v31 = vld [vmem:[%s13786_s15 + $0xf8] sm:$0xff]  ;;  %v335_v32 = vld [vmem:[%s13786_s15 + $0x100] sm:$0xff] }
  0x22   : > { %332 = vst [vmem:[%s13791_s16 + $0xf0] sm:$0xff] %v331_v30  ;;  %334 = vst [vmem:[%s13791_s16 + $0xf8] sm:$0xff] %v333_v31  ;;  %v337_v33 = vld [vmem:[%s13786_s15 + $0x108] sm:$0xff]  ;;  %v339_v34 = vld [vmem:[%s13786_s15 + $0x110] sm:$0xff] }
  0x23   : > { %336 = vst [vmem:[%s13791_s16 + $0x100] sm:$0xff] %v335_v32  ;;  %v341_v35 = vld [vmem:[%s13786_s15 + $0x118] sm:$0xff]  ;;  %338 = vst [vmem:[%s13791_s16 + $0x108] sm:$0xff] %v337_v33  ;;  %v343_v36 = vld [vmem:[%s13786_s15 + $0x120] sm:$0xff] }
  0x24   : > { %340 = vst [vmem:[%s13791_s16 + $0x110] sm:$0xff] %v339_v34  ;;  %342 = vst [vmem:[%s13791_s16 + $0x118] sm:$0xff] %v341_v35  ;;  %v345_v37 = vld [vmem:[%s13786_s15 + $0x384] sm:$0xff]  ;;  %v347_v38 = vld [vmem:[%s13786_s15 + $0x38c] sm:$0xff] }
  0x25   : > { %344 = vst [vmem:[%s13791_s16 + $0x120] sm:$0xff] %v343_v36  ;;  %346 = vst [vmem:[%s13791_s16 + $0x12c] sm:$0xff] %v345_v37  ;;  %v349_v39 = vld [vmem:[%s13786_s15 + $0x394] sm:$0xff]  ;;  %v351_v40 = vld [vmem:[%s13786_s15 + $0x39c] sm:$0xff] }
  0x26   : > { %348 = vst [vmem:[%s13791_s16 + $0x134] sm:$0xff] %v347_v38  ;;  %v353_v41 = vld [vmem:[%s13786_s15 + $0x3a4] sm:$0xff]  ;;  %350 = vst [vmem:[%s13791_s16 + $0x13c] sm:$0xff] %v349_v39  ;;  %v355_v42 = vld [vmem:[%s13786_s15 + $0x3ac] sm:$0xff] }
  0x27   : > { %352 = vst [vmem:[%s13791_s16 + $0x144] sm:$0xff] %v351_v40  ;;  %354 = vst [vmem:[%s13791_s16 + $0x14c] sm:$0xff] %v353_v41  ;;  %v357_v43 = vld [vmem:[%s13786_s15 + $0x3b4] sm:$0xff]  ;;  %v359_v44 = vld [vmem:[%s13786_s15 + $0x3bc] sm:$0xff] }
  0x28   : > { %356 = vst [vmem:[%s13791_s16 + $0x154] sm:$0xff] %v355_v42  ;;  %358 = vst [vmem:[%s13791_s16 + $0x15c] sm:$0xff] %v357_v43  ;;  %v361_v45 = vld [vmem:[%s13786_s15 + $0x3c4] sm:$0xff]  ;;  %v363_v46 = vld [vmem:[%s13786_s15 + $0x3cc] sm:$0xff] }
  0x29   : > { %360 = vst [vmem:[%s13791_s16 + $0x164] sm:$0xff] %v359_v44  ;;  %v365_v47 = vld [vmem:[%s13786_s15 + $0x3d4] sm:$0xff]  ;;  %362 = vst [vmem:[%s13791_s16 + $0x16c] sm:$0xff] %v361_v45  ;;  %v367_v48 = vld [vmem:[%s13786_s15 + $0x3dc] sm:$0xff] }
  0x2a   : > { %364 = vst [vmem:[%s13791_s16 + $0x174] sm:$0xff] %v363_v46  ;;  %366 = vst [vmem:[%s13791_s16 + $0x17c] sm:$0xff] %v365_v47  ;;  %v369_v49 = vld [vmem:[%s13786_s15 + $0x3e4] sm:$0xff]  ;;  %v371_v50 = vld [vmem:[%s13786_s15 + $0x3ec] sm:$0xff] }
  0x2b   : > { %368 = vst [vmem:[%s13791_s16 + $0x184] sm:$0xff] %v367_v48  ;;  %370 = vst [vmem:[%s13791_s16 + $0x18c] sm:$0xff] %v369_v49  ;;  %v373_v51 = vld [vmem:[%s13786_s15 + $0x3f4] sm:$0xff]  ;;  %v375_v52 = vld [vmem:[%s13786_s15 + $0x3fc] sm:$0xff] }
  0x2c   : > { %372 = vst [vmem:[%s13791_s16 + $0x194] sm:$0xff] %v371_v50  ;;  %v377_v53 = vld [vmem:[%s13786_s15 + $0x404] sm:$0xff]  ;;  %374 = vst [vmem:[%s13791_s16 + $0x19c] sm:$0xff] %v373_v51  ;;  %v379_v54 = vld [vmem:[%s13786_s15 + $0x40c] sm:$0xff] }
  0x2d   : > { %376 = vst [vmem:[%s13791_s16 + $0x1a4] sm:$0xff] %v375_v52  ;;  %378 = vst [vmem:[%s13791_s16 + $0x1ac] sm:$0xff] %v377_v53  ;;  %v381_v55 = vld [vmem:[%s13786_s15 + $0x414] sm:$0xff]  ;;  %v383_v56 = vld [vmem:[%s13786_s15 + $0x41c] sm:$0xff] }
  0x2e   : > { %380 = vst [vmem:[%s13791_s16 + $0x1b4] sm:$0xff] %v379_v54  ;;  %382 = vst [vmem:[%s13791_s16 + $0x1bc] sm:$0xff] %v381_v55  ;;  %v385_v57 = vld [vmem:[%s13786_s15 + $0x424] sm:$0xff]  ;;  %v387_v58 = vld [vmem:[%s13786_s15 + $0x42c] sm:$0xff] }
  0x2f   : > { %384 = vst [vmem:[%s13791_s16 + $0x1c4] sm:$0xff] %v383_v56  ;;  %v389_v59 = vld [vmem:[%s13786_s15 + $0x434] sm:$0xff]  ;;  %386 = vst [vmem:[%s13791_s16 + $0x1cc] sm:$0xff] %v385_v57  ;;  %v391_v60 = vld [vmem:[%s13786_s15 + $0x43c] sm:$0xff] }
  0x30   : > { %388 = vst [vmem:[%s13791_s16 + $0x1d4] sm:$0xff] %v387_v58  ;;  %390 = vst [vmem:[%s13791_s16 + $0x1dc] sm:$0xff] %v389_v59  ;;  %v393_v61 = vld [vmem:[%s13786_s15 + $0x444] sm:$0xff]  ;;  %v395_v62 = vld [vmem:[%s13786_s15 + $0x44c] sm:$0xff] }
  0x31   : > { %392 = vst [vmem:[%s13791_s16 + $0x1e4] sm:$0xff] %v391_v60  ;;  %394 = vst [vmem:[%s13791_s16 + $0x1ec] sm:$0xff] %v393_v61  ;;  %v397_v63 = vld [vmem:[%s13786_s15 + $0x454] sm:$0xff]  ;;  %v399_v0 = vld [vmem:[%s13786_s15 + $0x45c] sm:$0xff] }
  0x32   : > { %396 = vst [vmem:[%s13791_s16 + $0x1f4] sm:$0xff] %v395_v62  ;;  %v401_v1 = vld [vmem:[%s13786_s15 + $0x464] sm:$0xff]  ;;  %398 = vst [vmem:[%s13791_s16 + $0x1fc] sm:$0xff] %v397_v63  ;;  %v403_v2 = vld [vmem:[%s13786_s15 + $0x46c] sm:$0xff] }
  0x33   : > { %400 = vst [vmem:[%s13791_s16 + $0x204] sm:$0xff] %v399_v0  ;;  %402 = vst [vmem:[%s13791_s16 + $0x20c] sm:$0xff] %v401_v1  ;;  %v405_v3 = vld [vmem:[%s13786_s15 + $0x474] sm:$0xff]  ;;  %v407_v4 = vld [vmem:[%s13786_s15 + $0x47c] sm:$0xff] }
  0x34   : > { %404 = vst [vmem:[%s13791_s16 + $0x214] sm:$0xff] %v403_v2  ;;  %406 = vst [vmem:[%s13791_s16 + $0x21c] sm:$0xff] %v405_v3  ;;  %v409_v5 = vld [vmem:[%s13786_s15 + $0x484] sm:$0xff]  ;;  %v411_v6 = vld [vmem:[%s13786_s15 + $0x48c] sm:$0xff] }
  0x35   : > { %408 = vst [vmem:[%s13791_s16 + $0x224] sm:$0xff] %v407_v4  ;;  %v413_v7 = vld [vmem:[%s13786_s15 + $0x494] sm:$0xff]  ;;  %410 = vst [vmem:[%s13791_s16 + $0x22c] sm:$0xff] %v409_v5  ;;  %v415_v8 = vld [vmem:[%s13786_s15 + $0x49c] sm:$0xff] }
  0x36   : > { %412 = vst [vmem:[%s13791_s16 + $0x234] sm:$0xff] %v411_v6  ;;  %414 = vst [vmem:[%s13791_s16 + $0x23c] sm:$0xff] %v413_v7  ;;  %v417_v9 = vld [vmem:[%s13786_s15 + $0x4a4] sm:$0xff]  ;;  %v10152_v11 = vld [vmem:[%s13786_s15 + $0x4ac] sm:$0xf] }
  0x37   : > { %v10150_v10 = vld [vmem:[%s13786_s15 + $0x128] sm:$0xf]  ;;  %416 = vst [vmem:[%s13791_s16 + $0x244] sm:$0xff] %v415_v8  ;;  %418 = vst [vmem:[%s13791_s16 + $0x24c] sm:$0xff] %v417_v9 }
  0x38   : > { %10151 = vst [vmem:[%s13791_s16 + $0x128] sm:$0xf] %v10150_v10  ;;  %10153 = vst [vmem:[%s13791_s16 + $0x254] sm:$0xf] %v10152_v11 }
  0x39 PF: > { %p10154_p6 = scmp.ge.s32.totalorder %s13700_s28, 1  ;;  %p444_p7 = scmp.lt.s32.totalorder %s13700_s28, 4 }
  0x3b   : > { %p445_p8 = pnand %p10154_p6, %p444_p7 }
  0x3c   : > { %s451_s17 = sand.u32 (!%p445_p8), 1, %s13684_s24   ;;  %s490_s18 = smul.u32 (!%p445_p8), 1200, %s13692_s26 }
  0x3d   : > { %448 = sbr.rel (%p445_p8) target bundleno = 1963 (0x7ab), region = 70  ;;  %p10157_p10 = scmp.ne.s32.totalorder (!%p445_p8), %s13692_s26, 0 }
  0x3e   : > { %s11708_s19 = smul.u32 (!%p445_p8), 600, %s451_s17  ;;  %p491_p9 = scmp.lt.s32.totalorder (!%p445_p8), %s490_s18, 3599 }
  0x40   : > { %s13951_s30 = scalar_lea.vmem (!%p445_p8), [#allocation3], %s11708_s19 }
  0x44   : > { %s15395_s18 = smov (!%p491_p9, %s490_s18), 3599  ;;  %507 = sbr.rel (%p10157_p10) target bundleno = 79 (0x4f), region = 78 }
  0x45   : > { %s11443_s20 = sshll.u32 %s15395_s18, 3  ;;  %v510_v12 = vlaneseq (!%p10157_p10)  ;;  %v508_v14 = vld [vmem:[%s15382_s2] sm:$0x3] (!%p10157_p10) }
  0x46   : > { %s13949_s23 = scalar_lea.vmem %s15381_s1, %s11443_s20 }
  0x47   : > { %v511_v13 = vshrl.u32 (!%p10157_p10), %v510_v12, 7 }
  0x49   : > { %v512_v15 = vsub.s32 (!%p10157_p10), 0, %v511_v13  ;;  %v516_v16 = vsub.s32 (!%p10157_p10), 1, %v511_v13 }
  0x4b   : > { %v513_v17 = vrot.slane %v508_v14, %v512_v15  ;;  %v517_v18 = vrot.slane %v508_v14, %v516_v16 }
  0x4d   : > { %523 = vst [vmem:[#allocation2] sm:$0xff] %v513_v17  ;;  %525 = vst [vmem:[#allocation2 + $0x10] sm:$0xff] %v513_v17 }
  0x4e   : > { %524 = vst [vmem:[#allocation2 + $0x8] sm:$0xff] %v517_v18  ;;  %526 = vst [vmem:[#allocation2 + $0x18] sm:$0xff] %v517_v18 }
  0x4f PF: > { %v11750_v19 = vld [vmem:[%s13949_s23 + $0x4] ss:$8 sps:$4 sm:$0xff]   ;;  %v11754_v21 = vld [vmem:[%s13949_s23] ss:$8 sps:$4 sm:$0xff]   ;;  %v11756_v23 = vld [vmem:[%s13949_s23 + $0x14] ss:$8 sps:$4 sm:$0xff]  }
  0x50   : > { %v11752_v20 = vld [vmem:[%s13949_s23 + $0x1304] ss:$8 sps:$4 sm:$0xff]   ;;  %8186 = vmatprep.subr.bf16.mxu1 %v11750_v19  ;;  %v11755_v22 = vld [vmem:[%s13949_s23 + $0x1300] ss:$8 sps:$4 sm:$0xff]   ;;  %v11758_v24 = vld [vmem:[%s13949_s23 + $0x1314] ss:$8 sps:$4 sm:$0xff]  }
  0x51   : > { %9003 = vmatprep.subr.bf16.mxu0 %v11752_v20  ;;  %8187 = vmatpush1.bf16.msra.mxu1 %v11754_v21  ;;  %v11760_v25 = vld [vmem:[%s13949_s23 + $0x10] ss:$8 sps:$4 sm:$0xff]   ;;  %v11762_v27 = vld [vmem:[%s13949_s23 + $0x24] ss:$8 sps:$4 sm:$0xff]   ;;  %v11766_v29 = vld [vmem:[%s13949_s23 + $0x20] ss:$8 sps:$4 sm:$0xff]  }
  0x52   : > { %9004 = vmatpush1.bf16.msra.mxu0 %v11755_v22  ;;  %8188 = vmatprep.subr.bf16.mxu1 %v11756_v23  ;;  %v11761_v26 = vld [vmem:[%s13949_s23 + $0x1310] ss:$8 sps:$4 sm:$0xff]   ;;  %v11764_v28 = vld [vmem:[%s13949_s23 + $0x1324] ss:$8 sps:$4 sm:$0xff]   ;;  %v11767_v30 = vld [vmem:[%s13949_s23 + $0x1320] ss:$8 sps:$4 sm:$0xff]  }
  0x53   : > { %9005 = vmatprep.subr.bf16.mxu0 %v11758_v24  ;;  %v11768_v31 = vld [vmem:[%s13949_s23 + $0x34] ss:$8 sps:$4 sm:$0xff]   ;;  %v11772_v33 = vld [vmem:[%s13949_s23 + $0x30] ss:$8 sps:$4 sm:$0xff]   ;;  %v11774_v35 = vld [vmem:[%s13949_s23 + $0x44] ss:$8 sps:$4 sm:$0xff]  }
  0x54   : > { %v11770_v32 = vld [vmem:[%s13949_s23 + $0x1334] ss:$8 sps:$4 sm:$0xff]   ;;  %v11773_v34 = vld [vmem:[%s13949_s23 + $0x1330] ss:$8 sps:$4 sm:$0xff]   ;;  %v11776_v36 = vld [vmem:[%s13949_s23 + $0x1344] ss:$8 sps:$4 sm:$0xff]  }
  0x55   : > { %8189 = vmatpush1.bf16.msra.mxu1 %v11760_v25  ;;  %v11778_v37 = vld [vmem:[%s13949_s23 + $0x40] ss:$8 sps:$4 sm:$0xff]   ;;  %v11780_v39 = vld [vmem:[%s13949_s23 + $0x54] ss:$8 sps:$4 sm:$0xff]   ;;  %v11784_v41 = vld [vmem:[%s13949_s23 + $0x50] ss:$8 sps:$4 sm:$0xff]  }
  0x56   : > { %9006 = vmatpush1.bf16.msra.mxu0 %v11761_v26  ;;  %8190 = vmatprep.subr.bf16.mxu1 %v11762_v27  ;;  %v11779_v38 = vld [vmem:[%s13949_s23 + $0x1340] ss:$8 sps:$4 sm:$0xff]   ;;  %v11782_v40 = vld [vmem:[%s13949_s23 + $0x1354] ss:$8 sps:$4 sm:$0xff]   ;;  %v11785_v42 = vld [vmem:[%s13949_s23 + $0x1350] ss:$8 sps:$4 sm:$0xff]  }
  0x57   : > { %9007 = vmatprep.subr.bf16.mxu0 %v11764_v28  ;;  %v11786_v43 = vld [vmem:[%s13949_s23 + $0x64] ss:$8 sps:$4 sm:$0xff]   ;;  %v11790_v45 = vld [vmem:[%s13949_s23 + $0x60] ss:$8 sps:$4 sm:$0xff]   ;;  %v11792_v47 = vld [vmem:[%s13949_s23 + $0x74] ss:$8 sps:$4 sm:$0xff]  }
  0x58   : > { %v11788_v44 = vld [vmem:[%s13949_s23 + $0x1364] ss:$8 sps:$4 sm:$0xff]   ;;  %v11791_v46 = vld [vmem:[%s13949_s23 + $0x1360] ss:$8 sps:$4 sm:$0xff]   ;;  %v11794_v48 = vld [vmem:[%s13949_s23 + $0x1374] ss:$8 sps:$4 sm:$0xff]  }
  0x59   : > { %8191 = vmatpush1.bf16.msra.mxu1 %v11766_v29  ;;  %v11796_v49 = vld [vmem:[%s13949_s23 + $0x70] ss:$8 sps:$4 sm:$0xff]   ;;  %v11798_v51 = vld [vmem:[%s13949_s23 + $0x84] ss:$8 sps:$4 sm:$0xff]   ;;  %v11802_v53 = vld [vmem:[%s13949_s23 + $0x80] ss:$8 sps:$4 sm:$0xff]  }
  0x5a   : > { %9008 = vmatpush1.bf16.msra.mxu0 %v11767_v30  ;;  %8192 = vmatprep.subr.bf16.mxu1 %v11768_v31  ;;  %v11797_v50 = vld [vmem:[%s13949_s23 + $0x1370] ss:$8 sps:$4 sm:$0xff]   ;;  %v11800_v52 = vld [vmem:[%s13949_s23 + $0x1384] ss:$8 sps:$4 sm:$0xff]   ;;  %v11803_v54 = vld [vmem:[%s13949_s23 + $0x1380] ss:$8 sps:$4 sm:$0xff]  }
  0x5b   : > { %9009 = vmatprep.subr.bf16.mxu0 %v11770_v32  ;;  %v11804_v55 = vld [vmem:[%s13949_s23 + $0x94] ss:$8 sps:$4 sm:$0xff]   ;;  %v11808_v57 = vld [vmem:[%s13949_s23 + $0x90] ss:$8 sps:$4 sm:$0xff]   ;;  %v11810_v59 = vld [vmem:[%s13949_s23 + $0xa4] ss:$8 sps:$4 sm:$0xff]  }
  0x5c   : > { %v11806_v56 = vld [vmem:[%s13949_s23 + $0x1394] ss:$8 sps:$4 sm:$0xff]   ;;  %v11809_v58 = vld [vmem:[%s13949_s23 + $0x1390] ss:$8 sps:$4 sm:$0xff]   ;;  %v11812_v60 = vld [vmem:[%s13949_s23 + $0x13a4] ss:$8 sps:$4 sm:$0xff]  }
  0x5d   : > { %8193 = vmatpush1.bf16.msra.mxu1 %v11772_v33  ;;  %v11814_v61 = vld [vmem:[%s13949_s23 + $0xa0] ss:$8 sps:$4 sm:$0xff]   ;;  %v11816_v63 = vld [vmem:[%s13949_s23 + $0xb4] ss:$8 sps:$4 sm:$0xff]   ;;  %v11820_v1 = vld [vmem:[%s13949_s23 + $0xb0] ss:$8 sps:$4 sm:$0xff]  }
  0x5e   : > { %9010 = vmatpush1.bf16.msra.mxu0 %v11773_v34  ;;  %8194 = vmatprep.subr.bf16.mxu1 %v11774_v35  ;;  %v11815_v62 = vld [vmem:[%s13949_s23 + $0x13a0] ss:$8 sps:$4 sm:$0xff]   ;;  %v11818_v0 = vld [vmem:[%s13949_s23 + $0x13b4] ss:$8 sps:$4 sm:$0xff]   ;;  %v11821_v2 = vld [vmem:[%s13949_s23 + $0x13b0] ss:$8 sps:$4 sm:$0xff]  }
  0x5f   : > { %9011 = vmatprep.subr.bf16.mxu0 %v11776_v36  ;;  %v11848_v3 = vld [vmem:[%s13951_s30 + $0x4] ss:$300 sps:$4 sm:$0xff]   ;;  %v11854_v6 = vld [vmem:[%s13951_s30 + $0x9c] ss:$300 sps:$4 sm:$0xff]   ;;  %v11846_v23 = vld [vmem:[%s13951_s30] ss:$300 sps:$4 sm:$0xff]  }
  0x60   : > { %v11822_v4 = vld [vmem:[%s13949_s23 + $0xc4] ss:$8 sps:$4 sm:$0xff]   ;;  %8218 = vmatprep.mubr.bf16.mxu1 %v11848_v3  ;;  %v11826_v7 = vld [vmem:[%s13949_s23 + $0xc0] ss:$8 sps:$4 sm:$0xff]   ;;  %v11828_v9 = vld [vmem:[%s13949_s23 + $0xd4] ss:$8 sps:$4 sm:$0xff]   ;;  %9035 = vmatprep.mubr.bf16.mxu0 %v11854_v6 }
  0x61   : > { %8195 = vmatpush1.bf16.msra.mxu1 %v11778_v37  ;;  %v11824_v5 = vld [vmem:[%s13949_s23 + $0x13c4] ss:$8 sps:$4 sm:$0xff]   ;;  %v11827_v8 = vld [vmem:[%s13949_s23 + $0x13c0] ss:$8 sps:$4 sm:$0xff]   ;;  %v11830_v10 = vld [vmem:[%s13949_s23 + $0x13d4] ss:$8 sps:$4 sm:$0xff]  }
  0x62   : > { %9012 = vmatpush1.bf16.msra.mxu0 %v11779_v38  ;;  %8196 = vmatprep.subr.bf16.mxu1 %v11780_v39  ;;  %v11832_v11 = vld [vmem:[%s13949_s23 + $0xd0] ss:$8 sps:$4 sm:$0xff]   ;;  %v11834_v13 = vld [vmem:[%s13949_s23 + $0xe4] ss:$8 sps:$4 sm:$0xff]   ;;  %v11838_v15 = vld [vmem:[%s13949_s23 + $0xe0] ss:$8 sps:$4 sm:$0xff]  }
  0x63   : > { %9013 = vmatprep.subr.bf16.mxu0 %v11782_v40  ;;  %v11833_v12 = vld [vmem:[%s13949_s23 + $0x13d0] ss:$8 sps:$4 sm:$0xff]   ;;  %v11836_v14 = vld [vmem:[%s13949_s23 + $0x13e4] ss:$8 sps:$4 sm:$0xff]   ;;  %v11839_v16 = vld [vmem:[%s13949_s23 + $0x13e0] ss:$8 sps:$4 sm:$0xff]  }
  0x64   : > { %v11840_v17 = vld [vmem:[%s13949_s23 + $0xf4] ss:$8 sps:$4 sm:$0xff]   ;;  %v11844_v19 = vld [vmem:[%s13949_s23 + $0xf0] ss:$8 sps:$4 sm:$0xff]   ;;  %v11851_v21 = vld [vmem:[%s13949_s23 + $0x104] ss:$8 sps:$4 sm:$0xff]  }
  0x65   : > { %8197 = vmatpush1.bf16.msra.mxu1 %v11784_v41  ;;  %v11842_v18 = vld [vmem:[%s13949_s23 + $0x13f4] ss:$8 sps:$4 sm:$0xff]   ;;  %v11845_v20 = vld [vmem:[%s13949_s23 + $0x13f0] ss:$8 sps:$4 sm:$0xff]   ;;  %v11857_v22 = vld [vmem:[%s13949_s23 + $0x1404] ss:$8 sps:$4 sm:$0xff]  }
  0x66   : > { %9014 = vmatpush1.bf16.msra.mxu0 %v11785_v42  ;;  %8198 = vmatprep.subr.bf16.mxu1 %v11786_v43  ;;  %v11849_v24 = vld [vmem:[%s13949_s23 + $0x100] ss:$8 sps:$4 sm:$0xff]   ;;  %v11852_v25 = vld [vmem:[%s13951_s30 + $0x98] ss:$300 sps:$4 sm:$0xff]   ;;  %p11433_p11 = scmp.ne.s32.totalorder %s13692_s26, 2 }
  0x67   : > { %9015 = vmatprep.subr.bf16.mxu0 %v11788_v44  ;;  %v11855_v26 = vld [vmem:[%s13949_s23 + $0x1400] ss:$8 sps:$4 sm:$0xff]   ;;  %v11860_v27 = vld [vmem:[%s13949_s23 + $0x114] ss:$8 sps:$4 sm:$0xff]   ;;  %v11858_v29 = vld [vmem:[%s13949_s23 + $0x110] ss:$8 sps:$4 sm:$0xff]  }
  0x68   : > { %v11863_v28 = vld [vmem:[%s13949_s23 + $0x1414] ss:$8 sps:$4 sm:$0xff]   ;;  %v11861_v30 = vld [vmem:[%s13949_s23 + $0x1410] ss:$8 sps:$4 sm:$0xff]   ;;  %v11866_v31 = vld [vmem:[%s13949_s23 + $0x124] ss:$8 sps:$4 sm:$0xff]  }
  0x69   : > { %8199 = vmatpush1.bf16.msra.mxu1 %v11790_v45  ;;  %v11869_v32 = vld [vmem:[%s13949_s23 + $0x1424] ss:$8 sps:$4 sm:$0xff]   ;;  %v11864_v33 = vld [vmem:[%s13949_s23 + $0x120] ss:$8 sps:$4 sm:$0xff]   ;;  %v11872_v35 = vld [vmem:[%s13949_s23 + $0x134] ss:$8 sps:$4 sm:$0xff]  }
  0x6a   : > { %9016 = vmatpush1.bf16.msra.mxu0 %v11791_v46  ;;  %8200 = vmatprep.subr.bf16.mxu1 %v11792_v47  ;;  %v11867_v34 = vld [vmem:[%s13949_s23 + $0x1420] ss:$8 sps:$4 sm:$0xff]   ;;  %v11875_v36 = vld [vmem:[%s13949_s23 + $0x1434] ss:$8 sps:$4 sm:$0xff]   ;;  %v11870_v37 = vld [vmem:[%s13949_s23 + $0x130] ss:$8 sps:$4 sm:$0xff]  }
  0x6b   : > { %9017 = vmatprep.subr.bf16.mxu0 %v11794_v48  ;;  %v11873_v38 = vld [vmem:[%s13949_s23 + $0x1430] ss:$8 sps:$4 sm:$0xff]   ;;  %v11878_v39 = vld [vmem:[%s13949_s23 + $0x144] ss:$8 sps:$4 sm:$0xff]   ;;  %v11876_v41 = vld [vmem:[%s13949_s23 + $0x140] ss:$8 sps:$4 sm:$0xff]  }
  0x6c   : > { %v11881_v40 = vld [vmem:[%s13949_s23 + $0x1444] ss:$8 sps:$4 sm:$0xff]   ;;  %v11879_v42 = vld [vmem:[%s13949_s23 + $0x1440] ss:$8 sps:$4 sm:$0xff]   ;;  %v11884_v43 = vld [vmem:[%s13949_s23 + $0x154] ss:$8 sps:$4 sm:$0xff]  }
  0x6d   : > { %8201 = vmatpush1.bf16.msra.mxu1 %v11796_v49  ;;  %v11887_v44 = vld [vmem:[%s13949_s23 + $0x1454] ss:$8 sps:$4 sm:$0xff]   ;;  %v11882_v45 = vld [vmem:[%s13949_s23 + $0x150] ss:$8 sps:$4 sm:$0xff]   ;;  %v11890_v47 = vld [vmem:[%s13949_s23 + $0x164] ss:$8 sps:$4 sm:$0xff]  }
  0x6e   : > { %9018 = vmatpush1.bf16.msra.mxu0 %v11797_v50  ;;  %8202 = vmatprep.subr.bf16.mxu1 %v11798_v51  ;;  %v11885_v46 = vld [vmem:[%s13949_s23 + $0x1450] ss:$8 sps:$4 sm:$0xff]   ;;  %v11893_v48 = vld [vmem:[%s13949_s23 + $0x1464] ss:$8 sps:$4 sm:$0xff]   ;;  %v11888_v49 = vld [vmem:[%s13949_s23 + $0x160] ss:$8 sps:$4 sm:$0xff]  }
  0x6f   : > { %9019 = vmatprep.subr.bf16.mxu0 %v11800_v52  ;;  %v11891_v50 = vld [vmem:[%s13949_s23 + $0x1460] ss:$8 sps:$4 sm:$0xff]   ;;  %v11896_v51 = vld [vmem:[%s13949_s23 + $0x174] ss:$8 sps:$4 sm:$0xff]   ;;  %vm9971_vm0 = vcmask (!%p11433_p11), 523264  }
  0x70   : > { %v11899_v52 = vld [vmem:[%s13949_s23 + $0x1474] ss:$8 sps:$4 sm:$0xff]   ;;  %v11912_v3 = vld [vmem:[%s13949_s23 + $0x1a0] ss:$8 sps:$4 sm:$0xff]  }
  0x71   : > { %8203 = vmatpush1.bf16.msra.mxu1 %v11802_v53  ;;  %v11950_v53 = vld [vmem:[%s13951_s30 + $0xc] ss:$300 sps:$4 sm:$0xff]   ;;  %v11923_v6 = vld [vmem:[%s13949_s23 + $0x14b4] ss:$8 sps:$4 sm:$0xff]  }
  0x72   : > { %9020 = vmatpush1.bf16.msra.mxu0 %v11803_v54  ;;  %8204 = vmatprep.subr.bf16.mxu1 %v11804_v55  ;;  %v11894_v54 = vld [vmem:[%s13949_s23 + $0x170] ss:$8 sps:$4 sm:$0xff]  }
  0x73   : > { %9021 = vmatprep.subr.bf16.mxu0 %v11806_v56  ;;  %v11897_v55 = vld [vmem:[%s13949_s23 + $0x1470] ss:$8 sps:$4 sm:$0xff]  }
  0x74   : > { %v11956_v56 = vld [vmem:[%s13951_s30 + $0xa4] ss:$300 sps:$4 sm:$0xff]  }
  0x75   : > { %8205 = vmatpush1.bf16.msra.mxu1 %v11808_v57  ;;  %v11902_v57 = vld [vmem:[%s13949_s23 + $0x184] ss:$8 sps:$4 sm:$0xff]  }
  0x76   : > { %9022 = vmatpush1.bf16.msra.mxu0 %v11809_v58  ;;  %8206 = vmatprep.subr.bf16.mxu1 %v11810_v59  ;;  %v11905_v58 = vld [vmem:[%s13949_s23 + $0x1484] ss:$8 sps:$4 sm:$0xff]   ;;  %v11900_v59 = vld [vmem:[%s13949_s23 + $0x180] ss:$8 sps:$4 sm:$0xff]  }
  0x77   : > { %9023 = vmatprep.subr.bf16.mxu0 %v11812_v60  ;;  %v11903_v60 = vld [vmem:[%s13949_s23 + $0x1480] ss:$8 sps:$4 sm:$0xff]  }
  0x79   : > { %8207 = vmatpush1.bf16.msra.mxu1 %v11814_v61  ;;  %v11908_v61 = vld [vmem:[%s13949_s23 + $0x194] ss:$8 sps:$4 sm:$0xff]  }
  0x7a   : > { %9024 = vmatpush1.bf16.msra.mxu0 %v11815_v62  ;;  %8208 = vmatprep.subr.bf16.mxu1 %v11816_v63  ;;  %v11911_v62 = vld [vmem:[%s13949_s23 + $0x1494] ss:$8 sps:$4 sm:$0xff]   ;;  %v11906_v63 = vld [vmem:[%s13949_s23 + $0x190] ss:$8 sps:$4 sm:$0xff]  }
  0x7b   : > { %9025 = vmatprep.subr.bf16.mxu0 %v11818_v0  ;;  %v11909_v0 = vld [vmem:[%s13949_s23 + $0x1490] ss:$8 sps:$4 sm:$0xff]  }
  0x7d   : > { %8209 = vmatpush1.bf16.msra.mxu1 %v11820_v1  ;;  %v11914_v1 = vld [vmem:[%s13949_s23 + $0x1a4] ss:$8 sps:$4 sm:$0xff]  }
  0x7e   : > { %9026 = vmatpush1.bf16.msra.mxu0 %v11821_v2  ;;  %8210 = vmatprep.subr.bf16.mxu1 %v11822_v4  ;;  %v11917_v2 = vld [vmem:[%s13949_s23 + $0x14a4] ss:$8 sps:$4 sm:$0xff]   ;;  %v11915_v4 = vld [vmem:[%s13949_s23 + $0x14a0] ss:$8 sps:$4 sm:$0xff]  }
  0x7f   : > { %9027 = vmatprep.subr.bf16.mxu0 %v11824_v5  ;;  %v11920_v5 = vld [vmem:[%s13949_s23 + $0x1b4] ss:$8 sps:$4 sm:$0xff]  }
  0x81   : > { %8211 = vmatpush1.bf16.msra.mxu1 %v11826_v7  ;;  %v11918_v7 = vld [vmem:[%s13949_s23 + $0x1b0] ss:$8 sps:$4 sm:$0xff]  }
  0x82   : > { %9028 = vmatpush1.bf16.msra.mxu0 %v11827_v8  ;;  %8212 = vmatprep.subr.bf16.mxu1 %v11828_v9  ;;  %v11921_v8 = vld [vmem:[%s13949_s23 + $0x14b0] ss:$8 sps:$4 sm:$0xff]   ;;  %v11926_v9 = vld [vmem:[%s13949_s23 + $0x1c4] ss:$8 sps:$4 sm:$0xff]  }
  0x83   : > { %9029 = vmatprep.subr.bf16.mxu0 %v11830_v10  ;;  %v11929_v10 = vld [vmem:[%s13949_s23 + $0x14c4] ss:$8 sps:$4 sm:$0xff]  }
  0x85   : > { %8213 = vmatpush1.bf16.msra.mxu1 %v11832_v11  ;;  %v11924_v11 = vld [vmem:[%s13949_s23 + $0x1c0] ss:$8 sps:$4 sm:$0xff]  }
  0x86   : > { %9030 = vmatpush1.bf16.msra.mxu0 %v11833_v12  ;;  %8214 = vmatprep.subr.bf16.mxu1 %v11834_v13  ;;  %v11927_v12 = vld [vmem:[%s13949_s23 + $0x14c0] ss:$8 sps:$4 sm:$0xff]   ;;  %v11932_v13 = vld [vmem:[%s13949_s23 + $0x1d4] ss:$8 sps:$4 sm:$0xff]  }
  0x87   : > { %9031 = vmatprep.subr.bf16.mxu0 %v11836_v14  ;;  %v11935_v14 = vld [vmem:[%s13949_s23 + $0x14d4] ss:$8 sps:$4 sm:$0xff]  }
  0x89   : > { %8215 = vmatpush1.bf16.msra.mxu1 %v11838_v15  ;;  %v11930_v15 = vld [vmem:[%s13949_s23 + $0x1d0] ss:$8 sps:$4 sm:$0xff]  }
  0x8a   : > { %9032 = vmatpush1.bf16.msra.mxu0 %v11839_v16  ;;  %8216 = vmatprep.subr.bf16.mxu1 %v11840_v17  ;;  %v11933_v16 = vld [vmem:[%s13949_s23 + $0x14d0] ss:$8 sps:$4 sm:$0xff]   ;;  %v11938_v17 = vld [vmem:[%s13949_s23 + $0x1e4] ss:$8 sps:$4 sm:$0xff]  }
  0x8b   : > { %9033 = vmatprep.subr.bf16.mxu0 %v11842_v18  ;;  %v11941_v18 = vld [vmem:[%s13949_s23 + $0x14e4] ss:$8 sps:$4 sm:$0xff]  }
  0x8d   : > { %8217 = vmatpush1.bf16.msra.mxu1 %v11844_v19  ;;  %v11936_v19 = vld [vmem:[%s13949_s23 + $0x1e0] ss:$8 sps:$4 sm:$0xff]  }
  0x8e   : > { %9034 = vmatpush1.bf16.msra.mxu0 %v11845_v20  ;;  %8229 = vmatprep.subr.bf16.mxu1 %v11851_v21  ;;  %v11939_v20 = vld [vmem:[%s13949_s23 + $0x14e0] ss:$8 sps:$4 sm:$0xff]   ;;  %v11944_v21 = vld [vmem:[%s13949_s23 + $0x1f4] ss:$8 sps:$4 sm:$0xff]  }
  0x8f   : > { %9046 = vmatprep.subr.bf16.mxu0 %v11857_v22  ;;  %v11947_v22 = vld [vmem:[%s13949_s23 + $0x14f4] ss:$8 sps:$4 sm:$0xff]  }
  0x90   : > { %8219 = vmatmul.mubr.bf16.vlgmr.msra.gmra.mrb[0].mxu1 %v11846_v23  ;;  %v11942_v23 = vld [vmem:[%s13949_s23 + $0x1f0] ss:$8 sps:$4 sm:$0xff]  }
  0x91   : > { %9036 = vmatmul.mubr.bf16.vlgmr.msra.gmra.mrb[0].mxu0 %v11852_v25  ;;  %8230 = vmatpush1.bf16.msra.mxu1 %v11849_v24  ;;  %v11945_v24 = vld [vmem:[%s13949_s23 + $0x14f0] ss:$8 sps:$4 sm:$0xff]   ;;  %v11953_v25 = vld [vmem:[%s13949_s23 + $0x204] ss:$8 sps:$4 sm:$0xff]  }
  0x92   : > { %9047 = vmatpush1.bf16.msra.mxu0 %v11855_v26  ;;  %8231 = vmatprep.subr.bf16.mxu1 %v11860_v27  ;;  %v11959_v26 = vld [vmem:[%s13949_s23 + $0x1504] ss:$8 sps:$4 sm:$0xff]  }
  0x93   : > { %9048 = vmatprep.subr.bf16.mxu0 %v11863_v28  ;;  %8261 = vmatprep.mubr.bf16.mxu1 %v11950_v53  ;;  %v11948_v27 = vld [vmem:[%s13951_s30 + $0x8] ss:$300 sps:$4 sm:$0xff]  }
  0x94   : > { %9078 = vmatprep.mubr.bf16.mxu0 %v11956_v56  ;;  %v11951_v28 = vld [vmem:[%s13949_s23 + $0x200] ss:$8 sps:$4 sm:$0xff]   ;;  %v11992_v53 = vld [vmem:[%s13949_s23 + $0x264] ss:$8 sps:$4 sm:$0xff]  }
  0x95   : > { %8232 = vmatpush1.bf16.msra.mxu1 %v11858_v29  ;;  %v11954_v29 = vld [vmem:[%s13951_s30 + $0xa0] ss:$300 sps:$4 sm:$0xff]  }
  0x96   : > { %9049 = vmatpush1.bf16.msra.mxu0 %v11861_v30  ;;  %8233 = vmatprep.subr.bf16.mxu1 %v11866_v31  ;;  %v11957_v30 = vld [vmem:[%s13949_s23 + $0x1500] ss:$8 sps:$4 sm:$0xff]   ;;  %v11962_v31 = vld [vmem:[%s13949_s23 + $0x214] ss:$8 sps:$4 sm:$0xff]  }
  0x97   : > { %9050 = vmatprep.subr.bf16.mxu0 %v11869_v32  ;;  %v11965_v32 = vld [vmem:[%s13949_s23 + $0x1514] ss:$8 sps:$4 sm:$0xff]   ;;  %v11993_v56 = vld [vmem:[%s13949_s23 + $0x1560] ss:$8 sps:$4 sm:$0xff]  }
  0x99   : > { %8234 = vmatpush1.bf16.msra.mxu1 %v11864_v33  ;;  %v11960_v33 = vld [vmem:[%s13949_s23 + $0x210] ss:$8 sps:$4 sm:$0xff]  }
  0x9a   : > { %9051 = vmatpush1.bf16.msra.mxu0 %v11867_v34  ;;  %8235 = vmatprep.subr.bf16.mxu1 %v11872_v35  ;;  %v11963_v34 = vld [vmem:[%s13949_s23 + $0x1510] ss:$8 sps:$4 sm:$0xff]   ;;  %v11968_v35 = vld [vmem:[%s13949_s23 + $0x224] ss:$8 sps:$4 sm:$0xff]  }
  0x9b   : > { %9052 = vmatprep.subr.bf16.mxu0 %v11875_v36  ;;  %v11971_v36 = vld [vmem:[%s13949_s23 + $0x1524] ss:$8 sps:$4 sm:$0xff]  }
  0x9d   : > { %8236 = vmatpush1.bf16.msra.mxu1 %v11870_v37  ;;  %v11966_v37 = vld [vmem:[%s13949_s23 + $0x220] ss:$8 sps:$4 sm:$0xff]  }
  0x9e   : > { %9053 = vmatpush1.bf16.msra.mxu0 %v11873_v38  ;;  %8237 = vmatprep.subr.bf16.mxu1 %v11878_v39  ;;  %v12052_v38 = vld [vmem:[%s13951_s30 + $0x14] ss:$300 sps:$4 sm:$0xff]  }
  0x9f   : > { %9054 = vmatprep.subr.bf16.mxu0 %v11881_v40  ;;  %v11969_v39 = vld [vmem:[%s13949_s23 + $0x1520] ss:$8 sps:$4 sm:$0xff]   ;;  %v11974_v40 = vld [vmem:[%s13949_s23 + $0x234] ss:$8 sps:$4 sm:$0xff]  }
  0xa1   : > { %8238 = vmatpush1.bf16.msra.mxu1 %v11876_v41  ;;  %v11977_v41 = vld [vmem:[%s13949_s23 + $0x1534] ss:$8 sps:$4 sm:$0xff]  }
  0xa2   : > { %9055 = vmatpush1.bf16.msra.mxu0 %v11879_v42  ;;  %8239 = vmatprep.subr.bf16.mxu1 %v11884_v43  ;;  %v12058_v42 = vld [vmem:[%s13951_s30 + $0xac] ss:$300 sps:$4 sm:$0xff]  }
  0xa3   : > { %9056 = vmatprep.subr.bf16.mxu0 %v11887_v44  ;;  %v11972_v43 = vld [vmem:[%s13949_s23 + $0x230] ss:$8 sps:$4 sm:$0xff]  }
  0xa4   : > { %v11975_v44 = vld [vmem:[%s13949_s23 + $0x1530] ss:$8 sps:$4 sm:$0xff]  }
  0xa5   : > { %8240 = vmatpush1.bf16.msra.mxu1 %v11882_v45  ;;  %v11980_v45 = vld [vmem:[%s13949_s23 + $0x244] ss:$8 sps:$4 sm:$0xff]  }
  0xa6   : > { %9057 = vmatpush1.bf16.msra.mxu0 %v11885_v46  ;;  %8241 = vmatprep.subr.bf16.mxu1 %v11890_v47  ;;  %v11983_v46 = vld [vmem:[%s13949_s23 + $0x1544] ss:$8 sps:$4 sm:$0xff]   ;;  %v11978_v47 = vld [vmem:[%s13949_s23 + $0x240] ss:$8 sps:$4 sm:$0xff]  }
  0xa7   : > { %9058 = vmatprep.subr.bf16.mxu0 %v11893_v48  ;;  %v11981_v48 = vld [vmem:[%s13949_s23 + $0x1540] ss:$8 sps:$4 sm:$0xff]  }
  0xa9   : > { %8242 = vmatpush1.bf16.msra.mxu1 %v11888_v49  ;;  %v11986_v49 = vld [vmem:[%s13949_s23 + $0x254] ss:$8 sps:$4 sm:$0xff]  }
  0xaa   : > { %9059 = vmatpush1.bf16.msra.mxu0 %v11891_v50  ;;  %8243 = vmatprep.subr.bf16.mxu1 %v11896_v51  ;;  %v11989_v50 = vld [vmem:[%s13949_s23 + $0x1554] ss:$8 sps:$4 sm:$0xff]   ;;  %v11984_v51 = vld [vmem:[%s13949_s23 + $0x250] ss:$8 sps:$4 sm:$0xff]  }
  0xab   : > { %9060 = vmatprep.subr.bf16.mxu0 %v11899_v52  ;;  %v11987_v52 = vld [vmem:[%s13949_s23 + $0x1550] ss:$8 sps:$4 sm:$0xff]  }
  0xad   : > { %8244 = vmatpush1.bf16.msra.mxu1 %v11894_v54  ;;  %v11995_v54 = vld [vmem:[%s13949_s23 + $0x1564] ss:$8 sps:$4 sm:$0xff]  }
  0xae   : > { %9061 = vmatpush1.bf16.msra.mxu0 %v11897_v55  ;;  %8245 = vmatprep.subr.bf16.mxu1 %v11902_v57  ;;  %v11990_v55 = vld [vmem:[%s13949_s23 + $0x260] ss:$8 sps:$4 sm:$0xff]   ;;  %v11998_v57 = vld [vmem:[%s13949_s23 + $0x274] ss:$8 sps:$4 sm:$0xff]  }
  0xaf   : > { %9062 = vmatprep.subr.bf16.mxu0 %v11905_v58  ;;  %v12001_v58 = vld [vmem:[%s13949_s23 + $0x1574] ss:$8 sps:$4 sm:$0xff]  }
  0xb1   : > { %8246 = vmatpush1.bf16.msra.mxu1 %v11900_v59  ;;  %v11996_v59 = vld [vmem:[%s13949_s23 + $0x270] ss:$8 sps:$4 sm:$0xff]  }
  0xb2   : > { %9063 = vmatpush1.bf16.msra.mxu0 %v11903_v60  ;;  %8247 = vmatprep.subr.bf16.mxu1 %v11908_v61  ;;  %v11999_v60 = vld [vmem:[%s13949_s23 + $0x1570] ss:$8 sps:$4 sm:$0xff]   ;;  %v12004_v61 = vld [vmem:[%s13949_s23 + $0x284] ss:$8 sps:$4 sm:$0xff]  }
  0xb3   : > { %9064 = vmatprep.subr.bf16.mxu0 %v11911_v62  ;;  %v12007_v62 = vld [vmem:[%s13949_s23 + $0x1584] ss:$8 sps:$4 sm:$0xff]  }
  0xb5   : > { %8248 = vmatpush1.bf16.msra.mxu1 %v11906_v63  ;;  %v12002_v63 = vld [vmem:[%s13949_s23 + $0x280] ss:$8 sps:$4 sm:$0xff]  }
  0xb6   : > { %9065 = vmatpush1.bf16.msra.mxu0 %v11909_v0  ;;  %8249 = vmatprep.subr.bf16.mxu1 %v11914_v1  ;;  %v12005_v0 = vld [vmem:[%s13949_s23 + $0x1580] ss:$8 sps:$4 sm:$0xff]   ;;  %v12010_v1 = vld [vmem:[%s13949_s23 + $0x294] ss:$8 sps:$4 sm:$0xff]  }
  0xb7   : > { %9066 = vmatprep.subr.bf16.mxu0 %v11917_v2  ;;  %v12013_v2 = vld [vmem:[%s13949_s23 + $0x1594] ss:$8 sps:$4 sm:$0xff]  }
  0xb9   : > { %8250 = vmatpush1.bf16.msra.mxu1 %v11912_v3  ;;  %v12008_v3 = vld [vmem:[%s13949_s23 + $0x290] ss:$8 sps:$4 sm:$0xff]  }
  0xba   : > { %9067 = vmatpush1.bf16.msra.mxu0 %v11915_v4  ;;  %8251 = vmatprep.subr.bf16.mxu1 %v11920_v5  ;;  %v12011_v4 = vld [vmem:[%s13949_s23 + $0x1590] ss:$8 sps:$4 sm:$0xff]   ;;  %v12016_v5 = vld [vmem:[%s13949_s23 + $0x2a4] ss:$8 sps:$4 sm:$0xff]  }
  0xbb   : > { %9068 = vmatprep.subr.bf16.mxu0 %v11923_v6  ;;  %v12019_v6 = vld [vmem:[%s13949_s23 + $0x15a4] ss:$8 sps:$4 sm:$0xff]  }
  0xbd   : > { %8252 = vmatpush1.bf16.msra.mxu1 %v11918_v7  ;;  %v12014_v7 = vld [vmem:[%s13949_s23 + $0x2a0] ss:$8 sps:$4 sm:$0xff]  }
  0xbe   : > { %9069 = vmatpush1.bf16.msra.mxu0 %v11921_v8  ;;  %8253 = vmatprep.subr.bf16.mxu1 %v11926_v9  ;;  %v12017_v8 = vld [vmem:[%s13949_s23 + $0x15a0] ss:$8 sps:$4 sm:$0xff]   ;;  %v12022_v9 = vld [vmem:[%s13949_s23 + $0x2b4] ss:$8 sps:$4 sm:$0xff]  }
  0xbf   : > { %9070 = vmatprep.subr.bf16.mxu0 %v11929_v10  ;;  %v12025_v10 = vld [vmem:[%s13949_s23 + $0x15b4] ss:$8 sps:$4 sm:$0xff]  }
  0xc1   : > { %8254 = vmatpush1.bf16.msra.mxu1 %v11924_v11  ;;  %v12020_v11 = vld [vmem:[%s13949_s23 + $0x2b0] ss:$8 sps:$4 sm:$0xff]  }
  0xc2   : > { %9071 = vmatpush1.bf16.msra.mxu0 %v11927_v12  ;;  %8255 = vmatprep.subr.bf16.mxu1 %v11932_v13  ;;  %v12023_v12 = vld [vmem:[%s13949_s23 + $0x15b0] ss:$8 sps:$4 sm:$0xff]   ;;  %v12028_v13 = vld [vmem:[%s13949_s23 + $0x2c4] ss:$8 sps:$4 sm:$0xff]  }
  0xc3   : > { %9072 = vmatprep.subr.bf16.mxu0 %v11935_v14  ;;  %v12031_v14 = vld [vmem:[%s13949_s23 + $0x15c4] ss:$8 sps:$4 sm:$0xff]  }
  0xc5   : > { %8256 = vmatpush1.bf16.msra.mxu1 %v11930_v15  ;;  %v12026_v15 = vld [vmem:[%s13949_s23 + $0x2c0] ss:$8 sps:$4 sm:$0xff]  }
  0xc6   : > { %9073 = vmatpush1.bf16.msra.mxu0 %v11933_v16  ;;  %8257 = vmatprep.subr.bf16.mxu1 %v11938_v17  ;;  %v12029_v16 = vld [vmem:[%s13949_s23 + $0x15c0] ss:$8 sps:$4 sm:$0xff]   ;;  %v12034_v17 = vld [vmem:[%s13949_s23 + $0x2d4] ss:$8 sps:$4 sm:$0xff]  }
  0xc7   : > { %9074 = vmatprep.subr.bf16.mxu0 %v11941_v18  ;;  %v12037_v18 = vld [vmem:[%s13949_s23 + $0x15d4] ss:$8 sps:$4 sm:$0xff]  }
  0xc9   : > { %8258 = vmatpush1.bf16.msra.mxu1 %v11936_v19  ;;  %v12032_v19 = vld [vmem:[%s13949_s23 + $0x2d0] ss:$8 sps:$4 sm:$0xff]  }
  0xca   : > { %9075 = vmatpush1.bf16.msra.mxu0 %v11939_v20  ;;  %8259 = vmatprep.subr.bf16.mxu1 %v11944_v21  ;;  %v12035_v20 = vld [vmem:[%s13949_s23 + $0x15d0] ss:$8 sps:$4 sm:$0xff]   ;;  %v12040_v21 = vld [vmem:[%s13949_s23 + $0x2e4] ss:$8 sps:$4 sm:$0xff]  }
  0xcb   : > { %9076 = vmatprep.subr.bf16.mxu0 %v11947_v22  ;;  %v12043_v22 = vld [vmem:[%s13949_s23 + $0x15e4] ss:$8 sps:$4 sm:$0xff]  }
  0xcd   : > { %8260 = vmatpush1.bf16.msra.mxu1 %v11942_v23  ;;  %v12038_v23 = vld [vmem:[%s13949_s23 + $0x2e0] ss:$8 sps:$4 sm:$0xff]  }
  0xce   : > { %9077 = vmatpush1.bf16.msra.mxu0 %v11945_v24  ;;  %8272 = vmatprep.subr.bf16.mxu1 %v11953_v25  ;;  %v12041_v24 = vld [vmem:[%s13949_s23 + $0x15e0] ss:$8 sps:$4 sm:$0xff]   ;;  %v12046_v25 = vld [vmem:[%s13949_s23 + $0x2f4] ss:$8 sps:$4 sm:$0xff]  }
  0xcf   : > { %9089 = vmatprep.subr.bf16.mxu0 %v11959_v26  ;;  %v12049_v26 = vld [vmem:[%s13949_s23 + $0x15f4] ss:$8 sps:$4 sm:$0xff]  }
  0xd0   : > { %8262 = vmatmul.mubr.bf16.vlgmr.msra.gmra.mrb[0].mxu1 %v11948_v27  ;;  %v12044_v27 = vld [vmem:[%s13949_s23 + $0x2f0] ss:$8 sps:$4 sm:$0xff]  }
  0xd1   : > { %9079 = vmatmul.mubr.bf16.vlgmr.msra.gmra.mrb[0].mxu0 %v11954_v29  ;;  %8273 = vmatpush1.bf16.msra.mxu1 %v11951_v28  ;;  %v12047_v28 = vld [vmem:[%s13949_s23 + $0x15f0] ss:$8 sps:$4 sm:$0xff]   ;;  %v12055_v29 = vld [vmem:[%s13949_s23 + $0x304] ss:$8 sps:$4 sm:$0xff]  }
  0xd2   : > { %9090 = vmatpush1.bf16.msra.mxu0 %v11957_v30  ;;  %8274 = vmatprep.subr.bf16.mxu1 %v11962_v31  ;;  %v12061_v30 = vld [vmem:[%s13949_s23 + $0x1604] ss:$8 sps:$4 sm:$0xff]   ;;  %v12050_v31 = vld [vmem:[%s13951_s30 + $0x10] ss:$300 sps:$4 sm:$0xff]  }
  0xd3   : > { %9091 = vmatprep.subr.bf16.mxu0 %v11965_v32  ;;  %8304 = vmatprep.mubr.bf16.mxu1 %v12052_v38  ;;  %v12053_v32 = vld [vmem:[%s13949_s23 + $0x300] ss:$8 sps:$4 sm:$0xff]  }
  0xd4   : > { %9121 = vmatprep.mubr.bf16.mxu0 %v12058_v42  ;;  %v12160_v38 = vld [vmem:[%s13951_s30 + $0xb4] ss:$300 sps:$4 sm:$0xff]  }
  0xd5   : > { %8275 = vmatpush1.bf16.msra.mxu1 %v11960_v33  ;;  %v12056_v33 = vld [vmem:[%s13951_s30 + $0xa8] ss:$300 sps:$4 sm:$0xff]  }
  0xd6   : > { %9092 = vmatpush1.bf16.msra.mxu0 %v11963_v34  ;;  %8276 = vmatprep.subr.bf16.mxu1 %v11968_v35  ;;  %v12059_v34 = vld [vmem:[%s13949_s23 + $0x1600] ss:$8 sps:$4 sm:$0xff]   ;;  %v12064_v35 = vld [vmem:[%s13949_s23 + $0x314] ss:$8 sps:$4 sm:$0xff]   ;;  %v12073_v42 = vld [vmem:[%s13949_s23 + $0x1624] ss:$8 sps:$4 sm:$0xff]  }
  0xd7   : > { %9093 = vmatprep.subr.bf16.mxu0 %v11971_v36  ;;  %v12067_v36 = vld [vmem:[%s13949_s23 + $0x1614] ss:$8 sps:$4 sm:$0xff]  }
  0xd9   : > { %8277 = vmatpush1.bf16.msra.mxu1 %v11966_v37  ;;  %v12154_v37 = vld [vmem:[%s13951_s30 + $0x1c] ss:$300 sps:$4 sm:$0xff]  }
  0xda   : > { %9094 = vmatpush1.bf16.msra.mxu0 %v11969_v39  ;;  %8278 = vmatprep.subr.bf16.mxu1 %v11974_v40  ;;  %v12062_v39 = vld [vmem:[%s13949_s23 + $0x310] ss:$8 sps:$4 sm:$0xff]  }
  0xdb   : > { %9095 = vmatprep.subr.bf16.mxu0 %v11977_v41  ;;  %v12065_v40 = vld [vmem:[%s13949_s23 + $0x1610] ss:$8 sps:$4 sm:$0xff]   ;;  %v12070_v41 = vld [vmem:[%s13949_s23 + $0x324] ss:$8 sps:$4 sm:$0xff]  }
  0xdd   : > { %8279 = vmatpush1.bf16.msra.mxu1 %v11972_v43  ;;  %v12068_v43 = vld [vmem:[%s13949_s23 + $0x320] ss:$8 sps:$4 sm:$0xff]  }
  0xde   : > { %9096 = vmatpush1.bf16.msra.mxu0 %v11975_v44  ;;  %8280 = vmatprep.subr.bf16.mxu1 %v11980_v45  ;;  %v12071_v44 = vld [vmem:[%s13949_s23 + $0x1620] ss:$8 sps:$4 sm:$0xff]   ;;  %v12076_v45 = vld [vmem:[%s13949_s23 + $0x334] ss:$8 sps:$4 sm:$0xff]  }
  0xdf   : > { %9097 = vmatprep.subr.bf16.mxu0 %v11983_v46  ;;  %v12079_v46 = vld [vmem:[%s13949_s23 + $0x1634] ss:$8 sps:$4 sm:$0xff]  }
  0xe1   : > { %8281 = vmatpush1.bf16.msra.mxu1 %v11978_v47  ;;  %v12074_v47 = vld [vmem:[%s13949_s23 + $0x330] ss:$8 sps:$4 sm:$0xff]  }
  0xe2   : > { %9098 = vmatpush1.bf16.msra.mxu0 %v11981_v48  ;;  %8282 = vmatprep.subr.bf16.mxu1 %v11986_v49  ;;  %v12077_v48 = vld [vmem:[%s13949_s23 + $0x1630] ss:$8 sps:$4 sm:$0xff]   ;;  %v12082_v49 = vld [vmem:[%s13949_s23 + $0x344] ss:$8 sps:$4 sm:$0xff]  }
  0xe3   : > { %9099 = vmatprep.subr.bf16.mxu0 %v11989_v50  ;;  %v12085_v50 = vld [vmem:[%s13949_s23 + $0x1644] ss:$8 sps:$4 sm:$0xff]  }
  0xe5   : > { %8283 = vmatpush1.bf16.msra.mxu1 %v11984_v51  ;;  %v12080_v51 = vld [vmem:[%s13949_s23 + $0x340] ss:$8 sps:$4 sm:$0xff]  }
  0xe6   : > { %9100 = vmatpush1.bf16.msra.mxu0 %v11987_v52  ;;  %8284 = vmatprep.subr.bf16.mxu1 %v11992_v53  ;;  %v12083_v52 = vld [vmem:[%s13949_s23 + $0x1640] ss:$8 sps:$4 sm:$0xff]   ;;  %v12088_v53 = vld [vmem:[%s13949_s23 + $0x354] ss:$8 sps:$4 sm:$0xff]  }
  0xe7   : > { %9101 = vmatprep.subr.bf16.mxu0 %v11995_v54  ;;  %v12091_v54 = vld [vmem:[%s13949_s23 + $0x1654] ss:$8 sps:$4 sm:$0xff]  }
  0xe9   : > { %8285 = vmatpush1.bf16.msra.mxu1 %v11990_v55  ;;  %v12086_v55 = vld [vmem:[%s13949_s23 + $0x350] ss:$8 sps:$4 sm:$0xff]  }
  0xea   : > { %9102 = vmatpush1.bf16.msra.mxu0 %v11993_v56  ;;  %8286 = vmatprep.subr.bf16.mxu1 %v11998_v57  ;;  %v12089_v56 = vld [vmem:[%s13949_s23 + $0x1650] ss:$8 sps:$4 sm:$0xff]   ;;  %v12094_v57 = vld [vmem:[%s13949_s23 + $0x364] ss:$8 sps:$4 sm:$0xff]  }
  0xeb   : > { %9103 = vmatprep.subr.bf16.mxu0 %v12001_v58  ;;  %v12097_v58 = vld [vmem:[%s13949_s23 + $0x1664] ss:$8 sps:$4 sm:$0xff]  }
  0xed   : > { %8287 = vmatpush1.bf16.msra.mxu1 %v11996_v59  ;;  %v12092_v59 = vld [vmem:[%s13949_s23 + $0x360] ss:$8 sps:$4 sm:$0xff]  }
  0xee   : > { %9104 = vmatpush1.bf16.msra.mxu0 %v11999_v60  ;;  %8288 = vmatprep.subr.bf16.mxu1 %v12004_v61  ;;  %v12095_v60 = vld [vmem:[%s13949_s23 + $0x1660] ss:$8 sps:$4 sm:$0xff]   ;;  %v12100_v61 = vld [vmem:[%s13949_s23 + $0x374] ss:$8 sps:$4 sm:$0xff]  }
  0xef   : > { %9105 = vmatprep.subr.bf16.mxu0 %v12007_v62  ;;  %v12103_v62 = vld [vmem:[%s13949_s23 + $0x1674] ss:$8 sps:$4 sm:$0xff]  }
  0xf1   : > { %8289 = vmatpush1.bf16.msra.mxu1 %v12002_v63  ;;  %v12098_v63 = vld [vmem:[%s13949_s23 + $0x370] ss:$8 sps:$4 sm:$0xff]  }
  0xf2   : > { %9106 = vmatpush1.bf16.msra.mxu0 %v12005_v0  ;;  %8290 = vmatprep.subr.bf16.mxu1 %v12010_v1  ;;  %v12101_v0 = vld [vmem:[%s13949_s23 + $0x1670] ss:$8 sps:$4 sm:$0xff]   ;;  %v12106_v1 = vld [vmem:[%s13949_s23 + $0x384] ss:$8 sps:$4 sm:$0xff]  }
  0xf3   : > { %9107 = vmatprep.subr.bf16.mxu0 %v12013_v2  ;;  %v12109_v2 = vld [vmem:[%s13949_s23 + $0x1684] ss:$8 sps:$4 sm:$0xff]  }
  0xf5   : > { %8291 = vmatpush1.bf16.msra.mxu1 %v12008_v3  ;;  %v12104_v3 = vld [vmem:[%s13949_s23 + $0x380] ss:$8 sps:$4 sm:$0xff]  }
  0xf6   : > { %9108 = vmatpush1.bf16.msra.mxu0 %v12011_v4  ;;  %8292 = vmatprep.subr.bf16.mxu1 %v12016_v5  ;;  %v12107_v4 = vld [vmem:[%s13949_s23 + $0x1680] ss:$8 sps:$4 sm:$0xff]   ;;  %v12112_v5 = vld [vmem:[%s13949_s23 + $0x394] ss:$8 sps:$4 sm:$0xff]  }
  0xf7   : > { %9109 = vmatprep.subr.bf16.mxu0 %v12019_v6  ;;  %v12115_v6 = vld [vmem:[%s13949_s23 + $0x1694] ss:$8 sps:$4 sm:$0xff]  }
  0xf9   : > { %8293 = vmatpush1.bf16.msra.mxu1 %v12014_v7  ;;  %v12110_v7 = vld [vmem:[%s13949_s23 + $0x390] ss:$8 sps:$4 sm:$0xff]  }
  0xfa   : > { %9110 = vmatpush1.bf16.msra.mxu0 %v12017_v8  ;;  %8294 = vmatprep.subr.bf16.mxu1 %v12022_v9  ;;  %v12113_v8 = vld [vmem:[%s13949_s23 + $0x1690] ss:$8 sps:$4 sm:$0xff]   ;;  %v12118_v9 = vld [vmem:[%s13949_s23 + $0x3a4] ss:$8 sps:$4 sm:$0xff]  }
  0xfb   : > { %9111 = vmatprep.subr.bf16.mxu0 %v12025_v10  ;;  %v12121_v10 = vld [vmem:[%s13949_s23 + $0x16a4] ss:$8 sps:$4 sm:$0xff]  }
  0xfd   : > { %8295 = vmatpush1.bf16.msra.mxu1 %v12020_v11  ;;  %v12116_v11 = vld [vmem:[%s13949_s23 + $0x3a0] ss:$8 sps:$4 sm:$0xff]  }
  0xfe   : > { %9112 = vmatpush1.bf16.msra.mxu0 %v12023_v12  ;;  %8296 = vmatprep.subr.bf16.mxu1 %v12028_v13  ;;  %v12119_v12 = vld [vmem:[%s13949_s23 + $0x16a0] ss:$8 sps:$4 sm:$0xff]   ;;  %v12124_v13 = vld [vmem:[%s13949_s23 + $0x3b4] ss:$8 sps:$4 sm:$0xff]  }
  0xff   : > { %9113 = vmatprep.subr.bf16.mxu0 %v12031_v14  ;;  %v12127_v14 = vld [vmem:[%s13949_s23 + $0x16b4] ss:$8 sps:$4 sm:$0xff]  }
 0x101   : > { %8297 = vmatpush1.bf16.msra.mxu1 %v12026_v15  ;;  %v12122_v15 = vld [vmem:[%s13949_s23 + $0x3b0] ss:$8 sps:$4 sm:$0xff]  }
 0x102   : > { %9114 = vmatpush1.bf16.msra.mxu0 %v12029_v16  ;;  %8298 = vmatprep.subr.bf16.mxu1 %v12034_v17  ;;  %v12125_v16 = vld [vmem:[%s13949_s23 + $0x16b0] ss:$8 sps:$4 sm:$0xff]   ;;  %v12130_v17 = vld [vmem:[%s13949_s23 + $0x3c4] ss:$8 sps:$4 sm:$0xff]  }
 0x103   : > { %9115 = vmatprep.subr.bf16.mxu0 %v12037_v18  ;;  %v12133_v18 = vld [vmem:[%s13949_s23 + $0x16c4] ss:$8 sps:$4 sm:$0xff]  }
 0x105   : > { %8299 = vmatpush1.bf16.msra.mxu1 %v12032_v19  ;;  %v12128_v19 = vld [vmem:[%s13949_s23 + $0x3c0] ss:$8 sps:$4 sm:$0xff]  }
 0x106   : > { %9116 = vmatpush1.bf16.msra.mxu0 %v12035_v20  ;;  %8300 = vmatprep.subr.bf16.mxu1 %v12040_v21  ;;  %v12131_v20 = vld [vmem:[%s13949_s23 + $0x16c0] ss:$8 sps:$4 sm:$0xff]   ;;  %v12136_v21 = vld [vmem:[%s13949_s23 + $0x3d4] ss:$8 sps:$4 sm:$0xff]  }
 0x107   : > { %9117 = vmatprep.subr.bf16.mxu0 %v12043_v22  ;;  %v12139_v22 = vld [vmem:[%s13949_s23 + $0x16d4] ss:$8 sps:$4 sm:$0xff]  }
 0x109   : > { %8301 = vmatpush1.bf16.msra.mxu1 %v12038_v23  ;;  %v12134_v23 = vld [vmem:[%s13949_s23 + $0x3d0] ss:$8 sps:$4 sm:$0xff]  }
 0x10a   : > { %9118 = vmatpush1.bf16.msra.mxu0 %v12041_v24  ;;  %8302 = vmatprep.subr.bf16.mxu1 %v12046_v25  ;;  %v12137_v24 = vld [vmem:[%s13949_s23 + $0x16d0] ss:$8 sps:$4 sm:$0xff]   ;;  %v12142_v25 = vld [vmem:[%s13949_s23 + $0x3e4] ss:$8 sps:$4 sm:$0xff]  }
 0x10b   : > { %9119 = vmatprep.subr.bf16.mxu0 %v12049_v26  ;;  %v12145_v26 = vld [vmem:[%s13949_s23 + $0x16e4] ss:$8 sps:$4 sm:$0xff]  }
 0x10d   : > { %8303 = vmatpush1.bf16.msra.mxu1 %v12044_v27  ;;  %v12140_v27 = vld [vmem:[%s13949_s23 + $0x3e0] ss:$8 sps:$4 sm:$0xff]  }
 0x10e   : > { %9120 = vmatpush1.bf16.msra.mxu0 %v12047_v28  ;;  %8315 = vmatprep.subr.bf16.mxu1 %v12055_v29  ;;  %v12143_v28 = vld [vmem:[%s13949_s23 + $0x16e0] ss:$8 sps:$4 sm:$0xff]   ;;  %v12148_v29 = vld [vmem:[%s13949_s23 + $0x3f4] ss:$8 sps:$4 sm:$0xff]  }
 0x10f   : > { %9132 = vmatprep.subr.bf16.mxu0 %v12061_v30  ;;  %v12151_v30 = vld [vmem:[%s13949_s23 + $0x16f4] ss:$8 sps:$4 sm:$0xff]  }
 0x110   : > { %8305 = vmatmul.mubr.bf16.vlgmr.msra.gmra.mrb[0].mxu1 %v12050_v31  ;;  %v12146_v31 = vld [vmem:[%s13949_s23 + $0x3f0] ss:$8 sps:$4 sm:$0xff]  }
 0x111   : > { %9122 = vmatmul.mubr.bf16.vlgmr.msra.gmra.mrb[0].mxu0 %v12056_v33  ;;  %8316 = vmatpush1.bf16.msra.mxu1 %v12053_v32  ;;  %v12149_v32 = vld [vmem:[%s13949_s23 + $0x16f0] ss:$8 sps:$4 sm:$0xff]   ;;  %v12157_v33 = vld [vmem:[%s13949_s23 + $0x404] ss:$8 sps:$4 sm:$0xff]  }
 0x112   : > { %9133 = vmatpush1.bf16.msra.mxu0 %v12059_v34  ;;  %8317 = vmatprep.subr.bf16.mxu1 %v12064_v35  ;;  %v12163_v34 = vld [vmem:[%s13949_s23 + $0x1704] ss:$8 sps:$4 sm:$0xff]  }
 0x113   : > { %9134 = vmatprep.subr.bf16.mxu0 %v12067_v36  ;;  %8347 = vmatprep.mubr.bf16.mxu1 %v12154_v37  ;;  %v12152_v35 = vld [vmem:[%s13951_s30 + $0x18] ss:$300 sps:$4 sm:$0xff]   ;;  %v12155_v36 = vld [vmem:[%s13949_s23 + $0x400] ss:$8 sps:$4 sm:$0xff]  }
 0x114   : > { %9164 = vmatprep.mubr.bf16.mxu0 %v12160_v38  ;;  %v12158_v37 = vld [vmem:[%s13951_s30 + $0xb0] ss:$300 sps:$4 sm:$0xff]  }
 0x115   : > { %8318 = vmatpush1.bf16.msra.mxu1 %v12062_v39  ;;  %v12161_v38 = vld [vmem:[%s13949_s23 + $0x1700] ss:$8 sps:$4 sm:$0xff]   ;;  %v12166_v39 = vld [vmem:[%s13949_s23 + $0x414] ss:$8 sps:$4 sm:$0xff]  }
 0x116   : > { %9135 = vmatpush1.bf16.msra.mxu0 %v12065_v40  ;;  %8319 = vmatprep.subr.bf16.mxu1 %v12070_v41  ;;  %v12169_v40 = vld [vmem:[%s13949_s23 + $0x1714] ss:$8 sps:$4 sm:$0xff]  }
 0x117   : > { %9136 = vmatprep.subr.bf16.mxu0 %v12073_v42  ;;  %v12256_v41 = vld [vmem:[%s13951_s30 + $0x24] ss:$300 sps:$4 sm:$0xff]   ;;  %v12262_v42 = vld [vmem:[%s13951_s30 + $0xbc] ss:$300 sps:$4 sm:$0xff]  }
 0x119   : > { %8320 = vmatpush1.bf16.msra.mxu1 %v12068_v43  ;;  %v12164_v43 = vld [vmem:[%s13949_s23 + $0x410] ss:$8 sps:$4 sm:$0xff]  }
 0x11a   : > { %9137 = vmatpush1.bf16.msra.mxu0 %v12071_v44  ;;  %8321 = vmatprep.subr.bf16.mxu1 %v12076_v45  ;;  %v12167_v44 = vld [vmem:[%s13949_s23 + $0x1710] ss:$8 sps:$4 sm:$0xff]   ;;  %v12172_v45 = vld [vmem:[%s13949_s23 + $0x424] ss:$8 sps:$4 sm:$0xff]  }
 0x11b   : > { %9138 = vmatprep.subr.bf16.mxu0 %v12079_v46  ;;  %v12175_v46 = vld [vmem:[%s13949_s23 + $0x1724] ss:$8 sps:$4 sm:$0xff]  }
 0x11d   : > { %8322 = vmatpush1.bf16.msra.mxu1 %v12074_v47  ;;  %v12170_v47 = vld [vmem:[%s13949_s23 + $0x420] ss:$8 sps:$4 sm:$0xff]  }
 0x11e   : > { %9139 = vmatpush1.bf16.msra.mxu0 %v12077_v48  ;;  %8323 = vmatprep.subr.bf16.mxu1 %v12082_v49  ;;  %v12173_v48 = vld [vmem:[%s13949_s23 + $0x1720] ss:$8 sps:$4 sm:$0xff]   ;;  %v12178_v49 = vld [vmem:[%s13949_s23 + $0x434] ss:$8 sps:$4 sm:$0xff]  }
 0x11f   : > { %9140 = vmatprep.subr.bf16.mxu0 %v12085_v50  ;;  %v12181_v50 = vld [vmem:[%s13949_s23 + $0x1734] ss:$8 sps:$4 sm:$0xff]  }
 0x121   : > { %8324 = vmatpush1.bf16.msra.mxu1 %v12080_v51  ;;  %v12176_v51 = vld [vmem:[%s13949_s23 + $0x430] ss:$8 sps:$4 sm:$0xff]  }
 0x122   : > { %9141 = vmatpush1.bf16.msra.mxu0 %v12083_v52  ;;  %8325 = vmatprep.subr.bf16.mxu1 %v12088_v53  ;;  %v12179_v52 = vld [vmem:[%s13949_s23 + $0x1730] ss:$8 sps:$4 sm:$0xff]   ;;  %v12184_v53 = vld [vmem:[%s13949_s23 + $0x444] ss:$8 sps:$4 sm:$0xff]  }
 0x123   : > { %9142 = vmatprep.subr.bf16.mxu0 %v12091_v54  ;;  %v12187_v54 = vld [vmem:[%s13949_s23 + $0x1744] ss:$8 sps:$4 sm:$0xff]  }
 0x125   : > { %8326 = vmatpush1.bf16.msra.mxu1 %v12086_v55  ;;  %v12182_v55 = vld [vmem:[%s13949_s23 + $0x440] ss:$8 sps:$4 sm:$0xff]  }
 0x126   : > { %9143 = vmatpush1.bf16.msra.mxu0 %v12089_v56  ;;  %8327 = vmatprep.subr.bf16.mxu1 %v12094_v57  ;;  %v12185_v56 = vld [vmem:[%s13949_s23 + $0x1740] ss:$8 sps:$4 sm:$0xff]   ;;  %v12190_v57 = vld [vmem:[%s13949_s23 + $0x454] ss:$8 sps:$4 sm:$0xff]  }
 0x127   : > { %9144 = vmatprep.subr.bf16.mxu0 %v12097_v58  ;;  %v12193_v58 = vld [vmem:[%s13949_s23 + $0x1754] ss:$8 sps:$4 sm:$0xff]  }
 0x129   : > { %8328 = vmatpush1.bf16.msra.mxu1 %v12092_v59  ;;  %v12188_v59 = vld [vmem:[%s13949_s23 + $0x450] ss:$8 sps:$4 sm:$0xff]  }
 0x12a   : > { %9145 = vmatpush1.bf16.msra.mxu0 %v12095_v60  ;;  %8329 = vmatprep.subr.bf16.mxu1 %v12100_v61  ;;  %v12191_v60 = vld [vmem:[%s13949_s23 + $0x1750] ss:$8 sps:$4 sm:$0xff]   ;;  %v12196_v61 = vld [vmem:[%s13949_s23 + $0x464] ss:$8 sps:$4 sm:$0xff]  }
 0x12b   : > { %9146 = vmatprep.subr.bf16.mxu0 %v12103_v62  ;;  %v12199_v62 = vld [vmem:[%s13949_s23 + $0x1764] ss:$8 sps:$4 sm:$0xff]  }
 0x12d   : > { %8330 = vmatpush1.bf16.msra.mxu1 %v12098_v63  ;;  %v12194_v63 = vld [vmem:[%s13949_s23 + $0x460] ss:$8 sps:$4 sm:$0xff]  }
 0x12e   : > { %9147 = vmatpush1.bf16.msra.mxu0 %v12101_v0  ;;  %8331 = vmatprep.subr.bf16.mxu1 %v12106_v1  ;;  %v12197_v0 = vld [vmem:[%s13949_s23 + $0x1760] ss:$8 sps:$4 sm:$0xff]   ;;  %v12202_v1 = vld [vmem:[%s13949_s23 + $0x474] ss:$8 sps:$4 sm:$0xff]  }
 0x12f   : > { %9148 = vmatprep.subr.bf16.mxu0 %v12109_v2  ;;  %v12205_v2 = vld [vmem:[%s13949_s23 + $0x1774] ss:$8 sps:$4 sm:$0xff]  }
 0x131   : > { %8332 = vmatpush1.bf16.msra.mxu1 %v12104_v3  ;;  %v12200_v3 = vld [vmem:[%s13949_s23 + $0x470] ss:$8 sps:$4 sm:$0xff]  }
 0x132   : > { %9149 = vmatpush1.bf16.msra.mxu0 %v12107_v4  ;;  %8333 = vmatprep.subr.bf16.mxu1 %v12112_v5  ;;  %v12203_v4 = vld [vmem:[%s13949_s23 + $0x1770] ss:$8 sps:$4 sm:$0xff]   ;;  %v12208_v5 = vld [vmem:[%s13949_s23 + $0x484] ss:$8 sps:$4 sm:$0xff]  }
 0x133   : > { %9150 = vmatprep.subr.bf16.mxu0 %v12115_v6  ;;  %v12211_v6 = vld [vmem:[%s13949_s23 + $0x1784] ss:$8 sps:$4 sm:$0xff]  }
 0x135   : > { %8334 = vmatpush1.bf16.msra.mxu1 %v12110_v7  ;;  %v12206_v7 = vld [vmem:[%s13949_s23 + $0x480] ss:$8 sps:$4 sm:$0xff]  }
 0x136   : > { %9151 = vmatpush1.bf16.msra.mxu0 %v12113_v8  ;;  %8335 = vmatprep.subr.bf16.mxu1 %v12118_v9  ;;  %v12209_v8 = vld [vmem:[%s13949_s23 + $0x1780] ss:$8 sps:$4 sm:$0xff]   ;;  %v12214_v9 = vld [vmem:[%s13949_s23 + $0x494] ss:$8 sps:$4 sm:$0xff]  }
 0x137   : > { %9152 = vmatprep.subr.bf16.mxu0 %v12121_v10  ;;  %v12217_v10 = vld [vmem:[%s13949_s23 + $0x1794] ss:$8 sps:$4 sm:$0xff]  }
 0x139   : > { %8336 = vmatpush1.bf16.msra.mxu1 %v12116_v11  ;;  %v12212_v11 = vld [vmem:[%s13949_s23 + $0x490] ss:$8 sps:$4 sm:$0xff]  }
 0x13a   : > { %9153 = vmatpush1.bf16.msra.mxu0 %v12119_v12  ;;  %8337 = vmatprep.subr.bf16.mxu1 %v12124_v13  ;;  %v12215_v12 = vld [vmem:[%s13949_s23 + $0x1790] ss:$8 sps:$4 sm:$0xff]   ;;  %v12220_v13 = vld [vmem:[%s13949_s23 + $0x4a4] ss:$8 sps:$4 sm:$0xff]  }
 0x13b   : > { %9154 = vmatprep.subr.bf16.mxu0 %v12127_v14  ;;  %v12223_v14 = vld [vmem:[%s13949_s23 + $0x17a4] ss:$8 sps:$4 sm:$0xff]  }
 0x13d   : > { %8338 = vmatpush1.bf16.msra.mxu1 %v12122_v15  ;;  %v12218_v15 = vld [vmem:[%s13949_s23 + $0x4a0] ss:$8 sps:$4 sm:$0xff]  }
 0x13e   : > { %9155 = vmatpush1.bf16.msra.mxu0 %v12125_v16  ;;  %8339 = vmatprep.subr.bf16.mxu1 %v12130_v17  ;;  %v12221_v16 = vld [vmem:[%s13949_s23 + $0x17a0] ss:$8 sps:$4 sm:$0xff]   ;;  %v12226_v17 = vld [vmem:[%s13949_s23 + $0x4b4] ss:$8 sps:$4 sm:$0xff]  }
 0x13f   : > { %9156 = vmatprep.subr.bf16.mxu0 %v12133_v18  ;;  %v12229_v18 = vld [vmem:[%s13949_s23 + $0x17b4] ss:$8 sps:$4 sm:$0xff]  }
 0x141   : > { %8340 = vmatpush1.bf16.msra.mxu1 %v12128_v19  ;;  %v12224_v19 = vld [vmem:[%s13949_s23 + $0x4b0] ss:$8 sps:$4 sm:$0xff]  }
 0x142   : > { %9157 = vmatpush1.bf16.msra.mxu0 %v12131_v20  ;;  %8341 = vmatprep.subr.bf16.mxu1 %v12136_v21  ;;  %v12227_v20 = vld [vmem:[%s13949_s23 + $0x17b0] ss:$8 sps:$4 sm:$0xff]   ;;  %v12232_v21 = vld [vmem:[%s13949_s23 + $0x4c4] ss:$8 sps:$4 sm:$0xff]  }
 0x143   : > { %9158 = vmatprep.subr.bf16.mxu0 %v12139_v22  ;;  %v12235_v22 = vld [vmem:[%s13949_s23 + $0x17c4] ss:$8 sps:$4 sm:$0xff]  }
 0x145   : > { %8342 = vmatpush1.bf16.msra.mxu1 %v12134_v23  ;;  %v12230_v23 = vld [vmem:[%s13949_s23 + $0x4c0] ss:$8 sps:$4 sm:$0xff]  }
 0x146   : > { %9159 = vmatpush1.bf16.msra.mxu0 %v12137_v24  ;;  %8343 = vmatprep.subr.bf16.mxu1 %v12142_v25  ;;  %v12233_v24 = vld [vmem:[%s13949_s23 + $0x17c0] ss:$8 sps:$4 sm:$0xff]   ;;  %v12238_v25 = vld [vmem:[%s13949_s23 + $0x4d4] ss:$8 sps:$4 sm:$0xff]  }
 0x147   : > { %9160 = vmatprep.subr.bf16.mxu0 %v12145_v26  ;;  %v12241_v26 = vld [vmem:[%s13949_s23 + $0x17d4] ss:$8 sps:$4 sm:$0xff]  }
 0x149   : > { %8344 = vmatpush1.bf16.msra.mxu1 %v12140_v27  ;;  %v12236_v27 = vld [vmem:[%s13949_s23 + $0x4d0] ss:$8 sps:$4 sm:$0xff]  }
 0x14a   : > { %9161 = vmatpush1.bf16.msra.mxu0 %v12143_v28  ;;  %8345 = vmatprep.subr.bf16.mxu1 %v12148_v29  ;;  %v12239_v28 = vld [vmem:[%s13949_s23 + $0x17d0] ss:$8 sps:$4 sm:$0xff]   ;;  %v12244_v29 = vld [vmem:[%s13949_s23 + $0x4e4] ss:$8 sps:$4 sm:$0xff]  }
 0x14b   : > { %9162 = vmatprep.subr.bf16.mxu0 %v12151_v30  ;;  %v12247_v30 = vld [vmem:[%s13949_s23 + $0x17e4] ss:$8 sps:$4 sm:$0xff]  }
 0x14d   : > { %8346 = vmatpush1.bf16.msra.mxu1 %v12146_v31  ;;  %v12242_v31 = vld [vmem:[%s13949_s23 + $0x4e0] ss:$8 sps:$4 sm:$0xff]  }
 0x14e   : > { %9163 = vmatpush1.bf16.msra.mxu0 %v12149_v32  ;;  %8358 = vmatprep.subr.bf16.mxu1 %v12157_v33  ;;  %v12245_v32 = vld [vmem:[%s13949_s23 + $0x17e0] ss:$8 sps:$4 sm:$0xff]   ;;  %v12250_v33 = vld [vmem:[%s13949_s23 + $0x4f4] ss:$8 sps:$4 sm:$0xff]  }
 0x14f   : > { %9175 = vmatprep.subr.bf16.mxu0 %v12163_v34  ;;  %v12253_v34 = vld [vmem:[%s13949_s23 + $0x17f4] ss:$8 sps:$4 sm:$0xff]  }
 0x150   : > { %8348 = vmatmul.mubr.bf16.vlgmr.msra.gmra.mrb[0].mxu1 %v12152_v35  ;;  %v12248_v35 = vld [vmem:[%s13949_s23 + $0x4f0] ss:$8 sps:$4 sm:$0xff]  }
 0x151   : > { %9165 = vmatmul.mubr.bf16.vlgmr.msra.gmra.mrb[0].mxu0 %v12158_v37  ;;  %8359 = vmatpush1.bf16.msra.mxu1 %v12155_v36  ;;  %v12251_v36 = vld [vmem:[%s13949_s23 + $0x17f0] ss:$8 sps:$4 sm:$0xff]   ;;  %v12259_v37 = vld [vmem:[%s13949_s23 + $0x504] ss:$8 sps:$4 sm:$0xff]  }
 0x152   : > { %9176 = vmatpush1.bf16.msra.mxu0 %v12161_v38  ;;  %8360 = vmatprep.subr.bf16.mxu1 %v12166_v39  ;;  %v12254_v38 = vld [vmem:[%s13951_s30 + $0x20] ss:$300 sps:$4 sm:$0xff]   ;;  %v12260_v39 = vld [vmem:[%s13951_s30 + $0xb8] ss:$300 sps:$4 sm:$0xff]  }
 0x153   : > { %9177 = vmatprep.subr.bf16.mxu0 %v12169_v40  ;;  %8390 = vmatprep.mubr.bf16.mxu1 %v12256_v41  ;;  %v12265_v40 = vld [vmem:[%s13949_s23 + $0x1804] ss:$8 sps:$4 sm:$0xff]   ;;  %v12257_v41 = vld [vmem:[%s13949_s23 + $0x500] ss:$8 sps:$4 sm:$0xff]  }
 0x154   : > { %9207 = vmatprep.mubr.bf16.mxu0 %v12262_v42  ;;  %v12263_v42 = vld [vmem:[%s13949_s23 + $0x1800] ss:$8 sps:$4 sm:$0xff]  }
 0x155   : > { %8361 = vmatpush1.bf16.msra.mxu1 %v12164_v43  ;;  %v12268_v43 = vld [vmem:[%s13949_s23 + $0x514] ss:$8 sps:$4 sm:$0xff]  }
 0x156   : > { %9178 = vmatpush1.bf16.msra.mxu0 %v12167_v44  ;;  %8362 = vmatprep.subr.bf16.mxu1 %v12172_v45  ;;  %v12271_v44 = vld [vmem:[%s13949_s23 + $0x1814] ss:$8 sps:$4 sm:$0xff]   ;;  %v12358_v45 = vld [vmem:[%s13951_s30 + $0x2c] ss:$300 sps:$4 sm:$0xff]  }
 0x157   : > { %9179 = vmatprep.subr.bf16.mxu0 %v12175_v46  ;;  %v12364_v46 = vld [vmem:[%s13951_s30 + $0xc4] ss:$300 sps:$4 sm:$0xff]  }
 0x159   : > { %8363 = vmatpush1.bf16.msra.mxu1 %v12170_v47  ;;  %v12266_v47 = vld [vmem:[%s13949_s23 + $0x510] ss:$8 sps:$4 sm:$0xff]  }
 0x15a   : > { %9180 = vmatpush1.bf16.msra.mxu0 %v12173_v48  ;;  %8364 = vmatprep.subr.bf16.mxu1 %v12178_v49  ;;  %v12269_v48 = vld [vmem:[%s13949_s23 + $0x1810] ss:$8 sps:$4 sm:$0xff]   ;;  %v12274_v49 = vld [vmem:[%s13949_s23 + $0x524] ss:$8 sps:$4 sm:$0xff]  }
 0x15b   : > { %9181 = vmatprep.subr.bf16.mxu0 %v12181_v50  ;;  %v12277_v50 = vld [vmem:[%s13949_s23 + $0x1824] ss:$8 sps:$4 sm:$0xff]  }
 0x15d   : > { %8365 = vmatpush1.bf16.msra.mxu1 %v12176_v51  ;;  %v12272_v51 = vld [vmem:[%s13949_s23 + $0x520] ss:$8 sps:$4 sm:$0xff]  }
 0x15e   : > { %9182 = vmatpush1.bf16.msra.mxu0 %v12179_v52  ;;  %8366 = vmatprep.subr.bf16.mxu1 %v12184_v53  ;;  %v12275_v52 = vld [vmem:[%s13949_s23 + $0x1820] ss:$8 sps:$4 sm:$0xff]   ;;  %v12280_v53 = vld [vmem:[%s13949_s23 + $0x534] ss:$8 sps:$4 sm:$0xff]  }
 0x15f   : > { %9183 = vmatprep.subr.bf16.mxu0 %v12187_v54  ;;  %v12283_v54 = vld [vmem:[%s13949_s23 + $0x1834] ss:$8 sps:$4 sm:$0xff]  }
 0x161   : > { %8367 = vmatpush1.bf16.msra.mxu1 %v12182_v55  ;;  %v12278_v55 = vld [vmem:[%s13949_s23 + $0x530] ss:$8 sps:$4 sm:$0xff]  }
 0x162   : > { %9184 = vmatpush1.bf16.msra.mxu0 %v12185_v56  ;;  %8368 = vmatprep.subr.bf16.mxu1 %v12190_v57  ;;  %v12281_v56 = vld [vmem:[%s13949_s23 + $0x1830] ss:$8 sps:$4 sm:$0xff]   ;;  %v12286_v57 = vld [vmem:[%s13949_s23 + $0x544] ss:$8 sps:$4 sm:$0xff]  }
 0x163   : > { %9185 = vmatprep.subr.bf16.mxu0 %v12193_v58  ;;  %v12289_v58 = vld [vmem:[%s13949_s23 + $0x1844] ss:$8 sps:$4 sm:$0xff]  }
 0x165   : > { %8369 = vmatpush1.bf16.msra.mxu1 %v12188_v59  ;;  %v12284_v59 = vld [vmem:[%s13949_s23 + $0x540] ss:$8 sps:$4 sm:$0xff]  }
 0x166   : > { %9186 = vmatpush1.bf16.msra.mxu0 %v12191_v60  ;;  %8370 = vmatprep.subr.bf16.mxu1 %v12196_v61  ;;  %v12287_v60 = vld [vmem:[%s13949_s23 + $0x1840] ss:$8 sps:$4 sm:$0xff]   ;;  %v12292_v61 = vld [vmem:[%s13949_s23 + $0x554] ss:$8 sps:$4 sm:$0xff]  }
 0x167   : > { %9187 = vmatprep.subr.bf16.mxu0 %v12199_v62  ;;  %v12295_v62 = vld [vmem:[%s13949_s23 + $0x1854] ss:$8 sps:$4 sm:$0xff]  }
 0x169   : > { %8371 = vmatpush1.bf16.msra.mxu1 %v12194_v63  ;;  %v12290_v63 = vld [vmem:[%s13949_s23 + $0x550] ss:$8 sps:$4 sm:$0xff]  }
 0x16a   : > { %9188 = vmatpush1.bf16.msra.mxu0 %v12197_v0  ;;  %8372 = vmatprep.subr.bf16.mxu1 %v12202_v1  ;;  %v12293_v0 = vld [vmem:[%s13949_s23 + $0x1850] ss:$8 sps:$4 sm:$0xff]   ;;  %v12298_v1 = vld [vmem:[%s13949_s23 + $0x564] ss:$8 sps:$4 sm:$0xff]  }
 0x16b   : > { %9189 = vmatprep.subr.bf16.mxu0 %v12205_v2  ;;  %v12301_v2 = vld [vmem:[%s13949_s23 + $0x1864] ss:$8 sps:$4 sm:$0xff]  }
 0x16d   : > { %8373 = vmatpush1.bf16.msra.mxu1 %v12200_v3  ;;  %v12296_v3 = vld [vmem:[%s13949_s23 + $0x560] ss:$8 sps:$4 sm:$0xff]  }
 0x16e   : > { %9190 = vmatpush1.bf16.msra.mxu0 %v12203_v4  ;;  %8374 = vmatprep.subr.bf16.mxu1 %v12208_v5  ;;  %v12299_v4 = vld [vmem:[%s13949_s23 + $0x1860] ss:$8 sps:$4 sm:$0xff]   ;;  %v12304_v5 = vld [vmem:[%s13949_s23 + $0x574] ss:$8 sps:$4 sm:$0xff]  }
 0x16f   : > { %9191 = vmatprep.subr.bf16.mxu0 %v12211_v6  ;;  %v12307_v6 = vld [vmem:[%s13949_s23 + $0x1874] ss:$8 sps:$4 sm:$0xff]  }
 0x171   : > { %8375 = vmatpush1.bf16.msra.mxu1 %v12206_v7  ;;  %v12302_v7 = vld [vmem:[%s13949_s23 + $0x570] ss:$8 sps:$4 sm:$0xff]  }
 0x172   : > { %9192 = vmatpush1.bf16.msra.mxu0 %v12209_v8  ;;  %8376 = vmatprep.subr.bf16.mxu1 %v12214_v9  ;;  %v12305_v8 = vld [vmem:[%s13949_s23 + $0x1870] ss:$8 sps:$4 sm:$0xff]   ;;  %v12310_v9 = vld [vmem:[%s13949_s23 + $0x584] ss:$8 sps:$4 sm:$0xff]  }
 0x173   : > { %9193 = vmatprep.subr.bf16.mxu0 %v12217_v10  ;;  %v12313_v10 = vld [vmem:[%s13949_s23 + $0x1884] ss:$8 sps:$4 sm:$0xff]  }
 0x175   : > { %8377 = vmatpush1.bf16.msra.mxu1 %v12212_v11  ;;  %v12308_v11 = vld [vmem:[%s13949_s23 + $0x580] ss:$8 sps:$4 sm:$0xff]  }
 0x176   : > { %9194 = vmatpush1.bf16.msra.mxu0 %v12215_v12  ;;  %8378 = vmatprep.subr.bf16.mxu1 %v12220_v13  ;;  %v12311_v12 = vld [vmem:[%s13949_s23 + $0x1880] ss:$8 sps:$4 sm:$0xff]   ;;  %v12316_v13 = vld [vmem:[%s13949_s23 + $0x594] ss:$8 sps:$4 sm:$0xff]  }
 0x177   : > { %9195 = vmatprep.subr.bf16.mxu0 %v12223_v14  ;;  %v12319_v14 = vld [vmem:[%s13949_s23 + $0x1894] ss:$8 sps:$4 sm:$0xff]  }
 0x179   : > { %8379 = vmatpush1.bf16.msra.mxu1 %v12218_v15  ;;  %v12314_v15 = vld [vmem:[%s13949_s23 + $0x590] ss:$8 sps:$4 sm:$0xff]  }
 0x17a   : > { %9196 = vmatpush1.bf16.msra.mxu0 %v12221_v16  ;;  %8380 = vmatprep.subr.bf16.mxu1 %v12226_v17  ;;  %v12317_v16 = vld [vmem:[%s13949_s23 + $0x1890] ss:$8 sps:$4 sm:$0xff]   ;;  %v12322_v17 = vld [vmem:[%s13949_s23 + $0x5a4] ss:$8 sps:$4 sm:$0xff]  }
 0x17b   : > { %9197 = vmatprep.subr.bf16.mxu0 %v12229_v18  ;;  %v12325_v18 = vld [vmem:[%s13949_s23 + $0x18a4] ss:$8 sps:$4 sm:$0xff]  }
 0x17d   : > { %8381 = vmatpush1.bf16.msra.mxu1 %v12224_v19  ;;  %v12320_v19 = vld [vmem:[%s13949_s23 + $0x5a0] ss:$8 sps:$4 sm:$0xff]  }
 0x17e   : > { %9198 = vmatpush1.bf16.msra.mxu0 %v12227_v20  ;;  %8382 = vmatprep.subr.bf16.mxu1 %v12232_v21  ;;  %v12323_v20 = vld [vmem:[%s13949_s23 + $0x18a0] ss:$8 sps:$4 sm:$0xff]   ;;  %v12328_v21 = vld [vmem:[%s13949_s23 + $0x5b4] ss:$8 sps:$4 sm:$0xff]  }
 0x17f   : > { %9199 = vmatprep.subr.bf16.mxu0 %v12235_v22  ;;  %v12331_v22 = vld [vmem:[%s13949_s23 + $0x18b4] ss:$8 sps:$4 sm:$0xff]  }
 0x181   : > { %8383 = vmatpush1.bf16.msra.mxu1 %v12230_v23  ;;  %v12326_v23 = vld [vmem:[%s13949_s23 + $0x5b0] ss:$8 sps:$4 sm:$0xff]  }
 0x182   : > { %9200 = vmatpush1.bf16.msra.mxu0 %v12233_v24  ;;  %8384 = vmatprep.subr.bf16.mxu1 %v12238_v25  ;;  %v12329_v24 = vld [vmem:[%s13949_s23 + $0x18b0] ss:$8 sps:$4 sm:$0xff]   ;;  %v12334_v25 = vld [vmem:[%s13949_s23 + $0x5c4] ss:$8 sps:$4 sm:$0xff]  }
 0x183   : > { %9201 = vmatprep.subr.bf16.mxu0 %v12241_v26  ;;  %v12337_v26 = vld [vmem:[%s13949_s23 + $0x18c4] ss:$8 sps:$4 sm:$0xff]  }
 0x185   : > { %8385 = vmatpush1.bf16.msra.mxu1 %v12236_v27  ;;  %v12332_v27 = vld [vmem:[%s13949_s23 + $0x5c0] ss:$8 sps:$4 sm:$0xff]  }
 0x186   : > { %9202 = vmatpush1.bf16.msra.mxu0 %v12239_v28  ;;  %8386 = vmatprep.subr.bf16.mxu1 %v12244_v29  ;;  %v12335_v28 = vld [vmem:[%s13949_s23 + $0x18c0] ss:$8 sps:$4 sm:$0xff]   ;;  %v12340_v29 = vld [vmem:[%s13949_s23 + $0x5d4] ss:$8 sps:$4 sm:$0xff]  }
 0x187   : > { %9203 = vmatprep.subr.bf16.mxu0 %v12247_v30  ;;  %v12343_v30 = vld [vmem:[%s13949_s23 + $0x18d4] ss:$8 sps:$4 sm:$0xff]  }
 0x189   : > { %8387 = vmatpush1.bf16.msra.mxu1 %v12242_v31  ;;  %v12338_v31 = vld [vmem:[%s13949_s23 + $0x5d0] ss:$8 sps:$4 sm:$0xff]  }
 0x18a   : > { %9204 = vmatpush1.bf16.msra.mxu0 %v12245_v32  ;;  %8388 = vmatprep.subr.bf16.mxu1 %v12250_v33  ;;  %v12341_v32 = vld [vmem:[%s13949_s23 + $0x18d0] ss:$8 sps:$4 sm:$0xff]   ;;  %v12346_v33 = vld [vmem:[%s13949_s23 + $0x5e4] ss:$8 sps:$4 sm:$0xff]  }
 0x18b   : > { %9205 = vmatprep.subr.bf16.mxu0 %v12253_v34  ;;  %v12349_v34 = vld [vmem:[%s13949_s23 + $0x18e4] ss:$8 sps:$4 sm:$0xff]  }
 0x18d   : > { %8389 = vmatpush1.bf16.msra.mxu1 %v12248_v35  ;;  %v12344_v35 = vld [vmem:[%s13949_s23 + $0x5e0] ss:$8 sps:$4 sm:$0xff]  }
 0x18e   : > { %9206 = vmatpush1.bf16.msra.mxu0 %v12251_v36  ;;  %8401 = vmatprep.subr.bf16.mxu1 %v12259_v37  ;;  %v12347_v36 = vld [vmem:[%s13949_s23 + $0x18e0] ss:$8 sps:$4 sm:$0xff]   ;;  %v12352_v37 = vld [vmem:[%s13949_s23 + $0x5f4] ss:$8 sps:$4 sm:$0xff]  }
 0x18f   : > { %9218 = vmatprep.subr.bf16.mxu0 %v12265_v40  ;;  %v12353_v40 = vld [vmem:[%s13949_s23 + $0x18f0] ss:$8 sps:$4 sm:$0xff]  }
 0x190   : > { %8391 = vmatmul.mubr.bf16.vlgmr.msra.gmra.mrb[0].mxu1 %v12254_v38  ;;  %v12355_v38 = vld [vmem:[%s13949_s23 + $0x18f4] ss:$8 sps:$4 sm:$0xff]  }
 0x191   : > { %9208 = vmatmul.mubr.bf16.vlgmr.msra.gmra.mrb[0].mxu0 %v12260_v39  ;;  %8402 = vmatpush1.bf16.msra.mxu1 %v12257_v41  ;;  %v12350_v39 = vld [vmem:[%s13949_s23 + $0x5f0] ss:$8 sps:$4 sm:$0xff]   ;;  %v12361_v41 = vld [vmem:[%s13949_s23 + $0x604] ss:$8 sps:$4 sm:$0xff]  }
 0x192   : > { %9219 = vmatpush1.bf16.msra.mxu0 %v12263_v42  ;;  %8403 = vmatprep.subr.bf16.mxu1 %v12268_v43  ;;  %v12356_v42 = vld [vmem:[%s13951_s30 + $0x28] ss:$300 sps:$4 sm:$0xff]   ;;  %v12362_v43 = vld [vmem:[%s13951_s30 + $0xc0] ss:$300 sps:$4 sm:$0xff]  }
 0x193   : > { %9220 = vmatprep.subr.bf16.mxu0 %v12271_v44  ;;  %8433 = vmatprep.mubr.bf16.mxu1 %v12358_v45  ;;  %v12367_v44 = vld [vmem:[%s13949_s23 + $0x1904] ss:$8 sps:$4 sm:$0xff]   ;;  %v12359_v45 = vld [vmem:[%s13949_s23 + $0x600] ss:$8 sps:$4 sm:$0xff]  }
 0x194   : > { %9250 = vmatprep.mubr.bf16.mxu0 %v12364_v46  ;;  %v12365_v46 = vld [vmem:[%s13949_s23 + $0x1900] ss:$8 sps:$4 sm:$0xff]  }
 0x195   : > { %8404 = vmatpush1.bf16.msra.mxu1 %v12266_v47  ;;  %v12370_v47 = vld [vmem:[%s13949_s23 + $0x614] ss:$8 sps:$4 sm:$0xff]  }
 0x196   : > { %9221 = vmatpush1.bf16.msra.mxu0 %v12269_v48  ;;  %8405 = vmatprep.subr.bf16.mxu1 %v12274_v49  ;;  %v12373_v48 = vld [vmem:[%s13949_s23 + $0x1914] ss:$8 sps:$4 sm:$0xff]  }
 0x197   : > { %9222 = vmatprep.subr.bf16.mxu0 %v12277_v50  ;;  %v12460_v49 = vld [vmem:[%s13951_s30 + $0x34] ss:$300 sps:$4 sm:$0xff]   ;;  %v12466_v50 = vld [vmem:[%s13951_s30 + $0xcc] ss:$300 sps:$4 sm:$0xff]  }
 0x199   : > { %8406 = vmatpush1.bf16.msra.mxu1 %v12272_v51  ;;  %v12368_v51 = vld [vmem:[%s13949_s23 + $0x610] ss:$8 sps:$4 sm:$0xff]  }
 0x19a   : > { %9223 = vmatpush1.bf16.msra.mxu0 %v12275_v52  ;;  %8407 = vmatprep.subr.bf16.mxu1 %v12280_v53  ;;  %v12371_v52 = vld [vmem:[%s13949_s23 + $0x1910] ss:$8 sps:$4 sm:$0xff]   ;;  %v12376_v53 = vld [vmem:[%s13949_s23 + $0x624] ss:$8 sps:$4 sm:$0xff]  }
 0x19b   : > { %9224 = vmatprep.subr.bf16.mxu0 %v12283_v54  ;;  %v12379_v54 = vld [vmem:[%s13949_s23 + $0x1924] ss:$8 sps:$4 sm:$0xff]  }
 0x19d   : > { %8408 = vmatpush1.bf16.msra.mxu1 %v12278_v55  ;;  %v12374_v55 = vld [vmem:[%s13949_s23 + $0x620] ss:$8 sps:$4 sm:$0xff]  }
 0x19e   : > { %9225 = vmatpush1.bf16.msra.mxu0 %v12281_v56  ;;  %8409 = vmatprep.subr.bf16.mxu1 %v12286_v57  ;;  %v12377_v56 = vld [vmem:[%s13949_s23 + $0x1920] ss:$8 sps:$4 sm:$0xff]   ;;  %v12382_v57 = vld [vmem:[%s13949_s23 + $0x634] ss:$8 sps:$4 sm:$0xff]  }
 0x19f   : > { %9226 = vmatprep.subr.bf16.mxu0 %v12289_v58  ;;  %v12385_v58 = vld [vmem:[%s13949_s23 + $0x1934] ss:$8 sps:$4 sm:$0xff]  }
 0x1a1   : > { %8410 = vmatpush1.bf16.msra.mxu1 %v12284_v59  ;;  %v12380_v59 = vld [vmem:[%s13949_s23 + $0x630] ss:$8 sps:$4 sm:$0xff]  }
 0x1a2   : > { %9227 = vmatpush1.bf16.msra.mxu0 %v12287_v60  ;;  %8411 = vmatprep.subr.bf16.mxu1 %v12292_v61  ;;  %v12383_v60 = vld [vmem:[%s13949_s23 + $0x1930] ss:$8 sps:$4 sm:$0xff]   ;;  %v12388_v61 = vld [vmem:[%s13949_s23 + $0x644] ss:$8 sps:$4 sm:$0xff]  }
 0x1a3   : > { %9228 = vmatprep.subr.bf16.mxu0 %v12295_v62  ;;  %v12391_v62 = vld [vmem:[%s13949_s23 + $0x1944] ss:$8 sps:$4 sm:$0xff]  }
 0x1a5   : > { %8412 = vmatpush1.bf16.msra.mxu1 %v12290_v63  ;;  %v12386_v63 = vld [vmem:[%s13949_s23 + $0x640] ss:$8 sps:$4 sm:$0xff]  }
 0x1a6   : > { %9229 = vmatpush1.bf16.msra.mxu0 %v12293_v0  ;;  %8413 = vmatprep.subr.bf16.mxu1 %v12298_v1  ;;  %v12389_v0 = vld [vmem:[%s13949_s23 + $0x1940] ss:$8 sps:$4 sm:$0xff]   ;;  %v12394_v1 = vld [vmem:[%s13949_s23 + $0x654] ss:$8 sps:$4 sm:$0xff]  }
 0x1a7   : > { %9230 = vmatprep.subr.bf16.mxu0 %v12301_v2  ;;  %v12397_v2 = vld [vmem:[%s13949_s23 + $0x1954] ss:$8 sps:$4 sm:$0xff]  }
 0x1a9   : > { %8414 = vmatpush1.bf16.msra.mxu1 %v12296_v3  ;;  %v12392_v3 = vld [vmem:[%s13949_s23 + $0x650] ss:$8 sps:$4 sm:$0xff]  }
 0x1aa   : > { %9231 = vmatpush1.bf16.msra.mxu0 %v12299_v4  ;;  %8415 = vmatprep.subr.bf16.mxu1 %v12304_v5  ;;  %v12395_v4 = vld [vmem:[%s13949_s23 + $0x1950] ss:$8 sps:$4 sm:$0xff]   ;;  %v12400_v5 = vld [vmem:[%s13949_s23 + $0x664] ss:$8 sps:$4 sm:$0xff]  }
 0x1ab   : > { %9232 = vmatprep.subr.bf16.mxu0 %v12307_v6  ;;  %v12403_v6 = vld [vmem:[%s13949_s23 + $0x1964] ss:$8 sps:$4 sm:$0xff]  }
 0x1ad   : > { %8416 = vmatpush1.bf16.msra.mxu1 %v12302_v7  ;;  %v12398_v7 = vld [vmem:[%s13949_s23 + $0x660] ss:$8 sps:$4 sm:$0xff]  }
 0x1ae   : > { %9233 = vmatpush1.bf16.msra.mxu0 %v12305_v8  ;;  %8417 = vmatprep.subr.bf16.mxu1 %v12310_v9  ;;  %v12401_v8 = vld [vmem:[%s13949_s23 + $0x1960] ss:$8 sps:$4 sm:$0xff]   ;;  %v12406_v9 = vld [vmem:[%s13949_s23 + $0x674] ss:$8 sps:$4 sm:$0xff]  }
 0x1af   : > { %9234 = vmatprep.subr.bf16.mxu0 %v12313_v10  ;;  %v12409_v10 = vld [vmem:[%s13949_s23 + $0x1974] ss:$8 sps:$4 sm:$0xff]  }
 0x1b1   : > { %8418 = vmatpush1.bf16.msra.mxu1 %v12308_v11  ;;  %v12404_v11 = vld [vmem:[%s13949_s23 + $0x670] ss:$8 sps:$4 sm:$0xff]  }
 0x1b2   : > { %9235 = vmatpush1.bf16.msra.mxu0 %v12311_v12  ;;  %8419 = vmatprep.subr.bf16.mxu1 %v12316_v13  ;;  %v12407_v12 = vld [vmem:[%s13949_s23 + $0x1970] ss:$8 sps:$4 sm:$0xff]   ;;  %v12412_v13 = vld [vmem:[%s13949_s23 + $0x684] ss:$8 sps:$4 sm:$0xff]  }
 0x1b3   : > { %9236 = vmatprep.subr.bf16.mxu0 %v12319_v14  ;;  %v12415_v14 = vld [vmem:[%s13949_s23 + $0x1984] ss:$8 sps:$4 sm:$0xff]  }
 0x1b5   : > { %8420 = vmatpush1.bf16.msra.mxu1 %v12314_v15  ;;  %v12410_v15 = vld [vmem:[%s13949_s23 + $0x680] ss:$8 sps:$4 sm:$0xff]  }
 0x1b6   : > { %9237 = vmatpush1.bf16.msra.mxu0 %v12317_v16  ;;  %8421 = vmatprep.subr.bf16.mxu1 %v12322_v17  ;;  %v12413_v16 = vld [vmem:[%s13949_s23 + $0x1980] ss:$8 sps:$4 sm:$0xff]   ;;  %v12418_v17 = vld [vmem:[%s13949_s23 + $0x694] ss:$8 sps:$4 sm:$0xff]  }
 0x1b7   : > { %9238 = vmatprep.subr.bf16.mxu0 %v12325_v18  ;;  %v12421_v18 = vld [vmem:[%s13949_s23 + $0x1994] ss:$8 sps:$4 sm:$0xff]  }
 0x1b9   : > { %8422 = vmatpush1.bf16.msra.mxu1 %v12320_v19  ;;  %v12416_v19 = vld [vmem:[%s13949_s23 + $0x690] ss:$8 sps:$4 sm:$0xff]  }
 0x1ba   : > { %9239 = vmatpush1.bf16.msra.mxu0 %v12323_v20  ;;  %8423 = vmatprep.subr.bf16.mxu1 %v12328_v21  ;;  %v12419_v20 = vld [vmem:[%s13949_s23 + $0x1990] ss:$8 sps:$4 sm:$0xff]   ;;  %v12424_v21 = vld [vmem:[%s13949_s23 + $0x6a4] ss:$8 sps:$4 sm:$0xff]  }
 0x1bb   : > { %9240 = vmatprep.subr.bf16.mxu0 %v12331_v22  ;;  %v12427_v22 = vld [vmem:[%s13949_s23 + $0x19a4] ss:$8 sps:$4 sm:$0xff]  }
 0x1bd   : > { %8424 = vmatpush1.bf16.msra.mxu1 %v12326_v23  ;;  %v12422_v23 = vld [vmem:[%s13949_s23 + $0x6a0] ss:$8 sps:$4 sm:$0xff]  }
 0x1be   : > { %9241 = vmatpush1.bf16.msra.mxu0 %v12329_v24  ;;  %8425 = vmatprep.subr.bf16.mxu1 %v12334_v25  ;;  %v12425_v24 = vld [vmem:[%s13949_s23 + $0x19a0] ss:$8 sps:$4 sm:$0xff]   ;;  %v12430_v25 = vld [vmem:[%s13949_s23 + $0x6b4] ss:$8 sps:$4 sm:$0xff]  }
 0x1bf   : > { %9242 = vmatprep.subr.bf16.mxu0 %v12337_v26  ;;  %v12433_v26 = vld [vmem:[%s13949_s23 + $0x19b4] ss:$8 sps:$4 sm:$0xff]  }
 0x1c1   : > { %8426 = vmatpush1.bf16.msra.mxu1 %v12332_v27  ;;  %v12428_v27 = vld [vmem:[%s13949_s23 + $0x6b0] ss:$8 sps:$4 sm:$0xff]  }
 0x1c2   : > { %9243 = vmatpush1.bf16.msra.mxu0 %v12335_v28  ;;  %8427 = vmatprep.subr.bf16.mxu1 %v12340_v29  ;;  %v12431_v28 = vld [vmem:[%s13949_s23 + $0x19b0] ss:$8 sps:$4 sm:$0xff]   ;;  %v12436_v29 = vld [vmem:[%s13949_s23 + $0x6c4] ss:$8 sps:$4 sm:$0xff]  }
 0x1c3   : > { %9244 = vmatprep.subr.bf16.mxu0 %v12343_v30  ;;  %v12439_v30 = vld [vmem:[%s13949_s23 + $0x19c4] ss:$8 sps:$4 sm:$0xff]  }
 0x1c5   : > { %8428 = vmatpush1.bf16.msra.mxu1 %v12338_v31  ;;  %v12434_v31 = vld [vmem:[%s13949_s23 + $0x6c0] ss:$8 sps:$4 sm:$0xff]  }
 0x1c6   : > { %9245 = vmatpush1.bf16.msra.mxu0 %v12341_v32  ;;  %8429 = vmatprep.subr.bf16.mxu1 %v12346_v33  ;;  %v12437_v32 = vld [vmem:[%s13949_s23 + $0x19c0] ss:$8 sps:$4 sm:$0xff]   ;;  %v12442_v33 = vld [vmem:[%s13949_s23 + $0x6d4] ss:$8 sps:$4 sm:$0xff]  }
 0x1c7   : > { %9246 = vmatprep.subr.bf16.mxu0 %v12349_v34  ;;  %v12445_v34 = vld [vmem:[%s13949_s23 + $0x19d4] ss:$8 sps:$4 sm:$0xff]  }
 0x1c9   : > { %8430 = vmatpush1.bf16.msra.mxu1 %v12344_v35  ;;  %v12440_v35 = vld [vmem:[%s13949_s23 + $0x6d0] ss:$8 sps:$4 sm:$0xff]  }
 0x1ca   : > { %9247 = vmatpush1.bf16.msra.mxu0 %v12347_v36  ;;  %8431 = vmatprep.subr.bf16.mxu1 %v12352_v37  ;;  %v12443_v36 = vld [vmem:[%s13949_s23 + $0x19d0] ss:$8 sps:$4 sm:$0xff]   ;;  %v12448_v37 = vld [vmem:[%s13949_s23 + $0x6e4] ss:$8 sps:$4 sm:$0xff]  }
 0x1cb   : > { %9248 = vmatprep.subr.bf16.mxu0 %v12355_v38  ;;  %v12451_v38 = vld [vmem:[%s13949_s23 + $0x19e4] ss:$8 sps:$4 sm:$0xff]  }
 0x1cd   : > { %8432 = vmatpush1.bf16.msra.mxu1 %v12350_v39  ;;  %v12446_v39 = vld [vmem:[%s13949_s23 + $0x6e0] ss:$8 sps:$4 sm:$0xff]  }
 0x1ce   : > { %9249 = vmatpush1.bf16.msra.mxu0 %v12353_v40  ;;  %8444 = vmatprep.subr.bf16.mxu1 %v12361_v41  ;;  %v12449_v40 = vld [vmem:[%s13949_s23 + $0x19e0] ss:$8 sps:$4 sm:$0xff]   ;;  %v12454_v41 = vld [vmem:[%s13949_s23 + $0x6f4] ss:$8 sps:$4 sm:$0xff]  }
 0x1cf   : > { %9261 = vmatprep.subr.bf16.mxu0 %v12367_v44  ;;  %v12455_v44 = vld [vmem:[%s13949_s23 + $0x19f0] ss:$8 sps:$4 sm:$0xff]  }
 0x1d0   : > { %8434 = vmatmul.mubr.bf16.vlgmr.msra.gmra.mrb[0].mxu1 %v12356_v42  ;;  %v12457_v42 = vld [vmem:[%s13949_s23 + $0x19f4] ss:$8 sps:$4 sm:$0xff]  }
 0x1d1   : > { %9251 = vmatmul.mubr.bf16.vlgmr.msra.gmra.mrb[0].mxu0 %v12362_v43  ;;  %8445 = vmatpush1.bf16.msra.mxu1 %v12359_v45  ;;  %v12452_v43 = vld [vmem:[%s13949_s23 + $0x6f0] ss:$8 sps:$4 sm:$0xff]   ;;  %v12463_v45 = vld [vmem:[%s13949_s23 + $0x704] ss:$8 sps:$4 sm:$0xff]  }
 0x1d2   : > { %9262 = vmatpush1.bf16.msra.mxu0 %v12365_v46  ;;  %8446 = vmatprep.subr.bf16.mxu1 %v12370_v47  ;;  %v12458_v46 = vld [vmem:[%s13951_s30 + $0x30] ss:$300 sps:$4 sm:$0xff]   ;;  %v12464_v47 = vld [vmem:[%s13951_s30 + $0xc8] ss:$300 sps:$4 sm:$0xff]  }
 0x1d3   : > { %9263 = vmatprep.subr.bf16.mxu0 %v12373_v48  ;;  %8476 = vmatprep.mubr.bf16.mxu1 %v12460_v49  ;;  %v12469_v48 = vld [vmem:[%s13949_s23 + $0x1a04] ss:$8 sps:$4 sm:$0xff]   ;;  %v12461_v49 = vld [vmem:[%s13949_s23 + $0x700] ss:$8 sps:$4 sm:$0xff]  }
 0x1d4   : > { %9293 = vmatprep.mubr.bf16.mxu0 %v12466_v50  ;;  %v12467_v50 = vld [vmem:[%s13949_s23 + $0x1a00] ss:$8 sps:$4 sm:$0xff]  }
 0x1d5   : > { %8447 = vmatpush1.bf16.msra.mxu1 %v12368_v51  ;;  %v12472_v51 = vld [vmem:[%s13949_s23 + $0x714] ss:$8 sps:$4 sm:$0xff]  }
 0x1d6   : > { %9264 = vmatpush1.bf16.msra.mxu0 %v12371_v52  ;;  %8448 = vmatprep.subr.bf16.mxu1 %v12376_v53  ;;  %v12475_v52 = vld [vmem:[%s13949_s23 + $0x1a14] ss:$8 sps:$4 sm:$0xff]  }
 0x1d7   : > { %9265 = vmatprep.subr.bf16.mxu0 %v12379_v54  ;;  %v12562_v53 = vld [vmem:[%s13951_s30 + $0x3c] ss:$300 sps:$4 sm:$0xff]   ;;  %v12568_v54 = vld [vmem:[%s13951_s30 + $0xd4] ss:$300 sps:$4 sm:$0xff]  }
 0x1d9   : > { %8449 = vmatpush1.bf16.msra.mxu1 %v12374_v55  ;;  %v12470_v55 = vld [vmem:[%s13949_s23 + $0x710] ss:$8 sps:$4 sm:$0xff]  }
 0x1da   : > { %9266 = vmatpush1.bf16.msra.mxu0 %v12377_v56  ;;  %8450 = vmatprep.subr.bf16.mxu1 %v12382_v57  ;;  %v12473_v56 = vld [vmem:[%s13949_s23 + $0x1a10] ss:$8 sps:$4 sm:$0xff]   ;;  %v12478_v57 = vld [vmem:[%s13949_s23 + $0x724] ss:$8 sps:$4 sm:$0xff]  }
 0x1db   : > { %9267 = vmatprep.subr.bf16.mxu0 %v12385_v58  ;;  %v12481_v58 = vld [vmem:[%s13949_s23 + $0x1a24] ss:$8 sps:$4 sm:$0xff]  }
 0x1dd   : > { %8451 = vmatpush1.bf16.msra.mxu1 %v12380_v59  ;;  %v12476_v59 = vld [vmem:[%s13949_s23 + $0x720] ss:$8 sps:$4 sm:$0xff]  }
 0x1de   : > { %9268 = vmatpush1.bf16.msra.mxu0 %v12383_v60  ;;  %8452 = vmatprep.subr.bf16.mxu1 %v12388_v61  ;;  %v12479_v60 = vld [vmem:[%s13949_s23 + $0x1a20] ss:$8 sps:$4 sm:$0xff]   ;;  %v12484_v61 = vld [vmem:[%s13949_s23 + $0x734] ss:$8 sps:$4 sm:$0xff]  }
 0x1df   : > { %9269 = vmatprep.subr.bf16.mxu0 %v12391_v62  ;;  %v12487_v62 = vld [vmem:[%s13949_s23 + $0x1a34] ss:$8 sps:$4 sm:$0xff]  }
 0x1e1   : > { %8453 = vmatpush1.bf16.msra.mxu1 %v12386_v63  ;;  %v12482_v63 = vld [vmem:[%s13949_s23 + $0x730] ss:$8 sps:$4 sm:$0xff]  }
 0x1e2   : > { %9270 = vmatpush1.bf16.msra.mxu0 %v12389_v0  ;;  %8454 = vmatprep.subr.bf16.mxu1 %v12394_v1  ;;  %v12485_v0 = vld [vmem:[%s13949_s23 + $0x1a30] ss:$8 sps:$4 sm:$0xff]   ;;  %v12490_v1 = vld [vmem:[%s13949_s23 + $0x744] ss:$8 sps:$4 sm:$0xff]  }
 0x1e3   : > { %9271 = vmatprep.subr.bf16.mxu0 %v12397_v2  ;;  %v12493_v2 = vld [vmem:[%s13949_s23 + $0x1a44] ss:$8 sps:$4 sm:$0xff]  }
 0x1e5   : > { %8455 = vmatpush1.bf16.msra.mxu1 %v12392_v3  ;;  %v12488_v3 = vld [vmem:[%s13949_s23 + $0x740] ss:$8 sps:$4 sm:$0xff]  }
 0x1e6   : > { %9272 = vmatpush1.bf16.msra.mxu0 %v12395_v4  ;;  %8456 = vmatprep.subr.bf16.mxu1 %v12400_v5  ;;  %v12491_v4 = vld [vmem:[%s13949_s23 + $0x1a40] ss:$8 sps:$4 sm:$0xff]   ;;  %v12496_v5 = vld [vmem:[%s13949_s23 + $0x754] ss:$8 sps:$4 sm:$0xff]  }
 0x1e7   : > { %9273 = vmatprep.subr.bf16.mxu0 %v12403_v6  ;;  %v12499_v6 = vld [vmem:[%s13949_s23 + $0x1a54] ss:$8 sps:$4 sm:$0xff]  }
 0x1e9   : > { %8457 = vmatpush1.bf16.msra.mxu1 %v12398_v7  ;;  %v12494_v7 = vld [vmem:[%s13949_s23 + $0x750] ss:$8 sps:$4 sm:$0xff]  }
 0x1ea   : > { %9274 = vmatpush1.bf16.msra.mxu0 %v12401_v8  ;;  %8458 = vmatprep.subr.bf16.mxu1 %v12406_v9  ;;  %v12497_v8 = vld [vmem:[%s13949_s23 + $0x1a50] ss:$8 sps:$4 sm:$0xff]   ;;  %v12502_v9 = vld [vmem:[%s13949_s23 + $0x764] ss:$8 sps:$4 sm:$0xff]  }
 0x1eb   : > { %9275 = vmatprep.subr.bf16.mxu0 %v12409_v10  ;;  %v12505_v10 = vld [vmem:[%s13949_s23 + $0x1a64] ss:$8 sps:$4 sm:$0xff]  }
 0x1ed   : > { %8459 = vmatpush1.bf16.msra.mxu1 %v12404_v11  ;;  %v12500_v11 = vld [vmem:[%s13949_s23 + $0x760] ss:$8 sps:$4 sm:$0xff]  }
 0x1ee   : > { %9276 = vmatpush1.bf16.msra.mxu0 %v12407_v12  ;;  %8460 = vmatprep.subr.bf16.mxu1 %v12412_v13  ;;  %v12503_v12 = vld [vmem:[%s13949_s23 + $0x1a60] ss:$8 sps:$4 sm:$0xff]   ;;  %v12508_v13 = vld [vmem:[%s13949_s23 + $0x774] ss:$8 sps:$4 sm:$0xff]  }
 0x1ef   : > { %9277 = vmatprep.subr.bf16.mxu0 %v12415_v14  ;;  %v12511_v14 = vld [vmem:[%s13949_s23 + $0x1a74] ss:$8 sps:$4 sm:$0xff]  }
 0x1f1   : > { %8461 = vmatpush1.bf16.msra.mxu1 %v12410_v15  ;;  %v12506_v15 = vld [vmem:[%s13949_s23 + $0x770] ss:$8 sps:$4 sm:$0xff]  }
 0x1f2   : > { %9278 = vmatpush1.bf16.msra.mxu0 %v12413_v16  ;;  %8462 = vmatprep.subr.bf16.mxu1 %v12418_v17  ;;  %v12509_v16 = vld [vmem:[%s13949_s23 + $0x1a70] ss:$8 sps:$4 sm:$0xff]   ;;  %v12514_v17 = vld [vmem:[%s13949_s23 + $0x784] ss:$8 sps:$4 sm:$0xff]  }
 0x1f3   : > { %9279 = vmatprep.subr.bf16.mxu0 %v12421_v18  ;;  %v12517_v18 = vld [vmem:[%s13949_s23 + $0x1a84] ss:$8 sps:$4 sm:$0xff]  }
 0x1f5   : > { %8463 = vmatpush1.bf16.msra.mxu1 %v12416_v19  ;;  %v12512_v19 = vld [vmem:[%s13949_s23 + $0x780] ss:$8 sps:$4 sm:$0xff]  }
 0x1f6   : > { %9280 = vmatpush1.bf16.msra.mxu0 %v12419_v20  ;;  %8464 = vmatprep.subr.bf16.mxu1 %v12424_v21  ;;  %v12515_v20 = vld [vmem:[%s13949_s23 + $0x1a80] ss:$8 sps:$4 sm:$0xff]   ;;  %v12520_v21 = vld [vmem:[%s13949_s23 + $0x794] ss:$8 sps:$4 sm:$0xff]  }
 0x1f7   : > { %9281 = vmatprep.subr.bf16.mxu0 %v12427_v22  ;;  %v12523_v22 = vld [vmem:[%s13949_s23 + $0x1a94] ss:$8 sps:$4 sm:$0xff]  }
 0x1f9   : > { %8465 = vmatpush1.bf16.msra.mxu1 %v12422_v23  ;;  %v12518_v23 = vld [vmem:[%s13949_s23 + $0x790] ss:$8 sps:$4 sm:$0xff]  }
 0x1fa   : > { %9282 = vmatpush1.bf16.msra.mxu0 %v12425_v24  ;;  %8466 = vmatprep.subr.bf16.mxu1 %v12430_v25  ;;  %v12521_v24 = vld [vmem:[%s13949_s23 + $0x1a90] ss:$8 sps:$4 sm:$0xff]   ;;  %v12526_v25 = vld [vmem:[%s13949_s23 + $0x7a4] ss:$8 sps:$4 sm:$0xff]  }
 0x1fb   : > { %9283 = vmatprep.subr.bf16.mxu0 %v12433_v26  ;;  %v12529_v26 = vld [vmem:[%s13949_s23 + $0x1aa4] ss:$8 sps:$4 sm:$0xff]  }
 0x1fd   : > { %8467 = vmatpush1.bf16.msra.mxu1 %v12428_v27  ;;  %v12524_v27 = vld [vmem:[%s13949_s23 + $0x7a0] ss:$8 sps:$4 sm:$0xff]  }
 0x1fe   : > { %9284 = vmatpush1.bf16.msra.mxu0 %v12431_v28  ;;  %8468 = vmatprep.subr.bf16.mxu1 %v12436_v29  ;;  %v12527_v28 = vld [vmem:[%s13949_s23 + $0x1aa0] ss:$8 sps:$4 sm:$0xff]   ;;  %v12532_v29 = vld [vmem:[%s13949_s23 + $0x7b4] ss:$8 sps:$4 sm:$0xff]  }
 0x1ff   : > { %9285 = vmatprep.subr.bf16.mxu0 %v12439_v30  ;;  %v12535_v30 = vld [vmem:[%s13949_s23 + $0x1ab4] ss:$8 sps:$4 sm:$0xff]  }
 0x201   : > { %8469 = vmatpush1.bf16.msra.mxu1 %v12434_v31  ;;  %v12530_v31 = vld [vmem:[%s13949_s23 + $0x7b0] ss:$8 sps:$4 sm:$0xff]  }
 0x202   : > { %9286 = vmatpush1.bf16.msra.mxu0 %v12437_v32  ;;  %8470 = vmatprep.subr.bf16.mxu1 %v12442_v33  ;;  %v12533_v32 = vld [vmem:[%s13949_s23 + $0x1ab0] ss:$8 sps:$4 sm:$0xff]   ;;  %v12538_v33 = vld [vmem:[%s13949_s23 + $0x7c4] ss:$8 sps:$4 sm:$0xff]  }
 0x203   : > { %9287 = vmatprep.subr.bf16.mxu0 %v12445_v34  ;;  %v12541_v34 = vld [vmem:[%s13949_s23 + $0x1ac4] ss:$8 sps:$4 sm:$0xff]  }
 0x205   : > { %8471 = vmatpush1.bf16.msra.mxu1 %v12440_v35  ;;  %v12536_v35 = vld [vmem:[%s13949_s23 + $0x7c0] ss:$8 sps:$4 sm:$0xff]  }
 0x206   : > { %9288 = vmatpush1.bf16.msra.mxu0 %v12443_v36  ;;  %8472 = vmatprep.subr.bf16.mxu1 %v12448_v37  ;;  %v12539_v36 = vld [vmem:[%s13949_s23 + $0x1ac0] ss:$8 sps:$4 sm:$0xff]   ;;  %v12544_v37 = vld [vmem:[%s13949_s23 + $0x7d4] ss:$8 sps:$4 sm:$0xff]  }
 0x207   : > { %9289 = vmatprep.subr.bf16.mxu0 %v12451_v38  ;;  %v12547_v38 = vld [vmem:[%s13949_s23 + $0x1ad4] ss:$8 sps:$4 sm:$0xff]  }
 0x209   : > { %8473 = vmatpush1.bf16.msra.mxu1 %v12446_v39  ;;  %v12542_v39 = vld [vmem:[%s13949_s23 + $0x7d0] ss:$8 sps:$4 sm:$0xff]  }
 0x20a   : > { %9290 = vmatpush1.bf16.msra.mxu0 %v12449_v40  ;;  %8474 = vmatprep.subr.bf16.mxu1 %v12454_v41  ;;  %v12545_v40 = vld [vmem:[%s13949_s23 + $0x1ad0] ss:$8 sps:$4 sm:$0xff]   ;;  %v12550_v41 = vld [vmem:[%s13949_s23 + $0x7e4] ss:$8 sps:$4 sm:$0xff]  }
 0x20b   : > { %9291 = vmatprep.subr.bf16.mxu0 %v12457_v42  ;;  %v12553_v42 = vld [vmem:[%s13949_s23 + $0x1ae4] ss:$8 sps:$4 sm:$0xff]  }
 0x20d   : > { %8475 = vmatpush1.bf16.msra.mxu1 %v12452_v43  ;;  %v12548_v43 = vld [vmem:[%s13949_s23 + $0x7e0] ss:$8 sps:$4 sm:$0xff]  }
 0x20e   : > { %9292 = vmatpush1.bf16.msra.mxu0 %v12455_v44  ;;  %8487 = vmatprep.subr.bf16.mxu1 %v12463_v45  ;;  %v12551_v44 = vld [vmem:[%s13949_s23 + $0x1ae0] ss:$8 sps:$4 sm:$0xff]   ;;  %v12556_v45 = vld [vmem:[%s13949_s23 + $0x7f4] ss:$8 sps:$4 sm:$0xff]  }
 0x20f   : > { %9304 = vmatprep.subr.bf16.mxu0 %v12469_v48  ;;  %v12557_v48 = vld [vmem:[%s13949_s23 + $0x1af0] ss:$8 sps:$4 sm:$0xff]  }
 0x210   : > { %8477 = vmatmul.mubr.bf16.vlgmr.msra.gmra.mrb[0].mxu1 %v12458_v46  ;;  %v12559_v46 = vld [vmem:[%s13949_s23 + $0x1af4] ss:$8 sps:$4 sm:$0xff]  }
 0x211   : > { %9294 = vmatmul.mubr.bf16.vlgmr.msra.gmra.mrb[0].mxu0 %v12464_v47  ;;  %8488 = vmatpush1.bf16.msra.mxu1 %v12461_v49  ;;  %v12554_v47 = vld [vmem:[%s13949_s23 + $0x7f0] ss:$8 sps:$4 sm:$0xff]   ;;  %v12565_v49 = vld [vmem:[%s13949_s23 + $0x804] ss:$8 sps:$4 sm:$0xff]  }
 0x212   : > { %9305 = vmatpush1.bf16.msra.mxu0 %v12467_v50  ;;  %8489 = vmatprep.subr.bf16.mxu1 %v12472_v51  ;;  %v12560_v50 = vld [vmem:[%s13951_s30 + $0x38] ss:$300 sps:$4 sm:$0xff]   ;;  %v12566_v51 = vld [vmem:[%s13951_s30 + $0xd0] ss:$300 sps:$4 sm:$0xff]  }
 0x213   : > { %9306 = vmatprep.subr.bf16.mxu0 %v12475_v52  ;;  %8519 = vmatprep.mubr.bf16.mxu1 %v12562_v53  ;;  %v12571_v52 = vld [vmem:[%s13949_s23 + $0x1b04] ss:$8 sps:$4 sm:$0xff]   ;;  %v12563_v53 = vld [vmem:[%s13949_s23 + $0x800] ss:$8 sps:$4 sm:$0xff]  }
 0x214   : > { %9336 = vmatprep.mubr.bf16.mxu0 %v12568_v54  ;;  %v12569_v54 = vld [vmem:[%s13949_s23 + $0x1b00] ss:$8 sps:$4 sm:$0xff]  }
 0x215   : > { %8490 = vmatpush1.bf16.msra.mxu1 %v12470_v55  ;;  %v12574_v55 = vld [vmem:[%s13949_s23 + $0x814] ss:$8 sps:$4 sm:$0xff]  }
 0x216   : > { %9307 = vmatpush1.bf16.msra.mxu0 %v12473_v56  ;;  %8491 = vmatprep.subr.bf16.mxu1 %v12478_v57  ;;  %v12577_v56 = vld [vmem:[%s13949_s23 + $0x1b14] ss:$8 sps:$4 sm:$0xff]  }
 0x217   : > { %9308 = vmatprep.subr.bf16.mxu0 %v12481_v58  ;;  %v12664_v57 = vld [vmem:[%s13951_s30 + $0x44] ss:$300 sps:$4 sm:$0xff]   ;;  %v12670_v58 = vld [vmem:[%s13951_s30 + $0xdc] ss:$300 sps:$4 sm:$0xff]  }
 0x219   : > { %8492 = vmatpush1.bf16.msra.mxu1 %v12476_v59  ;;  %v12572_v59 = vld [vmem:[%s13949_s23 + $0x810] ss:$8 sps:$4 sm:$0xff]  }
 0x21a   : > { %9309 = vmatpush1.bf16.msra.mxu0 %v12479_v60  ;;  %8493 = vmatprep.subr.bf16.mxu1 %v12484_v61  ;;  %v12575_v60 = vld [vmem:[%s13949_s23 + $0x1b10] ss:$8 sps:$4 sm:$0xff]   ;;  %v12580_v61 = vld [vmem:[%s13949_s23 + $0x824] ss:$8 sps:$4 sm:$0xff]  }
 0x21b   : > { %9310 = vmatprep.subr.bf16.mxu0 %v12487_v62  ;;  %v12583_v62 = vld [vmem:[%s13949_s23 + $0x1b24] ss:$8 sps:$4 sm:$0xff]  }
 0x21d   : > { %8494 = vmatpush1.bf16.msra.mxu1 %v12482_v63  ;;  %v12578_v63 = vld [vmem:[%s13949_s23 + $0x820] ss:$8 sps:$4 sm:$0xff]  }
 0x21e   : > { %9311 = vmatpush1.bf16.msra.mxu0 %v12485_v0  ;;  %8495 = vmatprep.subr.bf16.mxu1 %v12490_v1  ;;  %v12581_v0 = vld [vmem:[%s13949_s23 + $0x1b20] ss:$8 sps:$4 sm:$0xff]   ;;  %v12586_v1 = vld [vmem:[%s13949_s23 + $0x834] ss:$8 sps:$4 sm:$0xff]  }
 0x21f   : > { %9312 = vmatprep.subr.bf16.mxu0 %v12493_v2  ;;  %v12589_v2 = vld [vmem:[%s13949_s23 + $0x1b34] ss:$8 sps:$4 sm:$0xff]  }
 0x221   : > { %8496 = vmatpush1.bf16.msra.mxu1 %v12488_v3  ;;  %v12584_v3 = vld [vmem:[%s13949_s23 + $0x830] ss:$8 sps:$4 sm:$0xff]  }
 0x222   : > { %9313 = vmatpush1.bf16.msra.mxu0 %v12491_v4  ;;  %8497 = vmatprep.subr.bf16.mxu1 %v12496_v5  ;;  %v12587_v4 = vld [vmem:[%s13949_s23 + $0x1b30] ss:$8 sps:$4 sm:$0xff]   ;;  %v12592_v5 = vld [vmem:[%s13949_s23 + $0x844] ss:$8 sps:$4 sm:$0xff]  }
 0x223   : > { %9314 = vmatprep.subr.bf16.mxu0 %v12499_v6  ;;  %v12595_v6 = vld [vmem:[%s13949_s23 + $0x1b44] ss:$8 sps:$4 sm:$0xff]  }
 0x225   : > { %8498 = vmatpush1.bf16.msra.mxu1 %v12494_v7  ;;  %v12590_v7 = vld [vmem:[%s13949_s23 + $0x840] ss:$8 sps:$4 sm:$0xff]  }
 0x226   : > { %9315 = vmatpush1.bf16.msra.mxu0 %v12497_v8  ;;  %8499 = vmatprep.subr.bf16.mxu1 %v12502_v9  ;;  %v12593_v8 = vld [vmem:[%s13949_s23 + $0x1b40] ss:$8 sps:$4 sm:$0xff]   ;;  %v12598_v9 = vld [vmem:[%s13949_s23 + $0x854] ss:$8 sps:$4 sm:$0xff]  }
 0x227   : > { %9316 = vmatprep.subr.bf16.mxu0 %v12505_v10  ;;  %v12601_v10 = vld [vmem:[%s13949_s23 + $0x1b54] ss:$8 sps:$4 sm:$0xff]  }
 0x229   : > { %8500 = vmatpush1.bf16.msra.mxu1 %v12500_v11  ;;  %v12596_v11 = vld [vmem:[%s13949_s23 + $0x850] ss:$8 sps:$4 sm:$0xff]  }
 0x22a   : > { %9317 = vmatpush1.bf16.msra.mxu0 %v12503_v12  ;;  %8501 = vmatprep.subr.bf16.mxu1 %v12508_v13  ;;  %v12599_v12 = vld [vmem:[%s13949_s23 + $0x1b50] ss:$8 sps:$4 sm:$0xff]   ;;  %v12604_v13 = vld [vmem:[%s13949_s23 + $0x864] ss:$8 sps:$4 sm:$0xff]  }
 0x22b   : > { %9318 = vmatprep.subr.bf16.mxu0 %v12511_v14  ;;  %v12607_v14 = vld [vmem:[%s13949_s23 + $0x1b64] ss:$8 sps:$4 sm:$0xff]  }
 0x22d   : > { %8502 = vmatpush1.bf16.msra.mxu1 %v12506_v15  ;;  %v12602_v15 = vld [vmem:[%s13949_s23 + $0x860] ss:$8 sps:$4 sm:$0xff]  }
 0x22e   : > { %9319 = vmatpush1.bf16.msra.mxu0 %v12509_v16  ;;  %8503 = vmatprep.subr.bf16.mxu1 %v12514_v17  ;;  %v12605_v16 = vld [vmem:[%s13949_s23 + $0x1b60] ss:$8 sps:$4 sm:$0xff]   ;;  %v12610_v17 = vld [vmem:[%s13949_s23 + $0x874] ss:$8 sps:$4 sm:$0xff]  }
 0x22f   : > { %9320 = vmatprep.subr.bf16.mxu0 %v12517_v18  ;;  %v12613_v18 = vld [vmem:[%s13949_s23 + $0x1b74] ss:$8 sps:$4 sm:$0xff]  }
 0x231   : > { %8504 = vmatpush1.bf16.msra.mxu1 %v12512_v19  ;;  %v12608_v19 = vld [vmem:[%s13949_s23 + $0x870] ss:$8 sps:$4 sm:$0xff]  }
 0x232   : > { %9321 = vmatpush1.bf16.msra.mxu0 %v12515_v20  ;;  %8505 = vmatprep.subr.bf16.mxu1 %v12520_v21  ;;  %v12611_v20 = vld [vmem:[%s13949_s23 + $0x1b70] ss:$8 sps:$4 sm:$0xff]   ;;  %v12616_v21 = vld [vmem:[%s13949_s23 + $0x884] ss:$8 sps:$4 sm:$0xff]  }
 0x233   : > { %9322 = vmatprep.subr.bf16.mxu0 %v12523_v22  ;;  %v12619_v22 = vld [vmem:[%s13949_s23 + $0x1b84] ss:$8 sps:$4 sm:$0xff]  }
 0x235   : > { %8506 = vmatpush1.bf16.msra.mxu1 %v12518_v23  ;;  %v12614_v23 = vld [vmem:[%s13949_s23 + $0x880] ss:$8 sps:$4 sm:$0xff]  }
 0x236   : > { %9323 = vmatpush1.bf16.msra.mxu0 %v12521_v24  ;;  %8507 = vmatprep.subr.bf16.mxu1 %v12526_v25  ;;  %v12617_v24 = vld [vmem:[%s13949_s23 + $0x1b80] ss:$8 sps:$4 sm:$0xff]   ;;  %v12622_v25 = vld [vmem:[%s13949_s23 + $0x894] ss:$8 sps:$4 sm:$0xff]  }
 0x237   : > { %9324 = vmatprep.subr.bf16.mxu0 %v12529_v26  ;;  %v12625_v26 = vld [vmem:[%s13949_s23 + $0x1b94] ss:$8 sps:$4 sm:$0xff]  }
 0x239   : > { %8508 = vmatpush1.bf16.msra.mxu1 %v12524_v27  ;;  %v12620_v27 = vld [vmem:[%s13949_s23 + $0x890] ss:$8 sps:$4 sm:$0xff]  }
 0x23a   : > { %9325 = vmatpush1.bf16.msra.mxu0 %v12527_v28  ;;  %8509 = vmatprep.subr.bf16.mxu1 %v12532_v29  ;;  %v12623_v28 = vld [vmem:[%s13949_s23 + $0x1b90] ss:$8 sps:$4 sm:$0xff]   ;;  %v12628_v29 = vld [vmem:[%s13949_s23 + $0x8a4] ss:$8 sps:$4 sm:$0xff]  }
 0x23b   : > { %9326 = vmatprep.subr.bf16.mxu0 %v12535_v30  ;;  %v12631_v30 = vld [vmem:[%s13949_s23 + $0x1ba4] ss:$8 sps:$4 sm:$0xff]  }
 0x23d   : > { %8510 = vmatpush1.bf16.msra.mxu1 %v12530_v31  ;;  %v12626_v31 = vld [vmem:[%s13949_s23 + $0x8a0] ss:$8 sps:$4 sm:$0xff]  }
 0x23e   : > { %9327 = vmatpush1.bf16.msra.mxu0 %v12533_v32  ;;  %8511 = vmatprep.subr.bf16.mxu1 %v12538_v33  ;;  %v12629_v32 = vld [vmem:[%s13949_s23 + $0x1ba0] ss:$8 sps:$4 sm:$0xff]   ;;  %v12634_v33 = vld [vmem:[%s13949_s23 + $0x8b4] ss:$8 sps:$4 sm:$0xff]  }
 0x23f   : > { %9328 = vmatprep.subr.bf16.mxu0 %v12541_v34  ;;  %v12637_v34 = vld [vmem:[%s13949_s23 + $0x1bb4] ss:$8 sps:$4 sm:$0xff]  }
 0x241   : > { %8512 = vmatpush1.bf16.msra.mxu1 %v12536_v35  ;;  %v12632_v35 = vld [vmem:[%s13949_s23 + $0x8b0] ss:$8 sps:$4 sm:$0xff]  }
 0x242   : > { %9329 = vmatpush1.bf16.msra.mxu0 %v12539_v36  ;;  %8513 = vmatprep.subr.bf16.mxu1 %v12544_v37  ;;  %v12635_v36 = vld [vmem:[%s13949_s23 + $0x1bb0] ss:$8 sps:$4 sm:$0xff]   ;;  %v12640_v37 = vld [vmem:[%s13949_s23 + $0x8c4] ss:$8 sps:$4 sm:$0xff]  }
 0x243   : > { %9330 = vmatprep.subr.bf16.mxu0 %v12547_v38  ;;  %v12643_v38 = vld [vmem:[%s13949_s23 + $0x1bc4] ss:$8 sps:$4 sm:$0xff]  }
 0x245   : > { %8514 = vmatpush1.bf16.msra.mxu1 %v12542_v39  ;;  %v12638_v39 = vld [vmem:[%s13949_s23 + $0x8c0] ss:$8 sps:$4 sm:$0xff]  }
 0x246   : > { %9331 = vmatpush1.bf16.msra.mxu0 %v12545_v40  ;;  %8515 = vmatprep.subr.bf16.mxu1 %v12550_v41  ;;  %v12641_v40 = vld [vmem:[%s13949_s23 + $0x1bc0] ss:$8 sps:$4 sm:$0xff]   ;;  %v12646_v41 = vld [vmem:[%s13949_s23 + $0x8d4] ss:$8 sps:$4 sm:$0xff]  }
 0x247   : > { %9332 = vmatprep.subr.bf16.mxu0 %v12553_v42  ;;  %v12649_v42 = vld [vmem:[%s13949_s23 + $0x1bd4] ss:$8 sps:$4 sm:$0xff]  }
 0x249   : > { %8516 = vmatpush1.bf16.msra.mxu1 %v12548_v43  ;;  %v12644_v43 = vld [vmem:[%s13949_s23 + $0x8d0] ss:$8 sps:$4 sm:$0xff]  }
 0x24a   : > { %9333 = vmatpush1.bf16.msra.mxu0 %v12551_v44  ;;  %8517 = vmatprep.subr.bf16.mxu1 %v12556_v45  ;;  %v12647_v44 = vld [vmem:[%s13949_s23 + $0x1bd0] ss:$8 sps:$4 sm:$0xff]   ;;  %v12652_v45 = vld [vmem:[%s13949_s23 + $0x8e4] ss:$8 sps:$4 sm:$0xff]  }
 0x24b   : > { %9334 = vmatprep.subr.bf16.mxu0 %v12559_v46  ;;  %v12655_v46 = vld [vmem:[%s13949_s23 + $0x1be4] ss:$8 sps:$4 sm:$0xff]  }
 0x24d   : > { %8518 = vmatpush1.bf16.msra.mxu1 %v12554_v47  ;;  %v12650_v47 = vld [vmem:[%s13949_s23 + $0x8e0] ss:$8 sps:$4 sm:$0xff]  }
 0x24e   : > { %9335 = vmatpush1.bf16.msra.mxu0 %v12557_v48  ;;  %8530 = vmatprep.subr.bf16.mxu1 %v12565_v49  ;;  %v12653_v48 = vld [vmem:[%s13949_s23 + $0x1be0] ss:$8 sps:$4 sm:$0xff]   ;;  %v12658_v49 = vld [vmem:[%s13949_s23 + $0x8f4] ss:$8 sps:$4 sm:$0xff]  }
 0x24f   : > { %9347 = vmatprep.subr.bf16.mxu0 %v12571_v52  ;;  %v12659_v52 = vld [vmem:[%s13949_s23 + $0x1bf0] ss:$8 sps:$4 sm:$0xff]  }
 0x250   : > { %8520 = vmatmul.mubr.bf16.vlgmr.msra.gmra.mrb[0].mxu1 %v12560_v50  ;;  %v12661_v50 = vld [vmem:[%s13949_s23 + $0x1bf4] ss:$8 sps:$4 sm:$0xff]  }
 0x251   : > { %9337 = vmatmul.mubr.bf16.vlgmr.msra.gmra.mrb[0].mxu0 %v12566_v51  ;;  %8531 = vmatpush1.bf16.msra.mxu1 %v12563_v53  ;;  %v12656_v51 = vld [vmem:[%s13949_s23 + $0x8f0] ss:$8 sps:$4 sm:$0xff]   ;;  %v12667_v53 = vld [vmem:[%s13949_s23 + $0x904] ss:$8 sps:$4 sm:$0xff]  }
 0x252   : > { %9348 = vmatpush1.bf16.msra.mxu0 %v12569_v54  ;;  %8532 = vmatprep.subr.bf16.mxu1 %v12574_v55  ;;  %v12662_v54 = vld [vmem:[%s13951_s30 + $0x40] ss:$300 sps:$4 sm:$0xff]   ;;  %v12668_v55 = vld [vmem:[%s13951_s30 + $0xd8] ss:$300 sps:$4 sm:$0xff]  }
 0x253   : > { %9349 = vmatprep.subr.bf16.mxu0 %v12577_v56  ;;  %8562 = vmatprep.mubr.bf16.mxu1 %v12664_v57  ;;  %v12673_v56 = vld [vmem:[%s13949_s23 + $0x1c04] ss:$8 sps:$4 sm:$0xff]   ;;  %v12665_v57 = vld [vmem:[%s13949_s23 + $0x900] ss:$8 sps:$4 sm:$0xff]  }
 0x254   : > { %9379 = vmatprep.mubr.bf16.mxu0 %v12670_v58  ;;  %v12671_v58 = vld [vmem:[%s13949_s23 + $0x1c00] ss:$8 sps:$4 sm:$0xff]  }
 0x255   : > { %8533 = vmatpush1.bf16.msra.mxu1 %v12572_v59  ;;  %v12676_v59 = vld [vmem:[%s13949_s23 + $0x914] ss:$8 sps:$4 sm:$0xff]  }
 0x256   : > { %9350 = vmatpush1.bf16.msra.mxu0 %v12575_v60  ;;  %8534 = vmatprep.subr.bf16.mxu1 %v12580_v61  ;;  %v12679_v60 = vld [vmem:[%s13949_s23 + $0x1c14] ss:$8 sps:$4 sm:$0xff]   ;;  %v12766_v61 = vld [vmem:[%s13951_s30 + $0x4c] ss:$300 sps:$4 sm:$0xff]  }
 0x257   : > { %9351 = vmatprep.subr.bf16.mxu0 %v12583_v62  ;;  %v12772_v62 = vld [vmem:[%s13951_s30 + $0xe4] ss:$300 sps:$4 sm:$0xff]  }
 0x259   : > { %8535 = vmatpush1.bf16.msra.mxu1 %v12578_v63  ;;  %v12674_v63 = vld [vmem:[%s13949_s23 + $0x910] ss:$8 sps:$4 sm:$0xff]  }
 0x25a   : > { %9352 = vmatpush1.bf16.msra.mxu0 %v12581_v0  ;;  %8536 = vmatprep.subr.bf16.mxu1 %v12586_v1  ;;  %v12677_v0 = vld [vmem:[%s13949_s23 + $0x1c10] ss:$8 sps:$4 sm:$0xff]   ;;  %v12682_v1 = vld [vmem:[%s13949_s23 + $0x924] ss:$8 sps:$4 sm:$0xff]  }
 0x25b   : > { %9353 = vmatprep.subr.bf16.mxu0 %v12589_v2  ;;  %v12685_v2 = vld [vmem:[%s13949_s23 + $0x1c24] ss:$8 sps:$4 sm:$0xff]  }
 0x25d   : > { %8537 = vmatpush1.bf16.msra.mxu1 %v12584_v3  ;;  %v12680_v3 = vld [vmem:[%s13949_s23 + $0x920] ss:$8 sps:$4 sm:$0xff]  }
 0x25e   : > { %9354 = vmatpush1.bf16.msra.mxu0 %v12587_v4  ;;  %8538 = vmatprep.subr.bf16.mxu1 %v12592_v5  ;;  %v12683_v4 = vld [vmem:[%s13949_s23 + $0x1c20] ss:$8 sps:$4 sm:$0xff]   ;;  %v12688_v5 = vld [vmem:[%s13949_s23 + $0x934] ss:$8 sps:$4 sm:$0xff]  }
 0x25f   : > { %9355 = vmatprep.subr.bf16.mxu0 %v12595_v6  ;;  %v12691_v6 = vld [vmem:[%s13949_s23 + $0x1c34] ss:$8 sps:$4 sm:$0xff]  }
 0x261   : > { %8539 = vmatpush1.bf16.msra.mxu1 %v12590_v7  ;;  %v12686_v7 = vld [vmem:[%s13949_s23 + $0x930] ss:$8 sps:$4 sm:$0xff]  }
 0x262   : > { %9356 = vmatpush1.bf16.msra.mxu0 %v12593_v8  ;;  %8540 = vmatprep.subr.bf16.mxu1 %v12598_v9  ;;  %v12689_v8 = vld [vmem:[%s13949_s23 + $0x1c30] ss:$8 sps:$4 sm:$0xff]   ;;  %v12694_v9 = vld [vmem:[%s13949_s23 + $0x944] ss:$8 sps:$4 sm:$0xff]  }
 0x263   : > { %9357 = vmatprep.subr.bf16.mxu0 %v12601_v10  ;;  %v12697_v10 = vld [vmem:[%s13949_s23 + $0x1c44] ss:$8 sps:$4 sm:$0xff]  }
 0x265   : > { %8541 = vmatpush1.bf16.msra.mxu1 %v12596_v11  ;;  %v12692_v11 = vld [vmem:[%s13949_s23 + $0x940] ss:$8 sps:$4 sm:$0xff]  }
 0x266   : > { %9358 = vmatpush1.bf16.msra.mxu0 %v12599_v12  ;;  %8542 = vmatprep.subr.bf16.mxu1 %v12604_v13  ;;  %v12695_v12 = vld [vmem:[%s13949_s23 + $0x1c40] ss:$8 sps:$4 sm:$0xff]   ;;  %v12700_v13 = vld [vmem:[%s13949_s23 + $0x954] ss:$8 sps:$4 sm:$0xff]  }
 0x267   : > { %9359 = vmatprep.subr.bf16.mxu0 %v12607_v14  ;;  %v12703_v14 = vld [vmem:[%s13949_s23 + $0x1c54] ss:$8 sps:$4 sm:$0xff]  }
 0x269   : > { %8543 = vmatpush1.bf16.msra.mxu1 %v12602_v15  ;;  %v12698_v15 = vld [vmem:[%s13949_s23 + $0x950] ss:$8 sps:$4 sm:$0xff]  }
 0x26a   : > { %9360 = vmatpush1.bf16.msra.mxu0 %v12605_v16  ;;  %8544 = vmatprep.subr.bf16.mxu1 %v12610_v17  ;;  %v12701_v16 = vld [vmem:[%s13949_s23 + $0x1c50] ss:$8 sps:$4 sm:$0xff]   ;;  %v12706_v17 = vld [vmem:[%s13949_s23 + $0x964] ss:$8 sps:$4 sm:$0xff]  }
 0x26b   : > { %9361 = vmatprep.subr.bf16.mxu0 %v12613_v18  ;;  %v12709_v18 = vld [vmem:[%s13949_s23 + $0x1c64] ss:$8 sps:$4 sm:$0xff]  }
 0x26d   : > { %8545 = vmatpush1.bf16.msra.mxu1 %v12608_v19  ;;  %v12704_v19 = vld [vmem:[%s13949_s23 + $0x960] ss:$8 sps:$4 sm:$0xff]  }
 0x26e   : > { %9362 = vmatpush1.bf16.msra.mxu0 %v12611_v20  ;;  %8546 = vmatprep.subr.bf16.mxu1 %v12616_v21  ;;  %v12707_v20 = vld [vmem:[%s13949_s23 + $0x1c60] ss:$8 sps:$4 sm:$0xff]   ;;  %v12712_v21 = vld [vmem:[%s13949_s23 + $0x974] ss:$8 sps:$4 sm:$0xff]  }
 0x26f   : > { %9363 = vmatprep.subr.bf16.mxu0 %v12619_v22  ;;  %v12715_v22 = vld [vmem:[%s13949_s23 + $0x1c74] ss:$8 sps:$4 sm:$0xff]  }
 0x271   : > { %8547 = vmatpush1.bf16.msra.mxu1 %v12614_v23  ;;  %v12710_v23 = vld [vmem:[%s13949_s23 + $0x970] ss:$8 sps:$4 sm:$0xff]  }
 0x272   : > { %9364 = vmatpush1.bf16.msra.mxu0 %v12617_v24  ;;  %8548 = vmatprep.subr.bf16.mxu1 %v12622_v25  ;;  %v12713_v24 = vld [vmem:[%s13949_s23 + $0x1c70] ss:$8 sps:$4 sm:$0xff]   ;;  %v12718_v25 = vld [vmem:[%s13949_s23 + $0x984] ss:$8 sps:$4 sm:$0xff]  }
 0x273   : > { %9365 = vmatprep.subr.bf16.mxu0 %v12625_v26  ;;  %v12721_v26 = vld [vmem:[%s13949_s23 + $0x1c84] ss:$8 sps:$4 sm:$0xff]  }
 0x275   : > { %8549 = vmatpush1.bf16.msra.mxu1 %v12620_v27  ;;  %v12716_v27 = vld [vmem:[%s13949_s23 + $0x980] ss:$8 sps:$4 sm:$0xff]  }
 0x276   : > { %9366 = vmatpush1.bf16.msra.mxu0 %v12623_v28  ;;  %8550 = vmatprep.subr.bf16.mxu1 %v12628_v29  ;;  %v12719_v28 = vld [vmem:[%s13949_s23 + $0x1c80] ss:$8 sps:$4 sm:$0xff]   ;;  %v12724_v29 = vld [vmem:[%s13949_s23 + $0x994] ss:$8 sps:$4 sm:$0xff]  }
 0x277   : > { %9367 = vmatprep.subr.bf16.mxu0 %v12631_v30  ;;  %v12727_v30 = vld [vmem:[%s13949_s23 + $0x1c94] ss:$8 sps:$4 sm:$0xff]  }
 0x279   : > { %8551 = vmatpush1.bf16.msra.mxu1 %v12626_v31  ;;  %v12722_v31 = vld [vmem:[%s13949_s23 + $0x990] ss:$8 sps:$4 sm:$0xff]  }
 0x27a   : > { %9368 = vmatpush1.bf16.msra.mxu0 %v12629_v32  ;;  %8552 = vmatprep.subr.bf16.mxu1 %v12634_v33  ;;  %v12725_v32 = vld [vmem:[%s13949_s23 + $0x1c90] ss:$8 sps:$4 sm:$0xff]   ;;  %v12730_v33 = vld [vmem:[%s13949_s23 + $0x9a4] ss:$8 sps:$4 sm:$0xff]  }
 0x27b   : > { %9369 = vmatprep.subr.bf16.mxu0 %v12637_v34  ;;  %v12733_v34 = vld [vmem:[%s13949_s23 + $0x1ca4] ss:$8 sps:$4 sm:$0xff]  }
 0x27d   : > { %8553 = vmatpush1.bf16.msra.mxu1 %v12632_v35  ;;  %v12728_v35 = vld [vmem:[%s13949_s23 + $0x9a0] ss:$8 sps:$4 sm:$0xff]  }
 0x27e   : > { %9370 = vmatpush1.bf16.msra.mxu0 %v12635_v36  ;;  %8554 = vmatprep.subr.bf16.mxu1 %v12640_v37  ;;  %v12731_v36 = vld [vmem:[%s13949_s23 + $0x1ca0] ss:$8 sps:$4 sm:$0xff]   ;;  %v12736_v37 = vld [vmem:[%s13949_s23 + $0x9b4] ss:$8 sps:$4 sm:$0xff]  }
 0x27f   : > { %9371 = vmatprep.subr.bf16.mxu0 %v12643_v38  ;;  %v12739_v38 = vld [vmem:[%s13949_s23 + $0x1cb4] ss:$8 sps:$4 sm:$0xff]  }
 0x281   : > { %8555 = vmatpush1.bf16.msra.mxu1 %v12638_v39  ;;  %v12734_v39 = vld [vmem:[%s13949_s23 + $0x9b0] ss:$8 sps:$4 sm:$0xff]  }
 0x282   : > { %9372 = vmatpush1.bf16.msra.mxu0 %v12641_v40  ;;  %8556 = vmatprep.subr.bf16.mxu1 %v12646_v41  ;;  %v12737_v40 = vld [vmem:[%s13949_s23 + $0x1cb0] ss:$8 sps:$4 sm:$0xff]   ;;  %v12742_v41 = vld [vmem:[%s13949_s23 + $0x9c4] ss:$8 sps:$4 sm:$0xff]  }
 0x283   : > { %9373 = vmatprep.subr.bf16.mxu0 %v12649_v42  ;;  %v12745_v42 = vld [vmem:[%s13949_s23 + $0x1cc4] ss:$8 sps:$4 sm:$0xff]  }
 0x285   : > { %8557 = vmatpush1.bf16.msra.mxu1 %v12644_v43  ;;  %v12740_v43 = vld [vmem:[%s13949_s23 + $0x9c0] ss:$8 sps:$4 sm:$0xff]  }
 0x286   : > { %9374 = vmatpush1.bf16.msra.mxu0 %v12647_v44  ;;  %8558 = vmatprep.subr.bf16.mxu1 %v12652_v45  ;;  %v12743_v44 = vld [vmem:[%s13949_s23 + $0x1cc0] ss:$8 sps:$4 sm:$0xff]   ;;  %v12748_v45 = vld [vmem:[%s13949_s23 + $0x9d4] ss:$8 sps:$4 sm:$0xff]  }
 0x287   : > { %9375 = vmatprep.subr.bf16.mxu0 %v12655_v46  ;;  %v12751_v46 = vld [vmem:[%s13949_s23 + $0x1cd4] ss:$8 sps:$4 sm:$0xff]  }
 0x289   : > { %8559 = vmatpush1.bf16.msra.mxu1 %v12650_v47  ;;  %v12746_v47 = vld [vmem:[%s13949_s23 + $0x9d0] ss:$8 sps:$4 sm:$0xff]  }
 0x28a   : > { %9376 = vmatpush1.bf16.msra.mxu0 %v12653_v48  ;;  %8560 = vmatprep.subr.bf16.mxu1 %v12658_v49  ;;  %v12749_v48 = vld [vmem:[%s13949_s23 + $0x1cd0] ss:$8 sps:$4 sm:$0xff]   ;;  %v12754_v49 = vld [vmem:[%s13949_s23 + $0x9e4] ss:$8 sps:$4 sm:$0xff]  }
 0x28b   : > { %9377 = vmatprep.subr.bf16.mxu0 %v12661_v50  ;;  %v12757_v50 = vld [vmem:[%s13949_s23 + $0x1ce4] ss:$8 sps:$4 sm:$0xff]  }
 0x28d   : > { %8561 = vmatpush1.bf16.msra.mxu1 %v12656_v51  ;;  %v12752_v51 = vld [vmem:[%s13949_s23 + $0x9e0] ss:$8 sps:$4 sm:$0xff]  }
 0x28e   : > { %9378 = vmatpush1.bf16.msra.mxu0 %v12659_v52  ;;  %8573 = vmatprep.subr.bf16.mxu1 %v12667_v53  ;;  %v12755_v52 = vld [vmem:[%s13949_s23 + $0x1ce0] ss:$8 sps:$4 sm:$0xff]   ;;  %v12760_v53 = vld [vmem:[%s13949_s23 + $0x9f4] ss:$8 sps:$4 sm:$0xff]  }
 0x28f   : > { %9390 = vmatprep.subr.bf16.mxu0 %v12673_v56  ;;  %v12761_v56 = vld [vmem:[%s13949_s23 + $0x1cf0] ss:$8 sps:$4 sm:$0xff]  }
 0x290   : > { %8563 = vmatmul.mubr.bf16.vlgmr.msra.gmra.mrb[0].mxu1 %v12662_v54  ;;  %v12763_v54 = vld [vmem:[%s13949_s23 + $0x1cf4] ss:$8 sps:$4 sm:$0xff]  }
 0x291   : > { %9380 = vmatmul.mubr.bf16.vlgmr.msra.gmra.mrb[0].mxu0 %v12668_v55  ;;  %8574 = vmatpush1.bf16.msra.mxu1 %v12665_v57  ;;  %v12758_v55 = vld [vmem:[%s13949_s23 + $0x9f0] ss:$8 sps:$4 sm:$0xff]   ;;  %v12769_v57 = vld [vmem:[%s13949_s23 + $0xa04] ss:$8 sps:$4 sm:$0xff]  }
 0x292   : > { %9391 = vmatpush1.bf16.msra.mxu0 %v12671_v58  ;;  %8575 = vmatprep.subr.bf16.mxu1 %v12676_v59  ;;  %v12764_v58 = vld [vmem:[%s13951_s30 + $0x48] ss:$300 sps:$4 sm:$0xff]   ;;  %v12770_v59 = vld [vmem:[%s13951_s30 + $0xe0] ss:$300 sps:$4 sm:$0xff]  }
 0x293   : > { %9392 = vmatprep.subr.bf16.mxu0 %v12679_v60  ;;  %8605 = vmatprep.mubr.bf16.mxu1 %v12766_v61  ;;  %v12775_v60 = vld [vmem:[%s13949_s23 + $0x1d04] ss:$8 sps:$4 sm:$0xff]   ;;  %v12767_v61 = vld [vmem:[%s13949_s23 + $0xa00] ss:$8 sps:$4 sm:$0xff]  }
 0x294   : > { %9422 = vmatprep.mubr.bf16.mxu0 %v12772_v62  ;;  %v12773_v62 = vld [vmem:[%s13949_s23 + $0x1d00] ss:$8 sps:$4 sm:$0xff]  }
 0x295   : > { %8576 = vmatpush1.bf16.msra.mxu1 %v12674_v63  ;;  %v12778_v63 = vld [vmem:[%s13949_s23 + $0xa14] ss:$8 sps:$4 sm:$0xff]  }
 0x296   : > { %9393 = vmatpush1.bf16.msra.mxu0 %v12677_v0  ;;  %8577 = vmatprep.subr.bf16.mxu1 %v12682_v1  ;;  %v12781_v0 = vld [vmem:[%s13949_s23 + $0x1d14] ss:$8 sps:$4 sm:$0xff]  }
 0x297   : > { %9394 = vmatprep.subr.bf16.mxu0 %v12685_v2  ;;  %v12868_v1 = vld [vmem:[%s13951_s30 + $0x54] ss:$300 sps:$4 sm:$0xff]   ;;  %v12874_v2 = vld [vmem:[%s13951_s30 + $0xec] ss:$300 sps:$4 sm:$0xff]  }
 0x299   : > { %8578 = vmatpush1.bf16.msra.mxu1 %v12680_v3  ;;  %v12776_v3 = vld [vmem:[%s13949_s23 + $0xa10] ss:$8 sps:$4 sm:$0xff]  }
 0x29a   : > { %9395 = vmatpush1.bf16.msra.mxu0 %v12683_v4  ;;  %8579 = vmatprep.subr.bf16.mxu1 %v12688_v5  ;;  %v12779_v4 = vld [vmem:[%s13949_s23 + $0x1d10] ss:$8 sps:$4 sm:$0xff]   ;;  %v12784_v5 = vld [vmem:[%s13949_s23 + $0xa24] ss:$8 sps:$4 sm:$0xff]  }
 0x29b   : > { %9396 = vmatprep.subr.bf16.mxu0 %v12691_v6  ;;  %v12787_v6 = vld [vmem:[%s13949_s23 + $0x1d24] ss:$8 sps:$4 sm:$0xff]  }
 0x29d   : > { %8580 = vmatpush1.bf16.msra.mxu1 %v12686_v7  ;;  %v12782_v7 = vld [vmem:[%s13949_s23 + $0xa20] ss:$8 sps:$4 sm:$0xff]  }
 0x29e   : > { %9397 = vmatpush1.bf16.msra.mxu0 %v12689_v8  ;;  %8581 = vmatprep.subr.bf16.mxu1 %v12694_v9  ;;  %v12785_v8 = vld [vmem:[%s13949_s23 + $0x1d20] ss:$8 sps:$4 sm:$0xff]   ;;  %v12790_v9 = vld [vmem:[%s13949_s23 + $0xa34] ss:$8 sps:$4 sm:$0xff]  }
 0x29f   : > { %9398 = vmatprep.subr.bf16.mxu0 %v12697_v10  ;;  %v12793_v10 = vld [vmem:[%s13949_s23 + $0x1d34] ss:$8 sps:$4 sm:$0xff]  }
 0x2a1   : > { %8582 = vmatpush1.bf16.msra.mxu1 %v12692_v11  ;;  %v12788_v11 = vld [vmem:[%s13949_s23 + $0xa30] ss:$8 sps:$4 sm:$0xff]  }
 0x2a2   : > { %9399 = vmatpush1.bf16.msra.mxu0 %v12695_v12  ;;  %8583 = vmatprep.subr.bf16.mxu1 %v12700_v13  ;;  %v12791_v12 = vld [vmem:[%s13949_s23 + $0x1d30] ss:$8 sps:$4 sm:$0xff]   ;;  %v12796_v13 = vld [vmem:[%s13949_s23 + $0xa44] ss:$8 sps:$4 sm:$0xff]  }
 0x2a3   : > { %9400 = vmatprep.subr.bf16.mxu0 %v12703_v14  ;;  %v12799_v14 = vld [vmem:[%s13949_s23 + $0x1d44] ss:$8 sps:$4 sm:$0xff]  }
 0x2a5   : > { %8584 = vmatpush1.bf16.msra.mxu1 %v12698_v15  ;;  %v12794_v15 = vld [vmem:[%s13949_s23 + $0xa40] ss:$8 sps:$4 sm:$0xff]  }
 0x2a6   : > { %9401 = vmatpush1.bf16.msra.mxu0 %v12701_v16  ;;  %8585 = vmatprep.subr.bf16.mxu1 %v12706_v17  ;;  %v12797_v16 = vld [vmem:[%s13949_s23 + $0x1d40] ss:$8 sps:$4 sm:$0xff]   ;;  %v12802_v17 = vld [vmem:[%s13949_s23 + $0xa54] ss:$8 sps:$4 sm:$0xff]  }
 0x2a7   : > { %9402 = vmatprep.subr.bf16.mxu0 %v12709_v18  ;;  %v12805_v18 = vld [vmem:[%s13949_s23 + $0x1d54] ss:$8 sps:$4 sm:$0xff]  }
 0x2a9   : > { %8586 = vmatpush1.bf16.msra.mxu1 %v12704_v19  ;;  %v12800_v19 = vld [vmem:[%s13949_s23 + $0xa50] ss:$8 sps:$4 sm:$0xff]  }
 0x2aa   : > { %9403 = vmatpush1.bf16.msra.mxu0 %v12707_v20  ;;  %8587 = vmatprep.subr.bf16.mxu1 %v12712_v21  ;;  %v12803_v20 = vld [vmem:[%s13949_s23 + $0x1d50] ss:$8 sps:$4 sm:$0xff]   ;;  %v12808_v21 = vld [vmem:[%s13949_s23 + $0xa64] ss:$8 sps:$4 sm:$0xff]  }
 0x2ab   : > { %9404 = vmatprep.subr.bf16.mxu0 %v12715_v22  ;;  %v12811_v22 = vld [vmem:[%s13949_s23 + $0x1d64] ss:$8 sps:$4 sm:$0xff]  }
 0x2ad   : > { %8588 = vmatpush1.bf16.msra.mxu1 %v12710_v23  ;;  %v12806_v23 = vld [vmem:[%s13949_s23 + $0xa60] ss:$8 sps:$4 sm:$0xff]  }
 0x2ae   : > { %9405 = vmatpush1.bf16.msra.mxu0 %v12713_v24  ;;  %8589 = vmatprep.subr.bf16.mxu1 %v12718_v25  ;;  %v12809_v24 = vld [vmem:[%s13949_s23 + $0x1d60] ss:$8 sps:$4 sm:$0xff]   ;;  %v12814_v25 = vld [vmem:[%s13949_s23 + $0xa74] ss:$8 sps:$4 sm:$0xff]  }
 0x2af   : > { %9406 = vmatprep.subr.bf16.mxu0 %v12721_v26  ;;  %v12817_v26 = vld [vmem:[%s13949_s23 + $0x1d74] ss:$8 sps:$4 sm:$0xff]  }
 0x2b1   : > { %8590 = vmatpush1.bf16.msra.mxu1 %v12716_v27  ;;  %v12812_v27 = vld [vmem:[%s13949_s23 + $0xa70] ss:$8 sps:$4 sm:$0xff]  }
 0x2b2   : > { %9407 = vmatpush1.bf16.msra.mxu0 %v12719_v28  ;;  %8591 = vmatprep.subr.bf16.mxu1 %v12724_v29  ;;  %v12815_v28 = vld [vmem:[%s13949_s23 + $0x1d70] ss:$8 sps:$4 sm:$0xff]   ;;  %v12820_v29 = vld [vmem:[%s13949_s23 + $0xa84] ss:$8 sps:$4 sm:$0xff]  }
 0x2b3   : > { %9408 = vmatprep.subr.bf16.mxu0 %v12727_v30  ;;  %v12823_v30 = vld [vmem:[%s13949_s23 + $0x1d84] ss:$8 sps:$4 sm:$0xff]  }
 0x2b5   : > { %8592 = vmatpush1.bf16.msra.mxu1 %v12722_v31  ;;  %v12818_v31 = vld [vmem:[%s13949_s23 + $0xa80] ss:$8 sps:$4 sm:$0xff]  }
 0x2b6   : > { %9409 = vmatpush1.bf16.msra.mxu0 %v12725_v32  ;;  %8593 = vmatprep.subr.bf16.mxu1 %v12730_v33  ;;  %v12821_v32 = vld [vmem:[%s13949_s23 + $0x1d80] ss:$8 sps:$4 sm:$0xff]   ;;  %v12826_v33 = vld [vmem:[%s13949_s23 + $0xa94] ss:$8 sps:$4 sm:$0xff]  }
 0x2b7   : > { %9410 = vmatprep.subr.bf16.mxu0 %v12733_v34  ;;  %v12829_v34 = vld [vmem:[%s13949_s23 + $0x1d94] ss:$8 sps:$4 sm:$0xff]  }
 0x2b9   : > { %8594 = vmatpush1.bf16.msra.mxu1 %v12728_v35  ;;  %v12824_v35 = vld [vmem:[%s13949_s23 + $0xa90] ss:$8 sps:$4 sm:$0xff]  }
 0x2ba   : > { %9411 = vmatpush1.bf16.msra.mxu0 %v12731_v36  ;;  %8595 = vmatprep.subr.bf16.mxu1 %v12736_v37  ;;  %v12827_v36 = vld [vmem:[%s13949_s23 + $0x1d90] ss:$8 sps:$4 sm:$0xff]   ;;  %v12832_v37 = vld [vmem:[%s13949_s23 + $0xaa4] ss:$8 sps:$4 sm:$0xff]  }
 0x2bb   : > { %9412 = vmatprep.subr.bf16.mxu0 %v12739_v38  ;;  %v12835_v38 = vld [vmem:[%s13949_s23 + $0x1da4] ss:$8 sps:$4 sm:$0xff]  }
 0x2bd   : > { %8596 = vmatpush1.bf16.msra.mxu1 %v12734_v39  ;;  %v12830_v39 = vld [vmem:[%s13949_s23 + $0xaa0] ss:$8 sps:$4 sm:$0xff]  }
 0x2be   : > { %9413 = vmatpush1.bf16.msra.mxu0 %v12737_v40  ;;  %8597 = vmatprep.subr.bf16.mxu1 %v12742_v41  ;;  %v12833_v40 = vld [vmem:[%s13949_s23 + $0x1da0] ss:$8 sps:$4 sm:$0xff]   ;;  %v12838_v41 = vld [vmem:[%s13949_s23 + $0xab4] ss:$8 sps:$4 sm:$0xff]  }
 0x2bf   : > { %9414 = vmatprep.subr.bf16.mxu0 %v12745_v42  ;;  %v12841_v42 = vld [vmem:[%s13949_s23 + $0x1db4] ss:$8 sps:$4 sm:$0xff]  }
 0x2c1   : > { %8598 = vmatpush1.bf16.msra.mxu1 %v12740_v43  ;;  %v12836_v43 = vld [vmem:[%s13949_s23 + $0xab0] ss:$8 sps:$4 sm:$0xff]  }
 0x2c2   : > { %9415 = vmatpush1.bf16.msra.mxu0 %v12743_v44  ;;  %8599 = vmatprep.subr.bf16.mxu1 %v12748_v45  ;;  %v12839_v44 = vld [vmem:[%s13949_s23 + $0x1db0] ss:$8 sps:$4 sm:$0xff]   ;;  %v12844_v45 = vld [vmem:[%s13949_s23 + $0xac4] ss:$8 sps:$4 sm:$0xff]  }
 0x2c3   : > { %9416 = vmatprep.subr.bf16.mxu0 %v12751_v46  ;;  %v12847_v46 = vld [vmem:[%s13949_s23 + $0x1dc4] ss:$8 sps:$4 sm:$0xff]  }
 0x2c5   : > { %8600 = vmatpush1.bf16.msra.mxu1 %v12746_v47  ;;  %v12842_v47 = vld [vmem:[%s13949_s23 + $0xac0] ss:$8 sps:$4 sm:$0xff]  }
 0x2c6   : > { %9417 = vmatpush1.bf16.msra.mxu0 %v12749_v48  ;;  %8601 = vmatprep.subr.bf16.mxu1 %v12754_v49  ;;  %v12845_v48 = vld [vmem:[%s13949_s23 + $0x1dc0] ss:$8 sps:$4 sm:$0xff]   ;;  %v12850_v49 = vld [vmem:[%s13949_s23 + $0xad4] ss:$8 sps:$4 sm:$0xff]  }
 0x2c7   : > { %9418 = vmatprep.subr.bf16.mxu0 %v12757_v50  ;;  %v12853_v50 = vld [vmem:[%s13949_s23 + $0x1dd4] ss:$8 sps:$4 sm:$0xff]  }
 0x2c9   : > { %8602 = vmatpush1.bf16.msra.mxu1 %v12752_v51  ;;  %v12848_v51 = vld [vmem:[%s13949_s23 + $0xad0] ss:$8 sps:$4 sm:$0xff]  }
 0x2ca   : > { %9419 = vmatpush1.bf16.msra.mxu0 %v12755_v52  ;;  %8603 = vmatprep.subr.bf16.mxu1 %v12760_v53  ;;  %v12851_v52 = vld [vmem:[%s13949_s23 + $0x1dd0] ss:$8 sps:$4 sm:$0xff]   ;;  %v12856_v53 = vld [vmem:[%s13949_s23 + $0xae4] ss:$8 sps:$4 sm:$0xff]  }
 0x2cb   : > { %9420 = vmatprep.subr.bf16.mxu0 %v12763_v54  ;;  %v12859_v54 = vld [vmem:[%s13949_s23 + $0x1de4] ss:$8 sps:$4 sm:$0xff]  }
 0x2cd   : > { %8604 = vmatpush1.bf16.msra.mxu1 %v12758_v55  ;;  %v12854_v55 = vld [vmem:[%s13949_s23 + $0xae0] ss:$8 sps:$4 sm:$0xff]  }
 0x2ce   : > { %9421 = vmatpush1.bf16.msra.mxu0 %v12761_v56  ;;  %8616 = vmatprep.subr.bf16.mxu1 %v12769_v57  ;;  %v12857_v56 = vld [vmem:[%s13949_s23 + $0x1de0] ss:$8 sps:$4 sm:$0xff]   ;;  %v12862_v57 = vld [vmem:[%s13949_s23 + $0xaf4] ss:$8 sps:$4 sm:$0xff]  }
 0x2cf   : > { %9433 = vmatprep.subr.bf16.mxu0 %v12775_v60  ;;  %v12863_v60 = vld [vmem:[%s13949_s23 + $0x1df0] ss:$8 sps:$4 sm:$0xff]  }
 0x2d0   : > { %8606 = vmatmul.mubr.bf16.vlgmr.msra.gmra.mrb[0].mxu1 %v12764_v58  ;;  %v12865_v58 = vld [vmem:[%s13949_s23 + $0x1df4] ss:$8 sps:$4 sm:$0xff]  }
 0x2d1   : > { %9423 = vmatmul.mubr.bf16.vlgmr.msra.gmra.mrb[0].mxu0 %v12770_v59  ;;  %8617 = vmatpush1.bf16.msra.mxu1 %v12767_v61  ;;  %v12860_v59 = vld [vmem:[%s13949_s23 + $0xaf0] ss:$8 sps:$4 sm:$0xff]   ;;  %v12871_v61 = vld [vmem:[%s13949_s23 + $0xb04] ss:$8 sps:$4 sm:$0xff]  }
 0x2d2   : > { %9434 = vmatpush1.bf16.msra.mxu0 %v12773_v62  ;;  %8618 = vmatprep.subr.bf16.mxu1 %v12778_v63  ;;  %v12866_v62 = vld [vmem:[%s13951_s30 + $0x50] ss:$300 sps:$4 sm:$0xff]   ;;  %v12872_v63 = vld [vmem:[%s13951_s30 + $0xe8] ss:$300 sps:$4 sm:$0xff]  }
 0x2d3   : > { %9435 = vmatprep.subr.bf16.mxu0 %v12781_v0  ;;  %8648 = vmatprep.mubr.bf16.mxu1 %v12868_v1  ;;  %v12877_v0 = vld [vmem:[%s13949_s23 + $0x1e04] ss:$8 sps:$4 sm:$0xff]   ;;  %v12869_v1 = vld [vmem:[%s13949_s23 + $0xb00] ss:$8 sps:$4 sm:$0xff]  }
 0x2d4   : > { %9465 = vmatprep.mubr.bf16.mxu0 %v12874_v2  ;;  %v12875_v2 = vld [vmem:[%s13949_s23 + $0x1e00] ss:$8 sps:$4 sm:$0xff]  }
 0x2d5   : > { %8619 = vmatpush1.bf16.msra.mxu1 %v12776_v3  ;;  %v12880_v3 = vld [vmem:[%s13949_s23 + $0xb14] ss:$8 sps:$4 sm:$0xff]  }
 0x2d6   : > { %9436 = vmatpush1.bf16.msra.mxu0 %v12779_v4  ;;  %8620 = vmatprep.subr.bf16.mxu1 %v12784_v5  ;;  %v12883_v4 = vld [vmem:[%s13949_s23 + $0x1e14] ss:$8 sps:$4 sm:$0xff]  }
 0x2d7   : > { %9437 = vmatprep.subr.bf16.mxu0 %v12787_v6  ;;  %v12970_v5 = vld [vmem:[%s13951_s30 + $0x5c] ss:$300 sps:$4 sm:$0xff]   ;;  %v12976_v6 = vld [vmem:[%s13951_s30 + $0xf4] ss:$300 sps:$4 sm:$0xff]  }
 0x2d9   : > { %8621 = vmatpush1.bf16.msra.mxu1 %v12782_v7  ;;  %v12878_v7 = vld [vmem:[%s13949_s23 + $0xb10] ss:$8 sps:$4 sm:$0xff]  }
 0x2da   : > { %9438 = vmatpush1.bf16.msra.mxu0 %v12785_v8  ;;  %8622 = vmatprep.subr.bf16.mxu1 %v12790_v9  ;;  %v12881_v8 = vld [vmem:[%s13949_s23 + $0x1e10] ss:$8 sps:$4 sm:$0xff]   ;;  %v12886_v9 = vld [vmem:[%s13949_s23 + $0xb24] ss:$8 sps:$4 sm:$0xff]  }
 0x2db   : > { %9439 = vmatprep.subr.bf16.mxu0 %v12793_v10  ;;  %v12889_v10 = vld [vmem:[%s13949_s23 + $0x1e24] ss:$8 sps:$4 sm:$0xff]  }
 0x2dd   : > { %8623 = vmatpush1.bf16.msra.mxu1 %v12788_v11  ;;  %v12884_v11 = vld [vmem:[%s13949_s23 + $0xb20] ss:$8 sps:$4 sm:$0xff]  }
 0x2de   : > { %9440 = vmatpush1.bf16.msra.mxu0 %v12791_v12  ;;  %8624 = vmatprep.subr.bf16.mxu1 %v12796_v13  ;;  %v12887_v12 = vld [vmem:[%s13949_s23 + $0x1e20] ss:$8 sps:$4 sm:$0xff]   ;;  %v12892_v13 = vld [vmem:[%s13949_s23 + $0xb34] ss:$8 sps:$4 sm:$0xff]  }
 0x2df   : > { %9441 = vmatprep.subr.bf16.mxu0 %v12799_v14  ;;  %v12895_v14 = vld [vmem:[%s13949_s23 + $0x1e34] ss:$8 sps:$4 sm:$0xff]  }
 0x2e1   : > { %8625 = vmatpush1.bf16.msra.mxu1 %v12794_v15  ;;  %v12890_v15 = vld [vmem:[%s13949_s23 + $0xb30] ss:$8 sps:$4 sm:$0xff]  }
 0x2e2   : > { %9442 = vmatpush1.bf16.msra.mxu0 %v12797_v16  ;;  %8626 = vmatprep.subr.bf16.mxu1 %v12802_v17  ;;  %v12893_v16 = vld [vmem:[%s13949_s23 + $0x1e30] ss:$8 sps:$4 sm:$0xff]   ;;  %v12898_v17 = vld [vmem:[%s13949_s23 + $0xb44] ss:$8 sps:$4 sm:$0xff]  }
 0x2e3   : > { %9443 = vmatprep.subr.bf16.mxu0 %v12805_v18  ;;  %v12901_v18 = vld [vmem:[%s13949_s23 + $0x1e44] ss:$8 sps:$4 sm:$0xff]  }
 0x2e5   : > { %8627 = vmatpush1.bf16.msra.mxu1 %v12800_v19  ;;  %v12896_v19 = vld [vmem:[%s13949_s23 + $0xb40] ss:$8 sps:$4 sm:$0xff]  }
 0x2e6   : > { %9444 = vmatpush1.bf16.msra.mxu0 %v12803_v20  ;;  %8628 = vmatprep.subr.bf16.mxu1 %v12808_v21  ;;  %v12899_v20 = vld [vmem:[%s13949_s23 + $0x1e40] ss:$8 sps:$4 sm:$0xff]   ;;  %v12904_v21 = vld [vmem:[%s13949_s23 + $0xb54] ss:$8 sps:$4 sm:$0xff]  }
 0x2e7   : > { %9445 = vmatprep.subr.bf16.mxu0 %v12811_v22  ;;  %v12907_v22 = vld [vmem:[%s13949_s23 + $0x1e54] ss:$8 sps:$4 sm:$0xff]  }
 0x2e9   : > { %8629 = vmatpush1.bf16.msra.mxu1 %v12806_v23  ;;  %v12902_v23 = vld [vmem:[%s13949_s23 + $0xb50] ss:$8 sps:$4 sm:$0xff]  }
 0x2ea   : > { %9446 = vmatpush1.bf16.msra.mxu0 %v12809_v24  ;;  %8630 = vmatprep.subr.bf16.mxu1 %v12814_v25  ;;  %v12905_v24 = vld [vmem:[%s13949_s23 + $0x1e50] ss:$8 sps:$4 sm:$0xff]   ;;  %v12910_v25 = vld [vmem:[%s13949_s23 + $0xb64] ss:$8 sps:$4 sm:$0xff]  }
 0x2eb   : > { %9447 = vmatprep.subr.bf16.mxu0 %v12817_v26  ;;  %v12913_v26 = vld [vmem:[%s13949_s23 + $0x1e64] ss:$8 sps:$4 sm:$0xff]  }
 0x2ed   : > { %8631 = vmatpush1.bf16.msra.mxu1 %v12812_v27  ;;  %v12908_v27 = vld [vmem:[%s13949_s23 + $0xb60] ss:$8 sps:$4 sm:$0xff]  }
 0x2ee   : > { %9448 = vmatpush1.bf16.msra.mxu0 %v12815_v28  ;;  %8632 = vmatprep.subr.bf16.mxu1 %v12820_v29  ;;  %v12911_v28 = vld [vmem:[%s13949_s23 + $0x1e60] ss:$8 sps:$4 sm:$0xff]   ;;  %v12916_v29 = vld [vmem:[%s13949_s23 + $0xb74] ss:$8 sps:$4 sm:$0xff]  }
 0x2ef   : > { %9449 = vmatprep.subr.bf16.mxu0 %v12823_v30  ;;  %v12919_v30 = vld [vmem:[%s13949_s23 + $0x1e74] ss:$8 sps:$4 sm:$0xff]  }
 0x2f1   : > { %8633 = vmatpush1.bf16.msra.mxu1 %v12818_v31  ;;  %v12914_v31 = vld [vmem:[%s13949_s23 + $0xb70] ss:$8 sps:$4 sm:$0xff]  }
 0x2f2   : > { %9450 = vmatpush1.bf16.msra.mxu0 %v12821_v32  ;;  %8634 = vmatprep.subr.bf16.mxu1 %v12826_v33  ;;  %v12917_v32 = vld [vmem:[%s13949_s23 + $0x1e70] ss:$8 sps:$4 sm:$0xff]   ;;  %v12922_v33 = vld [vmem:[%s13949_s23 + $0xb84] ss:$8 sps:$4 sm:$0xff]  }
 0x2f3   : > { %9451 = vmatprep.subr.bf16.mxu0 %v12829_v34  ;;  %v12925_v34 = vld [vmem:[%s13949_s23 + $0x1e84] ss:$8 sps:$4 sm:$0xff]  }
 0x2f5   : > { %8635 = vmatpush1.bf16.msra.mxu1 %v12824_v35  ;;  %v12920_v35 = vld [vmem:[%s13949_s23 + $0xb80] ss:$8 sps:$4 sm:$0xff]  }
 0x2f6   : > { %9452 = vmatpush1.bf16.msra.mxu0 %v12827_v36  ;;  %8636 = vmatprep.subr.bf16.mxu1 %v12832_v37  ;;  %v12923_v36 = vld [vmem:[%s13949_s23 + $0x1e80] ss:$8 sps:$4 sm:$0xff]   ;;  %v12928_v37 = vld [vmem:[%s13949_s23 + $0xb94] ss:$8 sps:$4 sm:$0xff]  }
 0x2f7   : > { %9453 = vmatprep.subr.bf16.mxu0 %v12835_v38  ;;  %v12931_v38 = vld [vmem:[%s13949_s23 + $0x1e94] ss:$8 sps:$4 sm:$0xff]  }
 0x2f9   : > { %8637 = vmatpush1.bf16.msra.mxu1 %v12830_v39  ;;  %v12926_v39 = vld [vmem:[%s13949_s23 + $0xb90] ss:$8 sps:$4 sm:$0xff]  }
 0x2fa   : > { %9454 = vmatpush1.bf16.msra.mxu0 %v12833_v40  ;;  %8638 = vmatprep.subr.bf16.mxu1 %v12838_v41  ;;  %v12929_v40 = vld [vmem:[%s13949_s23 + $0x1e90] ss:$8 sps:$4 sm:$0xff]   ;;  %v12934_v41 = vld [vmem:[%s13949_s23 + $0xba4] ss:$8 sps:$4 sm:$0xff]  }
 0x2fb   : > { %9455 = vmatprep.subr.bf16.mxu0 %v12841_v42  ;;  %v12937_v42 = vld [vmem:[%s13949_s23 + $0x1ea4] ss:$8 sps:$4 sm:$0xff]  }
 0x2fd   : > { %8639 = vmatpush1.bf16.msra.mxu1 %v12836_v43  ;;  %v12932_v43 = vld [vmem:[%s13949_s23 + $0xba0] ss:$8 sps:$4 sm:$0xff]  }
 0x2fe   : > { %9456 = vmatpush1.bf16.msra.mxu0 %v12839_v44  ;;  %8640 = vmatprep.subr.bf16.mxu1 %v12844_v45  ;;  %v12935_v44 = vld [vmem:[%s13949_s23 + $0x1ea0] ss:$8 sps:$4 sm:$0xff]   ;;  %v12940_v45 = vld [vmem:[%s13949_s23 + $0xbb4] ss:$8 sps:$4 sm:$0xff]  }
 0x2ff   : > { %9457 = vmatprep.subr.bf16.mxu0 %v12847_v46  ;;  %v12943_v46 = vld [vmem:[%s13949_s23 + $0x1eb4] ss:$8 sps:$4 sm:$0xff]  }
 0x301   : > { %8641 = vmatpush1.bf16.msra.mxu1 %v12842_v47  ;;  %v12938_v47 = vld [vmem:[%s13949_s23 + $0xbb0] ss:$8 sps:$4 sm:$0xff]  }
 0x302   : > { %9458 = vmatpush1.bf16.msra.mxu0 %v12845_v48  ;;  %8642 = vmatprep.subr.bf16.mxu1 %v12850_v49  ;;  %v12941_v48 = vld [vmem:[%s13949_s23 + $0x1eb0] ss:$8 sps:$4 sm:$0xff]   ;;  %v12946_v49 = vld [vmem:[%s13949_s23 + $0xbc4] ss:$8 sps:$4 sm:$0xff]  }
 0x303   : > { %9459 = vmatprep.subr.bf16.mxu0 %v12853_v50  ;;  %v12949_v50 = vld [vmem:[%s13949_s23 + $0x1ec4] ss:$8 sps:$4 sm:$0xff]  }
 0x305   : > { %8643 = vmatpush1.bf16.msra.mxu1 %v12848_v51  ;;  %v12944_v51 = vld [vmem:[%s13949_s23 + $0xbc0] ss:$8 sps:$4 sm:$0xff]  }
 0x306   : > { %9460 = vmatpush1.bf16.msra.mxu0 %v12851_v52  ;;  %8644 = vmatprep.subr.bf16.mxu1 %v12856_v53  ;;  %v12947_v52 = vld [vmem:[%s13949_s23 + $0x1ec0] ss:$8 sps:$4 sm:$0xff]   ;;  %v12952_v53 = vld [vmem:[%s13949_s23 + $0xbd4] ss:$8 sps:$4 sm:$0xff]  }
 0x307   : > { %9461 = vmatprep.subr.bf16.mxu0 %v12859_v54  ;;  %v12955_v54 = vld [vmem:[%s13949_s23 + $0x1ed4] ss:$8 sps:$4 sm:$0xff]  }
 0x309   : > { %8645 = vmatpush1.bf16.msra.mxu1 %v12854_v55  ;;  %v12950_v55 = vld [vmem:[%s13949_s23 + $0xbd0] ss:$8 sps:$4 sm:$0xff]  }
 0x30a   : > { %9462 = vmatpush1.bf16.msra.mxu0 %v12857_v56  ;;  %8646 = vmatprep.subr.bf16.mxu1 %v12862_v57  ;;  %v12953_v56 = vld [vmem:[%s13949_s23 + $0x1ed0] ss:$8 sps:$4 sm:$0xff]   ;;  %v12958_v57 = vld [vmem:[%s13949_s23 + $0xbe4] ss:$8 sps:$4 sm:$0xff]  }
 0x30b   : > { %9463 = vmatprep.subr.bf16.mxu0 %v12865_v58  ;;  %v12961_v58 = vld [vmem:[%s13949_s23 + $0x1ee4] ss:$8 sps:$4 sm:$0xff]  }
 0x30d   : > { %8647 = vmatpush1.bf16.msra.mxu1 %v12860_v59  ;;  %v12956_v59 = vld [vmem:[%s13949_s23 + $0xbe0] ss:$8 sps:$4 sm:$0xff]  }
 0x30e   : > { %9464 = vmatpush1.bf16.msra.mxu0 %v12863_v60  ;;  %8659 = vmatprep.subr.bf16.mxu1 %v12871_v61  ;;  %v12959_v60 = vld [vmem:[%s13949_s23 + $0x1ee0] ss:$8 sps:$4 sm:$0xff]   ;;  %v12964_v61 = vld [vmem:[%s13949_s23 + $0xbf4] ss:$8 sps:$4 sm:$0xff]  }
 0x30f   : > { %9476 = vmatprep.subr.bf16.mxu0 %v12877_v0  ;;  %v12965_v0 = vld [vmem:[%s13949_s23 + $0x1ef0] ss:$8 sps:$4 sm:$0xff]  }
 0x310   : > { %8649 = vmatmul.mubr.bf16.vlgmr.msra.gmra.mrb[0].mxu1 %v12866_v62  ;;  %v12967_v62 = vld [vmem:[%s13949_s23 + $0x1ef4] ss:$8 sps:$4 sm:$0xff]  }
 0x311   : > { %9466 = vmatmul.mubr.bf16.vlgmr.msra.gmra.mrb[0].mxu0 %v12872_v63  ;;  %8660 = vmatpush1.bf16.msra.mxu1 %v12869_v1  ;;  %v12962_v63 = vld [vmem:[%s13949_s23 + $0xbf0] ss:$8 sps:$4 sm:$0xff]   ;;  %v12973_v1 = vld [vmem:[%s13949_s23 + $0xc04] ss:$8 sps:$4 sm:$0xff]  }
 0x312   : > { %9477 = vmatpush1.bf16.msra.mxu0 %v12875_v2  ;;  %8661 = vmatprep.subr.bf16.mxu1 %v12880_v3  ;;  %v12979_v2 = vld [vmem:[%s13949_s23 + $0x1f04] ss:$8 sps:$4 sm:$0xff]  }
 0x313   : > { %9478 = vmatprep.subr.bf16.mxu0 %v12883_v4  ;;  %8691 = vmatprep.mubr.bf16.mxu1 %v12970_v5  ;;  %v12968_v3 = vld [vmem:[%s13951_s30 + $0x58] ss:$300 sps:$4 sm:$0xff]   ;;  %v12974_v4 = vld [vmem:[%s13951_s30 + $0xf0] ss:$300 sps:$4 sm:$0xff]  }
 0x314   : > { %9508 = vmatprep.mubr.bf16.mxu0 %v12976_v6  ;;  %v12971_v5 = vld [vmem:[%s13949_s23 + $0xc00] ss:$8 sps:$4 sm:$0xff]  }
 0x315   : > { %8662 = vmatpush1.bf16.msra.mxu1 %v12878_v7  ;;  %v12977_v6 = vld [vmem:[%s13949_s23 + $0x1f00] ss:$8 sps:$4 sm:$0xff]   ;;  %v12982_v7 = vld [vmem:[%s13949_s23 + $0xc14] ss:$8 sps:$4 sm:$0xff]  }
 0x316   : > { %9479 = vmatpush1.bf16.msra.mxu0 %v12881_v8  ;;  %8663 = vmatprep.subr.bf16.mxu1 %v12886_v9  ;;  %v12985_v8 = vld [vmem:[%s13949_s23 + $0x1f14] ss:$8 sps:$4 sm:$0xff]  }
 0x317   : > { %9480 = vmatprep.subr.bf16.mxu0 %v12889_v10  ;;  %v13072_v9 = vld [vmem:[%s13951_s30 + $0x64] ss:$300 sps:$4 sm:$0xff]   ;;  %v13078_v10 = vld [vmem:[%s13951_s30 + $0xfc] ss:$300 sps:$4 sm:$0xff]  }
 0x319   : > { %8664 = vmatpush1.bf16.msra.mxu1 %v12884_v11  ;;  %v12980_v11 = vld [vmem:[%s13949_s23 + $0xc10] ss:$8 sps:$4 sm:$0xff]  }
 0x31a   : > { %9481 = vmatpush1.bf16.msra.mxu0 %v12887_v12  ;;  %8665 = vmatprep.subr.bf16.mxu1 %v12892_v13  ;;  %v12983_v12 = vld [vmem:[%s13949_s23 + $0x1f10] ss:$8 sps:$4 sm:$0xff]   ;;  %v12988_v13 = vld [vmem:[%s13949_s23 + $0xc24] ss:$8 sps:$4 sm:$0xff]  }
 0x31b   : > { %9482 = vmatprep.subr.bf16.mxu0 %v12895_v14  ;;  %v12991_v14 = vld [vmem:[%s13949_s23 + $0x1f24] ss:$8 sps:$4 sm:$0xff]  }
 0x31d   : > { %8666 = vmatpush1.bf16.msra.mxu1 %v12890_v15  ;;  %v12986_v15 = vld [vmem:[%s13949_s23 + $0xc20] ss:$8 sps:$4 sm:$0xff]  }
 0x31e   : > { %9483 = vmatpush1.bf16.msra.mxu0 %v12893_v16  ;;  %8667 = vmatprep.subr.bf16.mxu1 %v12898_v17  ;;  %v12989_v16 = vld [vmem:[%s13949_s23 + $0x1f20] ss:$8 sps:$4 sm:$0xff]   ;;  %v12994_v17 = vld [vmem:[%s13949_s23 + $0xc34] ss:$8 sps:$4 sm:$0xff]  }
 0x31f   : > { %9484 = vmatprep.subr.bf16.mxu0 %v12901_v18  ;;  %v12997_v18 = vld [vmem:[%s13949_s23 + $0x1f34] ss:$8 sps:$4 sm:$0xff]  }
 0x321   : > { %8668 = vmatpush1.bf16.msra.mxu1 %v12896_v19  ;;  %v12992_v19 = vld [vmem:[%s13949_s23 + $0xc30] ss:$8 sps:$4 sm:$0xff]  }
 0x322   : > { %9485 = vmatpush1.bf16.msra.mxu0 %v12899_v20  ;;  %8669 = vmatprep.subr.bf16.mxu1 %v12904_v21  ;;  %v12995_v20 = vld [vmem:[%s13949_s23 + $0x1f30] ss:$8 sps:$4 sm:$0xff]   ;;  %v13000_v21 = vld [vmem:[%s13949_s23 + $0xc44] ss:$8 sps:$4 sm:$0xff]  }
 0x323   : > { %9486 = vmatprep.subr.bf16.mxu0 %v12907_v22  ;;  %v13003_v22 = vld [vmem:[%s13949_s23 + $0x1f44] ss:$8 sps:$4 sm:$0xff]  }
 0x325   : > { %8670 = vmatpush1.bf16.msra.mxu1 %v12902_v23  ;;  %v12998_v23 = vld [vmem:[%s13949_s23 + $0xc40] ss:$8 sps:$4 sm:$0xff]  }
 0x326   : > { %9487 = vmatpush1.bf16.msra.mxu0 %v12905_v24  ;;  %8671 = vmatprep.subr.bf16.mxu1 %v12910_v25  ;;  %v13001_v24 = vld [vmem:[%s13949_s23 + $0x1f40] ss:$8 sps:$4 sm:$0xff]   ;;  %v13006_v25 = vld [vmem:[%s13949_s23 + $0xc54] ss:$8 sps:$4 sm:$0xff]  }
 0x327   : > { %9488 = vmatprep.subr.bf16.mxu0 %v12913_v26  ;;  %v13009_v26 = vld [vmem:[%s13949_s23 + $0x1f54] ss:$8 sps:$4 sm:$0xff]  }
 0x329   : > { %8672 = vmatpush1.bf16.msra.mxu1 %v12908_v27  ;;  %v13004_v27 = vld [vmem:[%s13949_s23 + $0xc50] ss:$8 sps:$4 sm:$0xff]  }
 0x32a   : > { %9489 = vmatpush1.bf16.msra.mxu0 %v12911_v28  ;;  %8673 = vmatprep.subr.bf16.mxu1 %v12916_v29  ;;  %v13007_v28 = vld [vmem:[%s13949_s23 + $0x1f50] ss:$8 sps:$4 sm:$0xff]   ;;  %v13012_v29 = vld [vmem:[%s13949_s23 + $0xc64] ss:$8 sps:$4 sm:$0xff]  }
 0x32b   : > { %9490 = vmatprep.subr.bf16.mxu0 %v12919_v30  ;;  %v13015_v30 = vld [vmem:[%s13949_s23 + $0x1f64] ss:$8 sps:$4 sm:$0xff]  }
 0x32d   : > { %8674 = vmatpush1.bf16.msra.mxu1 %v12914_v31  ;;  %v13010_v31 = vld [vmem:[%s13949_s23 + $0xc60] ss:$8 sps:$4 sm:$0xff]  }
 0x32e   : > { %9491 = vmatpush1.bf16.msra.mxu0 %v12917_v32  ;;  %8675 = vmatprep.subr.bf16.mxu1 %v12922_v33  ;;  %v13013_v32 = vld [vmem:[%s13949_s23 + $0x1f60] ss:$8 sps:$4 sm:$0xff]   ;;  %v13018_v33 = vld [vmem:[%s13949_s23 + $0xc74] ss:$8 sps:$4 sm:$0xff]  }
 0x32f   : > { %9492 = vmatprep.subr.bf16.mxu0 %v12925_v34  ;;  %v13021_v34 = vld [vmem:[%s13949_s23 + $0x1f74] ss:$8 sps:$4 sm:$0xff]  }
 0x331   : > { %8676 = vmatpush1.bf16.msra.mxu1 %v12920_v35  ;;  %v13016_v35 = vld [vmem:[%s13949_s23 + $0xc70] ss:$8 sps:$4 sm:$0xff]  }
 0x332   : > { %9493 = vmatpush1.bf16.msra.mxu0 %v12923_v36  ;;  %8677 = vmatprep.subr.bf16.mxu1 %v12928_v37  ;;  %v13019_v36 = vld [vmem:[%s13949_s23 + $0x1f70] ss:$8 sps:$4 sm:$0xff]   ;;  %v13024_v37 = vld [vmem:[%s13949_s23 + $0xc84] ss:$8 sps:$4 sm:$0xff]  }
 0x333   : > { %9494 = vmatprep.subr.bf16.mxu0 %v12931_v38  ;;  %v13027_v38 = vld [vmem:[%s13949_s23 + $0x1f84] ss:$8 sps:$4 sm:$0xff]  }
 0x335   : > { %8678 = vmatpush1.bf16.msra.mxu1 %v12926_v39  ;;  %v13022_v39 = vld [vmem:[%s13949_s23 + $0xc80] ss:$8 sps:$4 sm:$0xff]  }
 0x336   : > { %9495 = vmatpush1.bf16.msra.mxu0 %v12929_v40  ;;  %8679 = vmatprep.subr.bf16.mxu1 %v12934_v41  ;;  %v13025_v40 = vld [vmem:[%s13949_s23 + $0x1f80] ss:$8 sps:$4 sm:$0xff]   ;;  %v13030_v41 = vld [vmem:[%s13949_s23 + $0xc94] ss:$8 sps:$4 sm:$0xff]  }
 0x337   : > { %9496 = vmatprep.subr.bf16.mxu0 %v12937_v42  ;;  %v13033_v42 = vld [vmem:[%s13949_s23 + $0x1f94] ss:$8 sps:$4 sm:$0xff]  }
 0x339   : > { %8680 = vmatpush1.bf16.msra.mxu1 %v12932_v43  ;;  %v13028_v43 = vld [vmem:[%s13949_s23 + $0xc90] ss:$8 sps:$4 sm:$0xff]  }
 0x33a   : > { %9497 = vmatpush1.bf16.msra.mxu0 %v12935_v44  ;;  %8681 = vmatprep.subr.bf16.mxu1 %v12940_v45  ;;  %v13031_v44 = vld [vmem:[%s13949_s23 + $0x1f90] ss:$8 sps:$4 sm:$0xff]   ;;  %v13036_v45 = vld [vmem:[%s13949_s23 + $0xca4] ss:$8 sps:$4 sm:$0xff]  }
 0x33b   : > { %9498 = vmatprep.subr.bf16.mxu0 %v12943_v46  ;;  %v13039_v46 = vld [vmem:[%s13949_s23 + $0x1fa4] ss:$8 sps:$4 sm:$0xff]  }
 0x33d   : > { %8682 = vmatpush1.bf16.msra.mxu1 %v12938_v47  ;;  %v13034_v47 = vld [vmem:[%s13949_s23 + $0xca0] ss:$8 sps:$4 sm:$0xff]  }
 0x33e   : > { %9499 = vmatpush1.bf16.msra.mxu0 %v12941_v48  ;;  %8683 = vmatprep.subr.bf16.mxu1 %v12946_v49  ;;  %v13037_v48 = vld [vmem:[%s13949_s23 + $0x1fa0] ss:$8 sps:$4 sm:$0xff]   ;;  %v13042_v49 = vld [vmem:[%s13949_s23 + $0xcb4] ss:$8 sps:$4 sm:$0xff]  }
 0x33f   : > { %9500 = vmatprep.subr.bf16.mxu0 %v12949_v50  ;;  %v13045_v50 = vld [vmem:[%s13949_s23 + $0x1fb4] ss:$8 sps:$4 sm:$0xff]  }
 0x341   : > { %8684 = vmatpush1.bf16.msra.mxu1 %v12944_v51  ;;  %v13040_v51 = vld [vmem:[%s13949_s23 + $0xcb0] ss:$8 sps:$4 sm:$0xff]  }
 0x342   : > { %9501 = vmatpush1.bf16.msra.mxu0 %v12947_v52  ;;  %8685 = vmatprep.subr.bf16.mxu1 %v12952_v53  ;;  %v13043_v52 = vld [vmem:[%s13949_s23 + $0x1fb0] ss:$8 sps:$4 sm:$0xff]   ;;  %v13048_v53 = vld [vmem:[%s13949_s23 + $0xcc4] ss:$8 sps:$4 sm:$0xff]  }
 0x343   : > { %9502 = vmatprep.subr.bf16.mxu0 %v12955_v54  ;;  %v13051_v54 = vld [vmem:[%s13949_s23 + $0x1fc4] ss:$8 sps:$4 sm:$0xff]  }
 0x345   : > { %8686 = vmatpush1.bf16.msra.mxu1 %v12950_v55  ;;  %v13046_v55 = vld [vmem:[%s13949_s23 + $0xcc0] ss:$8 sps:$4 sm:$0xff]  }
 0x346   : > { %9503 = vmatpush1.bf16.msra.mxu0 %v12953_v56  ;;  %8687 = vmatprep.subr.bf16.mxu1 %v12958_v57  ;;  %v13049_v56 = vld [vmem:[%s13949_s23 + $0x1fc0] ss:$8 sps:$4 sm:$0xff]   ;;  %v13054_v57 = vld [vmem:[%s13949_s23 + $0xcd4] ss:$8 sps:$4 sm:$0xff]  }
 0x347   : > { %9504 = vmatprep.subr.bf16.mxu0 %v12961_v58  ;;  %v13057_v58 = vld [vmem:[%s13949_s23 + $0x1fd4] ss:$8 sps:$4 sm:$0xff]  }
 0x349   : > { %8688 = vmatpush1.bf16.msra.mxu1 %v12956_v59  ;;  %v13052_v59 = vld [vmem:[%s13949_s23 + $0xcd0] ss:$8 sps:$4 sm:$0xff]  }
 0x34a   : > { %9505 = vmatpush1.bf16.msra.mxu0 %v12959_v60  ;;  %8689 = vmatprep.subr.bf16.mxu1 %v12964_v61  ;;  %v13055_v60 = vld [vmem:[%s13949_s23 + $0x1fd0] ss:$8 sps:$4 sm:$0xff]   ;;  %v13060_v61 = vld [vmem:[%s13949_s23 + $0xce4] ss:$8 sps:$4 sm:$0xff]  }
 0x34b   : > { %9506 = vmatprep.subr.bf16.mxu0 %v12967_v62  ;;  %v13063_v62 = vld [vmem:[%s13949_s23 + $0x1fe4] ss:$8 sps:$4 sm:$0xff]  }
 0x34d   : > { %8690 = vmatpush1.bf16.msra.mxu1 %v12962_v63  ;;  %v13058_v63 = vld [vmem:[%s13949_s23 + $0xce0] ss:$8 sps:$4 sm:$0xff]  }
 0x34e   : > { %9507 = vmatpush1.bf16.msra.mxu0 %v12965_v0  ;;  %8702 = vmatprep.subr.bf16.mxu1 %v12973_v1  ;;  %v13061_v0 = vld [vmem:[%s13949_s23 + $0x1fe0] ss:$8 sps:$4 sm:$0xff]   ;;  %v13066_v1 = vld [vmem:[%s13949_s23 + $0xcf4] ss:$8 sps:$4 sm:$0xff]  }
 0x34f   : > { %9519 = vmatprep.subr.bf16.mxu0 %v12979_v2  ;;  %v13069_v2 = vld [vmem:[%s13949_s23 + $0x1ff4] ss:$8 sps:$4 sm:$0xff]  }
 0x350   : > { %8692 = vmatmul.mubr.bf16.vlgmr.msra.gmra.mrb[0].mxu1 %v12968_v3  ;;  %v13064_v3 = vld [vmem:[%s13949_s23 + $0xcf0] ss:$8 sps:$4 sm:$0xff]  }
 0x351   : > { %9509 = vmatmul.mubr.bf16.vlgmr.msra.gmra.mrb[0].mxu0 %v12974_v4  ;;  %8703 = vmatpush1.bf16.msra.mxu1 %v12971_v5  ;;  %v13067_v4 = vld [vmem:[%s13949_s23 + $0x1ff0] ss:$8 sps:$4 sm:$0xff]   ;;  %v13075_v5 = vld [vmem:[%s13949_s23 + $0xd04] ss:$8 sps:$4 sm:$0xff]  }
 0x352   : > { %9520 = vmatpush1.bf16.msra.mxu0 %v12977_v6  ;;  %8704 = vmatprep.subr.bf16.mxu1 %v12982_v7  ;;  %v13081_v6 = vld [vmem:[%s13949_s23 + $0x2004] ss:$8 sps:$4 sm:$0xff]  }
 0x353   : > { %9521 = vmatprep.subr.bf16.mxu0 %v12985_v8  ;;  %8734 = vmatprep.mubr.bf16.mxu1 %v13072_v9  ;;  %v13070_v7 = vld [vmem:[%s13951_s30 + $0x60] ss:$300 sps:$4 sm:$0xff]   ;;  %v13076_v8 = vld [vmem:[%s13951_s30 + $0xf8] ss:$300 sps:$4 sm:$0xff]  }
 0x354   : > { %9551 = vmatprep.mubr.bf16.mxu0 %v13078_v10  ;;  %v13073_v9 = vld [vmem:[%s13949_s23 + $0xd00] ss:$8 sps:$4 sm:$0xff]  }
 0x355   : > { %8705 = vmatpush1.bf16.msra.mxu1 %v12980_v11  ;;  %v13079_v10 = vld [vmem:[%s13949_s23 + $0x2000] ss:$8 sps:$4 sm:$0xff]   ;;  %v13084_v11 = vld [vmem:[%s13949_s23 + $0xd14] ss:$8 sps:$4 sm:$0xff]  }
 0x356   : > { %9522 = vmatpush1.bf16.msra.mxu0 %v12983_v12  ;;  %8706 = vmatprep.subr.bf16.mxu1 %v12988_v13  ;;  %v13087_v12 = vld [vmem:[%s13949_s23 + $0x2014] ss:$8 sps:$4 sm:$0xff]   ;;  %v13174_v13 = vld [vmem:[%s13951_s30 + $0x6c] ss:$300 sps:$4 sm:$0xff]  }
 0x357   : > { %9523 = vmatprep.subr.bf16.mxu0 %v12991_v14  ;;  %v13180_v14 = vld [vmem:[%s13951_s30 + $0x104] ss:$300 sps:$4 sm:$0xff]  }
 0x359   : > { %8707 = vmatpush1.bf16.msra.mxu1 %v12986_v15  ;;  %v13082_v15 = vld [vmem:[%s13949_s23 + $0xd10] ss:$8 sps:$4 sm:$0xff]  }
 0x35a   : > { %9524 = vmatpush1.bf16.msra.mxu0 %v12989_v16  ;;  %8708 = vmatprep.subr.bf16.mxu1 %v12994_v17  ;;  %v13085_v16 = vld [vmem:[%s13949_s23 + $0x2010] ss:$8 sps:$4 sm:$0xff]   ;;  %v13090_v17 = vld [vmem:[%s13949_s23 + $0xd24] ss:$8 sps:$4 sm:$0xff]  }
 0x35b   : > { %9525 = vmatprep.subr.bf16.mxu0 %v12997_v18  ;;  %v13093_v18 = vld [vmem:[%s13949_s23 + $0x2024] ss:$8 sps:$4 sm:$0xff]  }
 0x35d   : > { %8709 = vmatpush1.bf16.msra.mxu1 %v12992_v19  ;;  %v13088_v19 = vld [vmem:[%s13949_s23 + $0xd20] ss:$8 sps:$4 sm:$0xff]  }
 0x35e   : > { %9526 = vmatpush1.bf16.msra.mxu0 %v12995_v20  ;;  %8710 = vmatprep.subr.bf16.mxu1 %v13000_v21  ;;  %v13091_v20 = vld [vmem:[%s13949_s23 + $0x2020] ss:$8 sps:$4 sm:$0xff]   ;;  %v13096_v21 = vld [vmem:[%s13949_s23 + $0xd34] ss:$8 sps:$4 sm:$0xff]  }
 0x35f   : > { %9527 = vmatprep.subr.bf16.mxu0 %v13003_v22  ;;  %v13099_v22 = vld [vmem:[%s13949_s23 + $0x2034] ss:$8 sps:$4 sm:$0xff]  }
 0x361   : > { %8711 = vmatpush1.bf16.msra.mxu1 %v12998_v23  ;;  %v13094_v23 = vld [vmem:[%s13949_s23 + $0xd30] ss:$8 sps:$4 sm:$0xff]  }
 0x362   : > { %9528 = vmatpush1.bf16.msra.mxu0 %v13001_v24  ;;  %8712 = vmatprep.subr.bf16.mxu1 %v13006_v25  ;;  %v13097_v24 = vld [vmem:[%s13949_s23 + $0x2030] ss:$8 sps:$4 sm:$0xff]   ;;  %v13102_v25 = vld [vmem:[%s13949_s23 + $0xd44] ss:$8 sps:$4 sm:$0xff]  }
 0x363   : > { %9529 = vmatprep.subr.bf16.mxu0 %v13009_v26  ;;  %v13105_v26 = vld [vmem:[%s13949_s23 + $0x2044] ss:$8 sps:$4 sm:$0xff]  }
 0x365   : > { %8713 = vmatpush1.bf16.msra.mxu1 %v13004_v27  ;;  %v13100_v27 = vld [vmem:[%s13949_s23 + $0xd40] ss:$8 sps:$4 sm:$0xff]  }
 0x366   : > { %9530 = vmatpush1.bf16.msra.mxu0 %v13007_v28  ;;  %8714 = vmatprep.subr.bf16.mxu1 %v13012_v29  ;;  %v13103_v28 = vld [vmem:[%s13949_s23 + $0x2040] ss:$8 sps:$4 sm:$0xff]   ;;  %v13108_v29 = vld [vmem:[%s13949_s23 + $0xd54] ss:$8 sps:$4 sm:$0xff]  }
 0x367   : > { %9531 = vmatprep.subr.bf16.mxu0 %v13015_v30  ;;  %v13111_v30 = vld [vmem:[%s13949_s23 + $0x2054] ss:$8 sps:$4 sm:$0xff]  }
 0x369   : > { %8715 = vmatpush1.bf16.msra.mxu1 %v13010_v31  ;;  %v13106_v31 = vld [vmem:[%s13949_s23 + $0xd50] ss:$8 sps:$4 sm:$0xff]  }
 0x36a   : > { %9532 = vmatpush1.bf16.msra.mxu0 %v13013_v32  ;;  %8716 = vmatprep.subr.bf16.mxu1 %v13018_v33  ;;  %v13109_v32 = vld [vmem:[%s13949_s23 + $0x2050] ss:$8 sps:$4 sm:$0xff]   ;;  %v13114_v33 = vld [vmem:[%s13949_s23 + $0xd64] ss:$8 sps:$4 sm:$0xff]  }
 0x36b   : > { %9533 = vmatprep.subr.bf16.mxu0 %v13021_v34  ;;  %v13117_v34 = vld [vmem:[%s13949_s23 + $0x2064] ss:$8 sps:$4 sm:$0xff]  }
 0x36d   : > { %8717 = vmatpush1.bf16.msra.mxu1 %v13016_v35  ;;  %v13112_v35 = vld [vmem:[%s13949_s23 + $0xd60] ss:$8 sps:$4 sm:$0xff]  }
 0x36e   : > { %9534 = vmatpush1.bf16.msra.mxu0 %v13019_v36  ;;  %8718 = vmatprep.subr.bf16.mxu1 %v13024_v37  ;;  %v13115_v36 = vld [vmem:[%s13949_s23 + $0x2060] ss:$8 sps:$4 sm:$0xff]   ;;  %v13120_v37 = vld [vmem:[%s13949_s23 + $0xd74] ss:$8 sps:$4 sm:$0xff]  }
 0x36f   : > { %9535 = vmatprep.subr.bf16.mxu0 %v13027_v38  ;;  %v13123_v38 = vld [vmem:[%s13949_s23 + $0x2074] ss:$8 sps:$4 sm:$0xff]  }
 0x371   : > { %8719 = vmatpush1.bf16.msra.mxu1 %v13022_v39  ;;  %v13118_v39 = vld [vmem:[%s13949_s23 + $0xd70] ss:$8 sps:$4 sm:$0xff]  }
 0x372   : > { %9536 = vmatpush1.bf16.msra.mxu0 %v13025_v40  ;;  %8720 = vmatprep.subr.bf16.mxu1 %v13030_v41  ;;  %v13121_v40 = vld [vmem:[%s13949_s23 + $0x2070] ss:$8 sps:$4 sm:$0xff]   ;;  %v13126_v41 = vld [vmem:[%s13949_s23 + $0xd84] ss:$8 sps:$4 sm:$0xff]  }
 0x373   : > { %9537 = vmatprep.subr.bf16.mxu0 %v13033_v42  ;;  %v13129_v42 = vld [vmem:[%s13949_s23 + $0x2084] ss:$8 sps:$4 sm:$0xff]  }
 0x375   : > { %8721 = vmatpush1.bf16.msra.mxu1 %v13028_v43  ;;  %v13124_v43 = vld [vmem:[%s13949_s23 + $0xd80] ss:$8 sps:$4 sm:$0xff]  }
 0x376   : > { %9538 = vmatpush1.bf16.msra.mxu0 %v13031_v44  ;;  %8722 = vmatprep.subr.bf16.mxu1 %v13036_v45  ;;  %v13127_v44 = vld [vmem:[%s13949_s23 + $0x2080] ss:$8 sps:$4 sm:$0xff]   ;;  %v13132_v45 = vld [vmem:[%s13949_s23 + $0xd94] ss:$8 sps:$4 sm:$0xff]  }
 0x377   : > { %9539 = vmatprep.subr.bf16.mxu0 %v13039_v46  ;;  %v13135_v46 = vld [vmem:[%s13949_s23 + $0x2094] ss:$8 sps:$4 sm:$0xff]  }
 0x379   : > { %8723 = vmatpush1.bf16.msra.mxu1 %v13034_v47  ;;  %v13130_v47 = vld [vmem:[%s13949_s23 + $0xd90] ss:$8 sps:$4 sm:$0xff]  }
 0x37a   : > { %9540 = vmatpush1.bf16.msra.mxu0 %v13037_v48  ;;  %8724 = vmatprep.subr.bf16.mxu1 %v13042_v49  ;;  %v13133_v48 = vld [vmem:[%s13949_s23 + $0x2090] ss:$8 sps:$4 sm:$0xff]   ;;  %v13138_v49 = vld [vmem:[%s13949_s23 + $0xda4] ss:$8 sps:$4 sm:$0xff]  }
 0x37b   : > { %9541 = vmatprep.subr.bf16.mxu0 %v13045_v50  ;;  %v13141_v50 = vld [vmem:[%s13949_s23 + $0x20a4] ss:$8 sps:$4 sm:$0xff]  }
 0x37d   : > { %8725 = vmatpush1.bf16.msra.mxu1 %v13040_v51  ;;  %v13136_v51 = vld [vmem:[%s13949_s23 + $0xda0] ss:$8 sps:$4 sm:$0xff]  }
 0x37e   : > { %9542 = vmatpush1.bf16.msra.mxu0 %v13043_v52  ;;  %8726 = vmatprep.subr.bf16.mxu1 %v13048_v53  ;;  %v13139_v52 = vld [vmem:[%s13949_s23 + $0x20a0] ss:$8 sps:$4 sm:$0xff]   ;;  %v13144_v53 = vld [vmem:[%s13949_s23 + $0xdb4] ss:$8 sps:$4 sm:$0xff]  }
 0x37f   : > { %9543 = vmatprep.subr.bf16.mxu0 %v13051_v54  ;;  %v13147_v54 = vld [vmem:[%s13949_s23 + $0x20b4] ss:$8 sps:$4 sm:$0xff]  }
 0x381   : > { %8727 = vmatpush1.bf16.msra.mxu1 %v13046_v55  ;;  %v13142_v55 = vld [vmem:[%s13949_s23 + $0xdb0] ss:$8 sps:$4 sm:$0xff]  }
 0x382   : > { %9544 = vmatpush1.bf16.msra.mxu0 %v13049_v56  ;;  %8728 = vmatprep.subr.bf16.mxu1 %v13054_v57  ;;  %v13145_v56 = vld [vmem:[%s13949_s23 + $0x20b0] ss:$8 sps:$4 sm:$0xff]   ;;  %v13150_v57 = vld [vmem:[%s13949_s23 + $0xdc4] ss:$8 sps:$4 sm:$0xff]  }
 0x383   : > { %9545 = vmatprep.subr.bf16.mxu0 %v13057_v58  ;;  %v13153_v58 = vld [vmem:[%s13949_s23 + $0x20c4] ss:$8 sps:$4 sm:$0xff]  }
 0x385   : > { %8729 = vmatpush1.bf16.msra.mxu1 %v13052_v59  ;;  %v13148_v59 = vld [vmem:[%s13949_s23 + $0xdc0] ss:$8 sps:$4 sm:$0xff]  }
 0x386   : > { %9546 = vmatpush1.bf16.msra.mxu0 %v13055_v60  ;;  %8730 = vmatprep.subr.bf16.mxu1 %v13060_v61  ;;  %v13151_v60 = vld [vmem:[%s13949_s23 + $0x20c0] ss:$8 sps:$4 sm:$0xff]   ;;  %v13156_v61 = vld [vmem:[%s13949_s23 + $0xdd4] ss:$8 sps:$4 sm:$0xff]  }
 0x387   : > { %9547 = vmatprep.subr.bf16.mxu0 %v13063_v62  ;;  %v13159_v62 = vld [vmem:[%s13949_s23 + $0x20d4] ss:$8 sps:$4 sm:$0xff]  }
 0x389   : > { %8731 = vmatpush1.bf16.msra.mxu1 %v13058_v63  ;;  %v13154_v63 = vld [vmem:[%s13949_s23 + $0xdd0] ss:$8 sps:$4 sm:$0xff]  }
 0x38a   : > { %9548 = vmatpush1.bf16.msra.mxu0 %v13061_v0  ;;  %8732 = vmatprep.subr.bf16.mxu1 %v13066_v1  ;;  %v13157_v0 = vld [vmem:[%s13949_s23 + $0x20d0] ss:$8 sps:$4 sm:$0xff]   ;;  %v13162_v1 = vld [vmem:[%s13949_s23 + $0xde4] ss:$8 sps:$4 sm:$0xff]  }
 0x38b   : > { %9549 = vmatprep.subr.bf16.mxu0 %v13069_v2  ;;  %v13165_v2 = vld [vmem:[%s13949_s23 + $0x20e4] ss:$8 sps:$4 sm:$0xff]  }
 0x38d   : > { %8733 = vmatpush1.bf16.msra.mxu1 %v13064_v3  ;;  %v13160_v3 = vld [vmem:[%s13949_s23 + $0xde0] ss:$8 sps:$4 sm:$0xff]  }
 0x38e   : > { %9550 = vmatpush1.bf16.msra.mxu0 %v13067_v4  ;;  %8745 = vmatprep.subr.bf16.mxu1 %v13075_v5  ;;  %v13163_v4 = vld [vmem:[%s13949_s23 + $0x20e0] ss:$8 sps:$4 sm:$0xff]   ;;  %v13168_v5 = vld [vmem:[%s13949_s23 + $0xdf4] ss:$8 sps:$4 sm:$0xff]  }
 0x38f   : > { %9562 = vmatprep.subr.bf16.mxu0 %v13081_v6  ;;  %v13171_v6 = vld [vmem:[%s13949_s23 + $0x20f4] ss:$8 sps:$4 sm:$0xff]  }
 0x390   : > { %8735 = vmatmul.mubr.bf16.vlgmr.msra.gmra.mrb[0].mxu1 %v13070_v7  ;;  %v13166_v7 = vld [vmem:[%s13949_s23 + $0xdf0] ss:$8 sps:$4 sm:$0xff]  }
 0x391   : > { %9552 = vmatmul.mubr.bf16.vlgmr.msra.gmra.mrb[0].mxu0 %v13076_v8  ;;  %8746 = vmatpush1.bf16.msra.mxu1 %v13073_v9  ;;  %v13169_v8 = vld [vmem:[%s13949_s23 + $0x20f0] ss:$8 sps:$4 sm:$0xff]   ;;  %v13177_v9 = vld [vmem:[%s13949_s23 + $0xe04] ss:$8 sps:$4 sm:$0xff]  }
 0x392   : > { %9563 = vmatpush1.bf16.msra.mxu0 %v13079_v10  ;;  %8747 = vmatprep.subr.bf16.mxu1 %v13084_v11  ;;  %v13183_v10 = vld [vmem:[%s13949_s23 + $0x2104] ss:$8 sps:$4 sm:$0xff]  }
 0x393   : > { %9564 = vmatprep.subr.bf16.mxu0 %v13087_v12  ;;  %8777 = vmatprep.mubr.bf16.mxu1 %v13174_v13  ;;  %v13172_v11 = vld [vmem:[%s13951_s30 + $0x68] ss:$300 sps:$4 sm:$0xff]   ;;  %v13178_v12 = vld [vmem:[%s13951_s30 + $0x100] ss:$300 sps:$4 sm:$0xff]  }
 0x394   : > { %9594 = vmatprep.mubr.bf16.mxu0 %v13180_v14  ;;  %v13175_v13 = vld [vmem:[%s13949_s23 + $0xe00] ss:$8 sps:$4 sm:$0xff]  }
 0x395   : > { %8748 = vmatpush1.bf16.msra.mxu1 %v13082_v15  ;;  %v13181_v14 = vld [vmem:[%s13949_s23 + $0x2100] ss:$8 sps:$4 sm:$0xff]   ;;  %v13186_v15 = vld [vmem:[%s13949_s23 + $0xe14] ss:$8 sps:$4 sm:$0xff]  }
 0x396   : > { %9565 = vmatpush1.bf16.msra.mxu0 %v13085_v16  ;;  %8749 = vmatprep.subr.bf16.mxu1 %v13090_v17  ;;  %v13189_v16 = vld [vmem:[%s13949_s23 + $0x2114] ss:$8 sps:$4 sm:$0xff]  }
 0x397   : > { %9566 = vmatprep.subr.bf16.mxu0 %v13093_v18  ;;  %v13276_v17 = vld [vmem:[%s13951_s30 + $0x74] ss:$300 sps:$4 sm:$0xff]   ;;  %v13282_v18 = vld [vmem:[%s13951_s30 + $0x10c] ss:$300 sps:$4 sm:$0xff]  }
 0x399   : > { %8750 = vmatpush1.bf16.msra.mxu1 %v13088_v19  ;;  %v13184_v19 = vld [vmem:[%s13949_s23 + $0xe10] ss:$8 sps:$4 sm:$0xff]  }
 0x39a   : > { %9567 = vmatpush1.bf16.msra.mxu0 %v13091_v20  ;;  %8751 = vmatprep.subr.bf16.mxu1 %v13096_v21  ;;  %v13187_v20 = vld [vmem:[%s13949_s23 + $0x2110] ss:$8 sps:$4 sm:$0xff]   ;;  %v13192_v21 = vld [vmem:[%s13949_s23 + $0xe24] ss:$8 sps:$4 sm:$0xff]  }
 0x39b   : > { %9568 = vmatprep.subr.bf16.mxu0 %v13099_v22  ;;  %v13195_v22 = vld [vmem:[%s13949_s23 + $0x2124] ss:$8 sps:$4 sm:$0xff]  }
 0x39d   : > { %8752 = vmatpush1.bf16.msra.mxu1 %v13094_v23  ;;  %v13190_v23 = vld [vmem:[%s13949_s23 + $0xe20] ss:$8 sps:$4 sm:$0xff]  }
 0x39e   : > { %9569 = vmatpush1.bf16.msra.mxu0 %v13097_v24  ;;  %8753 = vmatprep.subr.bf16.mxu1 %v13102_v25  ;;  %v13193_v24 = vld [vmem:[%s13949_s23 + $0x2120] ss:$8 sps:$4 sm:$0xff]   ;;  %v13198_v25 = vld [vmem:[%s13949_s23 + $0xe34] ss:$8 sps:$4 sm:$0xff]  }
 0x39f   : > { %9570 = vmatprep.subr.bf16.mxu0 %v13105_v26  ;;  %v13201_v26 = vld [vmem:[%s13949_s23 + $0x2134] ss:$8 sps:$4 sm:$0xff]  }
 0x3a1   : > { %8754 = vmatpush1.bf16.msra.mxu1 %v13100_v27  ;;  %v13196_v27 = vld [vmem:[%s13949_s23 + $0xe30] ss:$8 sps:$4 sm:$0xff]  }
 0x3a2   : > { %9571 = vmatpush1.bf16.msra.mxu0 %v13103_v28  ;;  %8755 = vmatprep.subr.bf16.mxu1 %v13108_v29  ;;  %v13199_v28 = vld [vmem:[%s13949_s23 + $0x2130] ss:$8 sps:$4 sm:$0xff]   ;;  %v13204_v29 = vld [vmem:[%s13949_s23 + $0xe44] ss:$8 sps:$4 sm:$0xff]  }
 0x3a3   : > { %9572 = vmatprep.subr.bf16.mxu0 %v13111_v30  ;;  %v13207_v30 = vld [vmem:[%s13949_s23 + $0x2144] ss:$8 sps:$4 sm:$0xff]  }
 0x3a5   : > { %8756 = vmatpush1.bf16.msra.mxu1 %v13106_v31  ;;  %v13202_v31 = vld [vmem:[%s13949_s23 + $0xe40] ss:$8 sps:$4 sm:$0xff]  }
 0x3a6   : > { %9573 = vmatpush1.bf16.msra.mxu0 %v13109_v32  ;;  %8757 = vmatprep.subr.bf16.mxu1 %v13114_v33  ;;  %v13205_v32 = vld [vmem:[%s13949_s23 + $0x2140] ss:$8 sps:$4 sm:$0xff]   ;;  %v13210_v33 = vld [vmem:[%s13949_s23 + $0xe54] ss:$8 sps:$4 sm:$0xff]  }
 0x3a7   : > { %9574 = vmatprep.subr.bf16.mxu0 %v13117_v34  ;;  %v13213_v34 = vld [vmem:[%s13949_s23 + $0x2154] ss:$8 sps:$4 sm:$0xff]  }
 0x3a9   : > { %8758 = vmatpush1.bf16.msra.mxu1 %v13112_v35  ;;  %v13208_v35 = vld [vmem:[%s13949_s23 + $0xe50] ss:$8 sps:$4 sm:$0xff]  }
 0x3aa   : > { %9575 = vmatpush1.bf16.msra.mxu0 %v13115_v36  ;;  %8759 = vmatprep.subr.bf16.mxu1 %v13120_v37  ;;  %v13211_v36 = vld [vmem:[%s13949_s23 + $0x2150] ss:$8 sps:$4 sm:$0xff]   ;;  %v13216_v37 = vld [vmem:[%s13949_s23 + $0xe64] ss:$8 sps:$4 sm:$0xff]  }
 0x3ab   : > { %9576 = vmatprep.subr.bf16.mxu0 %v13123_v38  ;;  %v13219_v38 = vld [vmem:[%s13949_s23 + $0x2164] ss:$8 sps:$4 sm:$0xff]  }
 0x3ad   : > { %8760 = vmatpush1.bf16.msra.mxu1 %v13118_v39  ;;  %v13214_v39 = vld [vmem:[%s13949_s23 + $0xe60] ss:$8 sps:$4 sm:$0xff]  }
 0x3ae   : > { %9577 = vmatpush1.bf16.msra.mxu0 %v13121_v40  ;;  %8761 = vmatprep.subr.bf16.mxu1 %v13126_v41  ;;  %v13217_v40 = vld [vmem:[%s13949_s23 + $0x2160] ss:$8 sps:$4 sm:$0xff]   ;;  %v13222_v41 = vld [vmem:[%s13949_s23 + $0xe74] ss:$8 sps:$4 sm:$0xff]  }
 0x3af   : > { %9578 = vmatprep.subr.bf16.mxu0 %v13129_v42  ;;  %v13225_v42 = vld [vmem:[%s13949_s23 + $0x2174] ss:$8 sps:$4 sm:$0xff]  }
 0x3b1   : > { %8762 = vmatpush1.bf16.msra.mxu1 %v13124_v43  ;;  %v13220_v43 = vld [vmem:[%s13949_s23 + $0xe70] ss:$8 sps:$4 sm:$0xff]  }
 0x3b2   : > { %9579 = vmatpush1.bf16.msra.mxu0 %v13127_v44  ;;  %8763 = vmatprep.subr.bf16.mxu1 %v13132_v45  ;;  %v13223_v44 = vld [vmem:[%s13949_s23 + $0x2170] ss:$8 sps:$4 sm:$0xff]   ;;  %v13228_v45 = vld [vmem:[%s13949_s23 + $0xe84] ss:$8 sps:$4 sm:$0xff]  }
 0x3b3   : > { %9580 = vmatprep.subr.bf16.mxu0 %v13135_v46  ;;  %v13231_v46 = vld [vmem:[%s13949_s23 + $0x2184] ss:$8 sps:$4 sm:$0xff]  }
 0x3b5   : > { %8764 = vmatpush1.bf16.msra.mxu1 %v13130_v47  ;;  %v13226_v47 = vld [vmem:[%s13949_s23 + $0xe80] ss:$8 sps:$4 sm:$0xff]  }
 0x3b6   : > { %9581 = vmatpush1.bf16.msra.mxu0 %v13133_v48  ;;  %8765 = vmatprep.subr.bf16.mxu1 %v13138_v49  ;;  %v13229_v48 = vld [vmem:[%s13949_s23 + $0x2180] ss:$8 sps:$4 sm:$0xff]   ;;  %v13234_v49 = vld [vmem:[%s13949_s23 + $0xe94] ss:$8 sps:$4 sm:$0xff]  }
 0x3b7   : > { %9582 = vmatprep.subr.bf16.mxu0 %v13141_v50  ;;  %v13237_v50 = vld [vmem:[%s13949_s23 + $0x2194] ss:$8 sps:$4 sm:$0xff]  }
 0x3b9   : > { %8766 = vmatpush1.bf16.msra.mxu1 %v13136_v51  ;;  %v13232_v51 = vld [vmem:[%s13949_s23 + $0xe90] ss:$8 sps:$4 sm:$0xff]  }
 0x3ba   : > { %9583 = vmatpush1.bf16.msra.mxu0 %v13139_v52  ;;  %8767 = vmatprep.subr.bf16.mxu1 %v13144_v53  ;;  %v13235_v52 = vld [vmem:[%s13949_s23 + $0x2190] ss:$8 sps:$4 sm:$0xff]   ;;  %v13240_v53 = vld [vmem:[%s13949_s23 + $0xea4] ss:$8 sps:$4 sm:$0xff]  }
 0x3bb   : > { %9584 = vmatprep.subr.bf16.mxu0 %v13147_v54  ;;  %v13243_v54 = vld [vmem:[%s13949_s23 + $0x21a4] ss:$8 sps:$4 sm:$0xff]  }
 0x3bd   : > { %8768 = vmatpush1.bf16.msra.mxu1 %v13142_v55  ;;  %v13238_v55 = vld [vmem:[%s13949_s23 + $0xea0] ss:$8 sps:$4 sm:$0xff]  }
 0x3be   : > { %9585 = vmatpush1.bf16.msra.mxu0 %v13145_v56  ;;  %8769 = vmatprep.subr.bf16.mxu1 %v13150_v57  ;;  %v13241_v56 = vld [vmem:[%s13949_s23 + $0x21a0] ss:$8 sps:$4 sm:$0xff]   ;;  %v13246_v57 = vld [vmem:[%s13949_s23 + $0xeb4] ss:$8 sps:$4 sm:$0xff]  }
 0x3bf   : > { %9586 = vmatprep.subr.bf16.mxu0 %v13153_v58  ;;  %v13249_v58 = vld [vmem:[%s13949_s23 + $0x21b4] ss:$8 sps:$4 sm:$0xff]  }
 0x3c1   : > { %8770 = vmatpush1.bf16.msra.mxu1 %v13148_v59  ;;  %v13244_v59 = vld [vmem:[%s13949_s23 + $0xeb0] ss:$8 sps:$4 sm:$0xff]  }
 0x3c2   : > { %9587 = vmatpush1.bf16.msra.mxu0 %v13151_v60  ;;  %8771 = vmatprep.subr.bf16.mxu1 %v13156_v61  ;;  %v13247_v60 = vld [vmem:[%s13949_s23 + $0x21b0] ss:$8 sps:$4 sm:$0xff]   ;;  %v13252_v61 = vld [vmem:[%s13949_s23 + $0xec4] ss:$8 sps:$4 sm:$0xff]  }
 0x3c3   : > { %9588 = vmatprep.subr.bf16.mxu0 %v13159_v62  ;;  %v13255_v62 = vld [vmem:[%s13949_s23 + $0x21c4] ss:$8 sps:$4 sm:$0xff]  }
 0x3c5   : > { %8772 = vmatpush1.bf16.msra.mxu1 %v13154_v63  ;;  %v13250_v63 = vld [vmem:[%s13949_s23 + $0xec0] ss:$8 sps:$4 sm:$0xff]  }
 0x3c6   : > { %9589 = vmatpush1.bf16.msra.mxu0 %v13157_v0  ;;  %8773 = vmatprep.subr.bf16.mxu1 %v13162_v1  ;;  %v13253_v0 = vld [vmem:[%s13949_s23 + $0x21c0] ss:$8 sps:$4 sm:$0xff]   ;;  %v13258_v1 = vld [vmem:[%s13949_s23 + $0xed4] ss:$8 sps:$4 sm:$0xff]  }
 0x3c7   : > { %9590 = vmatprep.subr.bf16.mxu0 %v13165_v2  ;;  %v13261_v2 = vld [vmem:[%s13949_s23 + $0x21d4] ss:$8 sps:$4 sm:$0xff]  }
 0x3c9   : > { %8774 = vmatpush1.bf16.msra.mxu1 %v13160_v3  ;;  %v13256_v3 = vld [vmem:[%s13949_s23 + $0xed0] ss:$8 sps:$4 sm:$0xff]  }
 0x3ca   : > { %9591 = vmatpush1.bf16.msra.mxu0 %v13163_v4  ;;  %8775 = vmatprep.subr.bf16.mxu1 %v13168_v5  ;;  %v13259_v4 = vld [vmem:[%s13949_s23 + $0x21d0] ss:$8 sps:$4 sm:$0xff]   ;;  %v13264_v5 = vld [vmem:[%s13949_s23 + $0xee4] ss:$8 sps:$4 sm:$0xff]  }
 0x3cb   : > { %9592 = vmatprep.subr.bf16.mxu0 %v13171_v6  ;;  %v13267_v6 = vld [vmem:[%s13949_s23 + $0x21e4] ss:$8 sps:$4 sm:$0xff]  }
 0x3cd   : > { %8776 = vmatpush1.bf16.msra.mxu1 %v13166_v7  ;;  %v13262_v7 = vld [vmem:[%s13949_s23 + $0xee0] ss:$8 sps:$4 sm:$0xff]  }
 0x3ce   : > { %9593 = vmatpush1.bf16.msra.mxu0 %v13169_v8  ;;  %8788 = vmatprep.subr.bf16.mxu1 %v13177_v9  ;;  %v13265_v8 = vld [vmem:[%s13949_s23 + $0x21e0] ss:$8 sps:$4 sm:$0xff]   ;;  %v13270_v9 = vld [vmem:[%s13949_s23 + $0xef4] ss:$8 sps:$4 sm:$0xff]  }
 0x3cf   : > { %9605 = vmatprep.subr.bf16.mxu0 %v13183_v10  ;;  %v13273_v10 = vld [vmem:[%s13949_s23 + $0x21f4] ss:$8 sps:$4 sm:$0xff]  }
 0x3d0   : > { %8778 = vmatmul.mubr.bf16.vlgmr.msra.gmra.mrb[0].mxu1 %v13172_v11  ;;  %v13268_v11 = vld [vmem:[%s13949_s23 + $0xef0] ss:$8 sps:$4 sm:$0xff]  }
 0x3d1   : > { %9595 = vmatmul.mubr.bf16.vlgmr.msra.gmra.mrb[0].mxu0 %v13178_v12  ;;  %8789 = vmatpush1.bf16.msra.mxu1 %v13175_v13  ;;  %v13271_v12 = vld [vmem:[%s13949_s23 + $0x21f0] ss:$8 sps:$4 sm:$0xff]   ;;  %v13279_v13 = vld [vmem:[%s13949_s23 + $0xf04] ss:$8 sps:$4 sm:$0xff]  }
 0x3d2   : > { %9606 = vmatpush1.bf16.msra.mxu0 %v13181_v14  ;;  %8790 = vmatprep.subr.bf16.mxu1 %v13186_v15  ;;  %v13285_v14 = vld [vmem:[%s13949_s23 + $0x2204] ss:$8 sps:$4 sm:$0xff]   ;;  %v13274_v15 = vld [vmem:[%s13951_s30 + $0x70] ss:$300 sps:$4 sm:$0xff]  }
 0x3d3   : > { %9607 = vmatprep.subr.bf16.mxu0 %v13189_v16  ;;  %8820 = vmatprep.mubr.bf16.mxu1 %v13276_v17  ;;  %v13280_v16 = vld [vmem:[%s13951_s30 + $0x108] ss:$300 sps:$4 sm:$0xff]  }
 0x3d4   : > { %9637 = vmatprep.mubr.bf16.mxu0 %v13282_v18  ;;  %v13277_v17 = vld [vmem:[%s13949_s23 + $0xf00] ss:$8 sps:$4 sm:$0xff]  }
 0x3d5   : > { %8791 = vmatpush1.bf16.msra.mxu1 %v13184_v19  ;;  %v13283_v18 = vld [vmem:[%s13949_s23 + $0x2200] ss:$8 sps:$4 sm:$0xff]   ;;  %v13288_v19 = vld [vmem:[%s13949_s23 + $0xf14] ss:$8 sps:$4 sm:$0xff]  }
 0x3d6   : > { %9608 = vmatpush1.bf16.msra.mxu0 %v13187_v20  ;;  %8792 = vmatprep.subr.bf16.mxu1 %v13192_v21  ;;  %v13291_v20 = vld [vmem:[%s13949_s23 + $0x2214] ss:$8 sps:$4 sm:$0xff]  }
 0x3d7   : > { %9609 = vmatprep.subr.bf16.mxu0 %v13195_v22  ;;  %v13378_v21 = vld [vmem:[%s13951_s30 + $0x7c] ss:$300 sps:$4 sm:$0xff]   ;;  %v13384_v22 = vld [vmem:[%s13951_s30 + $0x114] ss:$300 sps:$4 sm:$0xff]  }
 0x3d9   : > { %8793 = vmatpush1.bf16.msra.mxu1 %v13190_v23  ;;  %v13286_v23 = vld [vmem:[%s13949_s23 + $0xf10] ss:$8 sps:$4 sm:$0xff]  }
 0x3da   : > { %9610 = vmatpush1.bf16.msra.mxu0 %v13193_v24  ;;  %8794 = vmatprep.subr.bf16.mxu1 %v13198_v25  ;;  %v13289_v24 = vld [vmem:[%s13949_s23 + $0x2210] ss:$8 sps:$4 sm:$0xff]   ;;  %v13294_v25 = vld [vmem:[%s13949_s23 + $0xf24] ss:$8 sps:$4 sm:$0xff]  }
 0x3db   : > { %9611 = vmatprep.subr.bf16.mxu0 %v13201_v26  ;;  %v13297_v26 = vld [vmem:[%s13949_s23 + $0x2224] ss:$8 sps:$4 sm:$0xff]  }
 0x3dd   : > { %8795 = vmatpush1.bf16.msra.mxu1 %v13196_v27  ;;  %v13292_v27 = vld [vmem:[%s13949_s23 + $0xf20] ss:$8 sps:$4 sm:$0xff]  }
 0x3de   : > { %9612 = vmatpush1.bf16.msra.mxu0 %v13199_v28  ;;  %8796 = vmatprep.subr.bf16.mxu1 %v13204_v29  ;;  %v13295_v28 = vld [vmem:[%s13949_s23 + $0x2220] ss:$8 sps:$4 sm:$0xff]   ;;  %v13300_v29 = vld [vmem:[%s13949_s23 + $0xf34] ss:$8 sps:$4 sm:$0xff]  }
 0x3df   : > { %9613 = vmatprep.subr.bf16.mxu0 %v13207_v30  ;;  %v13303_v30 = vld [vmem:[%s13949_s23 + $0x2234] ss:$8 sps:$4 sm:$0xff]  }
 0x3e1   : > { %8797 = vmatpush1.bf16.msra.mxu1 %v13202_v31  ;;  %v13298_v31 = vld [vmem:[%s13949_s23 + $0xf30] ss:$8 sps:$4 sm:$0xff]  }
 0x3e2   : > { %9614 = vmatpush1.bf16.msra.mxu0 %v13205_v32  ;;  %8798 = vmatprep.subr.bf16.mxu1 %v13210_v33  ;;  %v13301_v32 = vld [vmem:[%s13949_s23 + $0x2230] ss:$8 sps:$4 sm:$0xff]   ;;  %v13306_v33 = vld [vmem:[%s13949_s23 + $0xf44] ss:$8 sps:$4 sm:$0xff]  }
 0x3e3   : > { %9615 = vmatprep.subr.bf16.mxu0 %v13213_v34  ;;  %v13309_v34 = vld [vmem:[%s13949_s23 + $0x2244] ss:$8 sps:$4 sm:$0xff]  }
 0x3e5   : > { %8799 = vmatpush1.bf16.msra.mxu1 %v13208_v35  ;;  %v13304_v35 = vld [vmem:[%s13949_s23 + $0xf40] ss:$8 sps:$4 sm:$0xff]  }
 0x3e6   : > { %9616 = vmatpush1.bf16.msra.mxu0 %v13211_v36  ;;  %8800 = vmatprep.subr.bf16.mxu1 %v13216_v37  ;;  %v13307_v36 = vld [vmem:[%s13949_s23 + $0x2240] ss:$8 sps:$4 sm:$0xff]   ;;  %v13312_v37 = vld [vmem:[%s13949_s23 + $0xf54] ss:$8 sps:$4 sm:$0xff]  }
 0x3e7   : > { %9617 = vmatprep.subr.bf16.mxu0 %v13219_v38  ;;  %v13315_v38 = vld [vmem:[%s13949_s23 + $0x2254] ss:$8 sps:$4 sm:$0xff]  }
 0x3e9   : > { %8801 = vmatpush1.bf16.msra.mxu1 %v13214_v39  ;;  %v13310_v39 = vld [vmem:[%s13949_s23 + $0xf50] ss:$8 sps:$4 sm:$0xff]  }
 0x3ea   : > { %9618 = vmatpush1.bf16.msra.mxu0 %v13217_v40  ;;  %8802 = vmatprep.subr.bf16.mxu1 %v13222_v41  ;;  %v13313_v40 = vld [vmem:[%s13949_s23 + $0x2250] ss:$8 sps:$4 sm:$0xff]   ;;  %v13318_v41 = vld [vmem:[%s13949_s23 + $0xf64] ss:$8 sps:$4 sm:$0xff]  }
 0x3eb   : > { %9619 = vmatprep.subr.bf16.mxu0 %v13225_v42  ;;  %v13321_v42 = vld [vmem:[%s13949_s23 + $0x2264] ss:$8 sps:$4 sm:$0xff]  }
 0x3ed   : > { %8803 = vmatpush1.bf16.msra.mxu1 %v13220_v43  ;;  %v13316_v43 = vld [vmem:[%s13949_s23 + $0xf60] ss:$8 sps:$4 sm:$0xff]  }
 0x3ee   : > { %9620 = vmatpush1.bf16.msra.mxu0 %v13223_v44  ;;  %8804 = vmatprep.subr.bf16.mxu1 %v13228_v45  ;;  %v13319_v44 = vld [vmem:[%s13949_s23 + $0x2260] ss:$8 sps:$4 sm:$0xff]   ;;  %v13324_v45 = vld [vmem:[%s13949_s23 + $0xf74] ss:$8 sps:$4 sm:$0xff]  }
 0x3ef   : > { %9621 = vmatprep.subr.bf16.mxu0 %v13231_v46  ;;  %v13327_v46 = vld [vmem:[%s13949_s23 + $0x2274] ss:$8 sps:$4 sm:$0xff]  }
 0x3f1   : > { %8805 = vmatpush1.bf16.msra.mxu1 %v13226_v47  ;;  %v13322_v47 = vld [vmem:[%s13949_s23 + $0xf70] ss:$8 sps:$4 sm:$0xff]  }
 0x3f2   : > { %9622 = vmatpush1.bf16.msra.mxu0 %v13229_v48  ;;  %8806 = vmatprep.subr.bf16.mxu1 %v13234_v49  ;;  %v13325_v48 = vld [vmem:[%s13949_s23 + $0x2270] ss:$8 sps:$4 sm:$0xff]   ;;  %v13330_v49 = vld [vmem:[%s13949_s23 + $0xf84] ss:$8 sps:$4 sm:$0xff]  }
 0x3f3   : > { %9623 = vmatprep.subr.bf16.mxu0 %v13237_v50  ;;  %v13333_v50 = vld [vmem:[%s13949_s23 + $0x2284] ss:$8 sps:$4 sm:$0xff]  }
 0x3f5   : > { %8807 = vmatpush1.bf16.msra.mxu1 %v13232_v51  ;;  %v13328_v51 = vld [vmem:[%s13949_s23 + $0xf80] ss:$8 sps:$4 sm:$0xff]  }
 0x3f6   : > { %9624 = vmatpush1.bf16.msra.mxu0 %v13235_v52  ;;  %8808 = vmatprep.subr.bf16.mxu1 %v13240_v53  ;;  %v13331_v52 = vld [vmem:[%s13949_s23 + $0x2280] ss:$8 sps:$4 sm:$0xff]   ;;  %v13336_v53 = vld [vmem:[%s13949_s23 + $0xf94] ss:$8 sps:$4 sm:$0xff]  }
 0x3f7   : > { %9625 = vmatprep.subr.bf16.mxu0 %v13243_v54  ;;  %v13339_v54 = vld [vmem:[%s13949_s23 + $0x2294] ss:$8 sps:$4 sm:$0xff]  }
 0x3f9   : > { %8809 = vmatpush1.bf16.msra.mxu1 %v13238_v55  ;;  %v13334_v55 = vld [vmem:[%s13949_s23 + $0xf90] ss:$8 sps:$4 sm:$0xff]  }
 0x3fa   : > { %9626 = vmatpush1.bf16.msra.mxu0 %v13241_v56  ;;  %8810 = vmatprep.subr.bf16.mxu1 %v13246_v57  ;;  %v13337_v56 = vld [vmem:[%s13949_s23 + $0x2290] ss:$8 sps:$4 sm:$0xff]   ;;  %v13342_v57 = vld [vmem:[%s13949_s23 + $0xfa4] ss:$8 sps:$4 sm:$0xff]  }
 0x3fb   : > { %9627 = vmatprep.subr.bf16.mxu0 %v13249_v58  ;;  %v13345_v58 = vld [vmem:[%s13949_s23 + $0x22a4] ss:$8 sps:$4 sm:$0xff]  }
 0x3fd   : > { %8811 = vmatpush1.bf16.msra.mxu1 %v13244_v59  ;;  %v13340_v59 = vld [vmem:[%s13949_s23 + $0xfa0] ss:$8 sps:$4 sm:$0xff]  }
 0x3fe   : > { %9628 = vmatpush1.bf16.msra.mxu0 %v13247_v60  ;;  %8812 = vmatprep.subr.bf16.mxu1 %v13252_v61  ;;  %v13343_v60 = vld [vmem:[%s13949_s23 + $0x22a0] ss:$8 sps:$4 sm:$0xff]   ;;  %v13348_v61 = vld [vmem:[%s13949_s23 + $0xfb4] ss:$8 sps:$4 sm:$0xff]  }
 0x3ff   : > { %9629 = vmatprep.subr.bf16.mxu0 %v13255_v62  ;;  %v13351_v62 = vld [vmem:[%s13949_s23 + $0x22b4] ss:$8 sps:$4 sm:$0xff]  }
 0x401   : > { %8813 = vmatpush1.bf16.msra.mxu1 %v13250_v63  ;;  %v13346_v63 = vld [vmem:[%s13949_s23 + $0xfb0] ss:$8 sps:$4 sm:$0xff]  }
 0x402   : > { %9630 = vmatpush1.bf16.msra.mxu0 %v13253_v0  ;;  %8814 = vmatprep.subr.bf16.mxu1 %v13258_v1  ;;  %v13349_v0 = vld [vmem:[%s13949_s23 + $0x22b0] ss:$8 sps:$4 sm:$0xff]   ;;  %v13354_v1 = vld [vmem:[%s13949_s23 + $0xfc4] ss:$8 sps:$4 sm:$0xff]  }
 0x403   : > { %9631 = vmatprep.subr.bf16.mxu0 %v13261_v2  ;;  %v13357_v2 = vld [vmem:[%s13949_s23 + $0x22c4] ss:$8 sps:$4 sm:$0xff]  }
 0x405   : > { %8815 = vmatpush1.bf16.msra.mxu1 %v13256_v3  ;;  %v13352_v3 = vld [vmem:[%s13949_s23 + $0xfc0] ss:$8 sps:$4 sm:$0xff]  }
 0x406   : > { %9632 = vmatpush1.bf16.msra.mxu0 %v13259_v4  ;;  %8816 = vmatprep.subr.bf16.mxu1 %v13264_v5  ;;  %v13355_v4 = vld [vmem:[%s13949_s23 + $0x22c0] ss:$8 sps:$4 sm:$0xff]   ;;  %v13360_v5 = vld [vmem:[%s13949_s23 + $0xfd4] ss:$8 sps:$4 sm:$0xff]  }
 0x407   : > { %9633 = vmatprep.subr.bf16.mxu0 %v13267_v6  ;;  %v13363_v6 = vld [vmem:[%s13949_s23 + $0x22d4] ss:$8 sps:$4 sm:$0xff]  }
 0x409   : > { %8817 = vmatpush1.bf16.msra.mxu1 %v13262_v7  ;;  %v13358_v7 = vld [vmem:[%s13949_s23 + $0xfd0] ss:$8 sps:$4 sm:$0xff]  }
 0x40a   : > { %9634 = vmatpush1.bf16.msra.mxu0 %v13265_v8  ;;  %8818 = vmatprep.subr.bf16.mxu1 %v13270_v9  ;;  %v13361_v8 = vld [vmem:[%s13949_s23 + $0x22d0] ss:$8 sps:$4 sm:$0xff]   ;;  %v13366_v9 = vld [vmem:[%s13949_s23 + $0xfe4] ss:$8 sps:$4 sm:$0xff]  }
 0x40b   : > { %9635 = vmatprep.subr.bf16.mxu0 %v13273_v10  ;;  %v13369_v10 = vld [vmem:[%s13949_s23 + $0x22e4] ss:$8 sps:$4 sm:$0xff]  }
 0x40d   : > { %8819 = vmatpush1.bf16.msra.mxu1 %v13268_v11  ;;  %v13364_v11 = vld [vmem:[%s13949_s23 + $0xfe0] ss:$8 sps:$4 sm:$0xff]  }
 0x40e   : > { %9636 = vmatpush1.bf16.msra.mxu0 %v13271_v12  ;;  %8831 = vmatprep.subr.bf16.mxu1 %v13279_v13  ;;  %v13367_v12 = vld [vmem:[%s13949_s23 + $0x22e0] ss:$8 sps:$4 sm:$0xff]   ;;  %v13372_v13 = vld [vmem:[%s13949_s23 + $0xff4] ss:$8 sps:$4 sm:$0xff]  }
 0x40f   : > { %9648 = vmatprep.subr.bf16.mxu0 %v13285_v14  ;;  %v13375_v14 = vld [vmem:[%s13949_s23 + $0x22f4] ss:$8 sps:$4 sm:$0xff]  }
 0x410   : > { %8821 = vmatmul.mubr.bf16.vlgmr.msra.gmra.mrb[0].mxu1 %v13274_v15  ;;  %v13370_v15 = vld [vmem:[%s13949_s23 + $0xff0] ss:$8 sps:$4 sm:$0xff]  }
 0x411   : > { %9638 = vmatmul.mubr.bf16.vlgmr.msra.gmra.mrb[0].mxu0 %v13280_v16  ;;  %8832 = vmatpush1.bf16.msra.mxu1 %v13277_v17  ;;  %v13373_v16 = vld [vmem:[%s13949_s23 + $0x22f0] ss:$8 sps:$4 sm:$0xff]   ;;  %v13381_v17 = vld [vmem:[%s13949_s23 + $0x1004] ss:$8 sps:$4 sm:$0xff]  }
 0x412   : > { %9649 = vmatpush1.bf16.msra.mxu0 %v13283_v18  ;;  %8833 = vmatprep.subr.bf16.mxu1 %v13288_v19  ;;  %v13387_v18 = vld [vmem:[%s13949_s23 + $0x2304] ss:$8 sps:$4 sm:$0xff]  }
 0x413   : > { %9650 = vmatprep.subr.bf16.mxu0 %v13291_v20  ;;  %8863 = vmatprep.mubr.bf16.mxu1 %v13378_v21  ;;  %v13376_v19 = vld [vmem:[%s13951_s30 + $0x78] ss:$300 sps:$4 sm:$0xff]   ;;  %v13382_v20 = vld [vmem:[%s13951_s30 + $0x110] ss:$300 sps:$4 sm:$0xff]  }
 0x414   : > { %9680 = vmatprep.mubr.bf16.mxu0 %v13384_v22  ;;  %v13379_v21 = vld [vmem:[%s13949_s23 + $0x1000] ss:$8 sps:$4 sm:$0xff]  }
 0x415   : > { %8834 = vmatpush1.bf16.msra.mxu1 %v13286_v23  ;;  %v13385_v22 = vld [vmem:[%s13949_s23 + $0x2300] ss:$8 sps:$4 sm:$0xff]   ;;  %v13390_v23 = vld [vmem:[%s13949_s23 + $0x1014] ss:$8 sps:$4 sm:$0xff]  }
 0x416   : > { %9651 = vmatpush1.bf16.msra.mxu0 %v13289_v24  ;;  %8835 = vmatprep.subr.bf16.mxu1 %v13294_v25  ;;  %v13393_v24 = vld [vmem:[%s13949_s23 + $0x2314] ss:$8 sps:$4 sm:$0xff]  }
 0x417   : > { %9652 = vmatprep.subr.bf16.mxu0 %v13297_v26  ;;  %v13480_v25 = vld [vmem:[%s13951_s30 + $0x84] ss:$300 sps:$4 sm:$0xff]   ;;  %v13486_v26 = vld [vmem:[%s13951_s30 + $0x11c] ss:$300 sps:$4 sm:$0xff]  }
 0x419   : > { %8836 = vmatpush1.bf16.msra.mxu1 %v13292_v27  ;;  %v13388_v27 = vld [vmem:[%s13949_s23 + $0x1010] ss:$8 sps:$4 sm:$0xff]  }
 0x41a   : > { %9653 = vmatpush1.bf16.msra.mxu0 %v13295_v28  ;;  %8837 = vmatprep.subr.bf16.mxu1 %v13300_v29  ;;  %v13391_v28 = vld [vmem:[%s13949_s23 + $0x2310] ss:$8 sps:$4 sm:$0xff]   ;;  %v13396_v29 = vld [vmem:[%s13949_s23 + $0x1024] ss:$8 sps:$4 sm:$0xff]  }
 0x41b   : > { %9654 = vmatprep.subr.bf16.mxu0 %v13303_v30  ;;  %v13399_v30 = vld [vmem:[%s13949_s23 + $0x2324] ss:$8 sps:$4 sm:$0xff]  }
 0x41d   : > { %8838 = vmatpush1.bf16.msra.mxu1 %v13298_v31  ;;  %v13394_v31 = vld [vmem:[%s13949_s23 + $0x1020] ss:$8 sps:$4 sm:$0xff]  }
 0x41e   : > { %9655 = vmatpush1.bf16.msra.mxu0 %v13301_v32  ;;  %8839 = vmatprep.subr.bf16.mxu1 %v13306_v33  ;;  %v13397_v32 = vld [vmem:[%s13949_s23 + $0x2320] ss:$8 sps:$4 sm:$0xff]   ;;  %v13402_v33 = vld [vmem:[%s13949_s23 + $0x1034] ss:$8 sps:$4 sm:$0xff]  }
 0x41f   : > { %9656 = vmatprep.subr.bf16.mxu0 %v13309_v34  ;;  %v13405_v34 = vld [vmem:[%s13949_s23 + $0x2334] ss:$8 sps:$4 sm:$0xff]  }
 0x421   : > { %8840 = vmatpush1.bf16.msra.mxu1 %v13304_v35  ;;  %v13400_v35 = vld [vmem:[%s13949_s23 + $0x1030] ss:$8 sps:$4 sm:$0xff]  }
 0x422   : > { %9657 = vmatpush1.bf16.msra.mxu0 %v13307_v36  ;;  %8841 = vmatprep.subr.bf16.mxu1 %v13312_v37  ;;  %v13403_v36 = vld [vmem:[%s13949_s23 + $0x2330] ss:$8 sps:$4 sm:$0xff]   ;;  %v13408_v37 = vld [vmem:[%s13949_s23 + $0x1044] ss:$8 sps:$4 sm:$0xff]  }
 0x423   : > { %9658 = vmatprep.subr.bf16.mxu0 %v13315_v38  ;;  %v13411_v38 = vld [vmem:[%s13949_s23 + $0x2344] ss:$8 sps:$4 sm:$0xff]  }
 0x425   : > { %8842 = vmatpush1.bf16.msra.mxu1 %v13310_v39  ;;  %v13406_v39 = vld [vmem:[%s13949_s23 + $0x1040] ss:$8 sps:$4 sm:$0xff]  }
 0x426   : > { %9659 = vmatpush1.bf16.msra.mxu0 %v13313_v40  ;;  %8843 = vmatprep.subr.bf16.mxu1 %v13318_v41  ;;  %v13409_v40 = vld [vmem:[%s13949_s23 + $0x2340] ss:$8 sps:$4 sm:$0xff]   ;;  %v13414_v41 = vld [vmem:[%s13949_s23 + $0x1054] ss:$8 sps:$4 sm:$0xff]  }
 0x427   : > { %9660 = vmatprep.subr.bf16.mxu0 %v13321_v42  ;;  %v13417_v42 = vld [vmem:[%s13949_s23 + $0x2354] ss:$8 sps:$4 sm:$0xff]  }
 0x429   : > { %8844 = vmatpush1.bf16.msra.mxu1 %v13316_v43  ;;  %v13412_v43 = vld [vmem:[%s13949_s23 + $0x1050] ss:$8 sps:$4 sm:$0xff]  }
 0x42a   : > { %9661 = vmatpush1.bf16.msra.mxu0 %v13319_v44  ;;  %8845 = vmatprep.subr.bf16.mxu1 %v13324_v45  ;;  %v13415_v44 = vld [vmem:[%s13949_s23 + $0x2350] ss:$8 sps:$4 sm:$0xff]   ;;  %v13420_v45 = vld [vmem:[%s13949_s23 + $0x1064] ss:$8 sps:$4 sm:$0xff]  }
 0x42b   : > { %9662 = vmatprep.subr.bf16.mxu0 %v13327_v46  ;;  %v13423_v46 = vld [vmem:[%s13949_s23 + $0x2364] ss:$8 sps:$4 sm:$0xff]  }
 0x42d   : > { %8846 = vmatpush1.bf16.msra.mxu1 %v13322_v47  ;;  %v13418_v47 = vld [vmem:[%s13949_s23 + $0x1060] ss:$8 sps:$4 sm:$0xff]  }
 0x42e   : > { %9663 = vmatpush1.bf16.msra.mxu0 %v13325_v48  ;;  %8847 = vmatprep.subr.bf16.mxu1 %v13330_v49  ;;  %v13421_v48 = vld [vmem:[%s13949_s23 + $0x2360] ss:$8 sps:$4 sm:$0xff]   ;;  %v13426_v49 = vld [vmem:[%s13949_s23 + $0x1074] ss:$8 sps:$4 sm:$0xff]  }
 0x42f   : > { %9664 = vmatprep.subr.bf16.mxu0 %v13333_v50  ;;  %v13429_v50 = vld [vmem:[%s13949_s23 + $0x2374] ss:$8 sps:$4 sm:$0xff]  }
 0x431   : > { %8848 = vmatpush1.bf16.msra.mxu1 %v13328_v51  ;;  %v13424_v51 = vld [vmem:[%s13949_s23 + $0x1070] ss:$8 sps:$4 sm:$0xff]  }
 0x432   : > { %9665 = vmatpush1.bf16.msra.mxu0 %v13331_v52  ;;  %8849 = vmatprep.subr.bf16.mxu1 %v13336_v53  ;;  %v13427_v52 = vld [vmem:[%s13949_s23 + $0x2370] ss:$8 sps:$4 sm:$0xff]   ;;  %v13432_v53 = vld [vmem:[%s13949_s23 + $0x1084] ss:$8 sps:$4 sm:$0xff]  }
 0x433   : > { %9666 = vmatprep.subr.bf16.mxu0 %v13339_v54  ;;  %v13435_v54 = vld [vmem:[%s13949_s23 + $0x2384] ss:$8 sps:$4 sm:$0xff]  }
 0x435   : > { %8850 = vmatpush1.bf16.msra.mxu1 %v13334_v55  ;;  %v13430_v55 = vld [vmem:[%s13949_s23 + $0x1080] ss:$8 sps:$4 sm:$0xff]  }
 0x436   : > { %9667 = vmatpush1.bf16.msra.mxu0 %v13337_v56  ;;  %8851 = vmatprep.subr.bf16.mxu1 %v13342_v57  ;;  %v13433_v56 = vld [vmem:[%s13949_s23 + $0x2380] ss:$8 sps:$4 sm:$0xff]   ;;  %v13438_v57 = vld [vmem:[%s13949_s23 + $0x1094] ss:$8 sps:$4 sm:$0xff]  }
 0x437   : > { %9668 = vmatprep.subr.bf16.mxu0 %v13345_v58  ;;  %v13441_v58 = vld [vmem:[%s13949_s23 + $0x2394] ss:$8 sps:$4 sm:$0xff]  }
 0x439   : > { %8852 = vmatpush1.bf16.msra.mxu1 %v13340_v59  ;;  %v13436_v59 = vld [vmem:[%s13949_s23 + $0x1090] ss:$8 sps:$4 sm:$0xff]  }
 0x43a   : > { %9669 = vmatpush1.bf16.msra.mxu0 %v13343_v60  ;;  %8853 = vmatprep.subr.bf16.mxu1 %v13348_v61  ;;  %v13439_v60 = vld [vmem:[%s13949_s23 + $0x2390] ss:$8 sps:$4 sm:$0xff]   ;;  %v13444_v61 = vld [vmem:[%s13949_s23 + $0x10a4] ss:$8 sps:$4 sm:$0xff]  }
 0x43b   : > { %9670 = vmatprep.subr.bf16.mxu0 %v13351_v62  ;;  %v13447_v62 = vld [vmem:[%s13949_s23 + $0x23a4] ss:$8 sps:$4 sm:$0xff]  }
 0x43d   : > { %8854 = vmatpush1.bf16.msra.mxu1 %v13346_v63  ;;  %v13442_v63 = vld [vmem:[%s13949_s23 + $0x10a0] ss:$8 sps:$4 sm:$0xff]  }
 0x43e   : > { %9671 = vmatpush1.bf16.msra.mxu0 %v13349_v0  ;;  %8855 = vmatprep.subr.bf16.mxu1 %v13354_v1  ;;  %v13445_v0 = vld [vmem:[%s13949_s23 + $0x23a0] ss:$8 sps:$4 sm:$0xff]   ;;  %v13450_v1 = vld [vmem:[%s13949_s23 + $0x10b4] ss:$8 sps:$4 sm:$0xff]  }
 0x43f   : > { %9672 = vmatprep.subr.bf16.mxu0 %v13357_v2  ;;  %v13453_v2 = vld [vmem:[%s13949_s23 + $0x23b4] ss:$8 sps:$4 sm:$0xff]  }
 0x441   : > { %8856 = vmatpush1.bf16.msra.mxu1 %v13352_v3  ;;  %v13448_v3 = vld [vmem:[%s13949_s23 + $0x10b0] ss:$8 sps:$4 sm:$0xff]  }
 0x442   : > { %9673 = vmatpush1.bf16.msra.mxu0 %v13355_v4  ;;  %8857 = vmatprep.subr.bf16.mxu1 %v13360_v5  ;;  %v13451_v4 = vld [vmem:[%s13949_s23 + $0x23b0] ss:$8 sps:$4 sm:$0xff]   ;;  %v13456_v5 = vld [vmem:[%s13949_s23 + $0x10c4] ss:$8 sps:$4 sm:$0xff]  }
 0x443   : > { %9674 = vmatprep.subr.bf16.mxu0 %v13363_v6  ;;  %v13459_v6 = vld [vmem:[%s13949_s23 + $0x23c4] ss:$8 sps:$4 sm:$0xff]  }
 0x445   : > { %8858 = vmatpush1.bf16.msra.mxu1 %v13358_v7  ;;  %v13454_v7 = vld [vmem:[%s13949_s23 + $0x10c0] ss:$8 sps:$4 sm:$0xff]  }
 0x446   : > { %9675 = vmatpush1.bf16.msra.mxu0 %v13361_v8  ;;  %8859 = vmatprep.subr.bf16.mxu1 %v13366_v9  ;;  %v13457_v8 = vld [vmem:[%s13949_s23 + $0x23c0] ss:$8 sps:$4 sm:$0xff]   ;;  %v13462_v9 = vld [vmem:[%s13949_s23 + $0x10d4] ss:$8 sps:$4 sm:$0xff]  }
 0x447   : > { %9676 = vmatprep.subr.bf16.mxu0 %v13369_v10  ;;  %v13465_v10 = vld [vmem:[%s13949_s23 + $0x23d4] ss:$8 sps:$4 sm:$0xff]  }
 0x449   : > { %8860 = vmatpush1.bf16.msra.mxu1 %v13364_v11  ;;  %v13460_v11 = vld [vmem:[%s13949_s23 + $0x10d0] ss:$8 sps:$4 sm:$0xff]  }
 0x44a   : > { %9677 = vmatpush1.bf16.msra.mxu0 %v13367_v12  ;;  %8861 = vmatprep.subr.bf16.mxu1 %v13372_v13  ;;  %v13463_v12 = vld [vmem:[%s13949_s23 + $0x23d0] ss:$8 sps:$4 sm:$0xff]   ;;  %v13468_v13 = vld [vmem:[%s13949_s23 + $0x10e4] ss:$8 sps:$4 sm:$0xff]  }
 0x44b   : > { %9678 = vmatprep.subr.bf16.mxu0 %v13375_v14  ;;  %v13471_v14 = vld [vmem:[%s13949_s23 + $0x23e4] ss:$8 sps:$4 sm:$0xff]  }
 0x44d   : > { %8862 = vmatpush1.bf16.msra.mxu1 %v13370_v15  ;;  %v13466_v15 = vld [vmem:[%s13949_s23 + $0x10e0] ss:$8 sps:$4 sm:$0xff]  }
 0x44e   : > { %9679 = vmatpush1.bf16.msra.mxu0 %v13373_v16  ;;  %8874 = vmatprep.subr.bf16.mxu1 %v13381_v17  ;;  %v13469_v16 = vld [vmem:[%s13949_s23 + $0x23e0] ss:$8 sps:$4 sm:$0xff]   ;;  %v13474_v17 = vld [vmem:[%s13949_s23 + $0x10f4] ss:$8 sps:$4 sm:$0xff]  }
 0x44f   : > { %9691 = vmatprep.subr.bf16.mxu0 %v13387_v18  ;;  %v13477_v18 = vld [vmem:[%s13949_s23 + $0x23f4] ss:$8 sps:$4 sm:$0xff]  }
 0x450   : > { %8864 = vmatmul.mubr.bf16.vlgmr.msra.gmra.mrb[0].mxu1 %v13376_v19  ;;  %v13472_v19 = vld [vmem:[%s13949_s23 + $0x10f0] ss:$8 sps:$4 sm:$0xff]  }
 0x451   : > { %9681 = vmatmul.mubr.bf16.vlgmr.msra.gmra.mrb[0].mxu0 %v13382_v20  ;;  %8875 = vmatpush1.bf16.msra.mxu1 %v13379_v21  ;;  %v13475_v20 = vld [vmem:[%s13949_s23 + $0x23f0] ss:$8 sps:$4 sm:$0xff]   ;;  %v13483_v21 = vld [vmem:[%s13949_s23 + $0x1104] ss:$8 sps:$4 sm:$0xff]  }
 0x452   : > { %9692 = vmatpush1.bf16.msra.mxu0 %v13385_v22  ;;  %8876 = vmatprep.subr.bf16.mxu1 %v13390_v23  ;;  %v13489_v22 = vld [vmem:[%s13949_s23 + $0x2404] ss:$8 sps:$4 sm:$0xff]  }
 0x453   : > { %9693 = vmatprep.subr.bf16.mxu0 %v13393_v24  ;;  %8906 = vmatprep.mubr.bf16.mxu1 %v13480_v25  ;;  %v13478_v23 = vld [vmem:[%s13951_s30 + $0x80] ss:$300 sps:$4 sm:$0xff]   ;;  %v13484_v24 = vld [vmem:[%s13951_s30 + $0x118] ss:$300 sps:$4 sm:$0xff]  }
 0x454   : > { %9723 = vmatprep.mubr.bf16.mxu0 %v13486_v26  ;;  %v13481_v25 = vld [vmem:[%s13949_s23 + $0x1100] ss:$8 sps:$4 sm:$0xff]  }
 0x455   : > { %8877 = vmatpush1.bf16.msra.mxu1 %v13388_v27  ;;  %v13487_v26 = vld [vmem:[%s13949_s23 + $0x2400] ss:$8 sps:$4 sm:$0xff]   ;;  %v13492_v27 = vld [vmem:[%s13949_s23 + $0x1114] ss:$8 sps:$4 sm:$0xff]  }
 0x456   : > { %9694 = vmatpush1.bf16.msra.mxu0 %v13391_v28  ;;  %8878 = vmatprep.subr.bf16.mxu1 %v13396_v29  ;;  %v13495_v28 = vld [vmem:[%s13949_s23 + $0x2414] ss:$8 sps:$4 sm:$0xff]   ;;  %v13582_v29 = vld [vmem:[%s13951_s30 + $0x8c] ss:$300 sps:$4 sm:$0xff]  }
 0x457   : > { %9695 = vmatprep.subr.bf16.mxu0 %v13399_v30  ;;  %v13588_v30 = vld [vmem:[%s13951_s30 + $0x124] ss:$300 sps:$4 sm:$0xff]  }
 0x459   : > { %8879 = vmatpush1.bf16.msra.mxu1 %v13394_v31  ;;  %v13490_v31 = vld [vmem:[%s13949_s23 + $0x1110] ss:$8 sps:$4 sm:$0xff]  }
 0x45a   : > { %9696 = vmatpush1.bf16.msra.mxu0 %v13397_v32  ;;  %8880 = vmatprep.subr.bf16.mxu1 %v13402_v33  ;;  %v13493_v32 = vld [vmem:[%s13949_s23 + $0x2410] ss:$8 sps:$4 sm:$0xff]   ;;  %v13498_v33 = vld [vmem:[%s13949_s23 + $0x1124] ss:$8 sps:$4 sm:$0xff]  }
 0x45b   : > { %9697 = vmatprep.subr.bf16.mxu0 %v13405_v34  ;;  %v13501_v34 = vld [vmem:[%s13949_s23 + $0x2424] ss:$8 sps:$4 sm:$0xff]  }
 0x45d   : > { %8881 = vmatpush1.bf16.msra.mxu1 %v13400_v35  ;;  %v13496_v35 = vld [vmem:[%s13949_s23 + $0x1120] ss:$8 sps:$4 sm:$0xff]  }
 0x45e   : > { %9698 = vmatpush1.bf16.msra.mxu0 %v13403_v36  ;;  %8882 = vmatprep.subr.bf16.mxu1 %v13408_v37  ;;  %v13499_v36 = vld [vmem:[%s13949_s23 + $0x2420] ss:$8 sps:$4 sm:$0xff]   ;;  %v13504_v37 = vld [vmem:[%s13949_s23 + $0x1134] ss:$8 sps:$4 sm:$0xff]  }
 0x45f   : > { %9699 = vmatprep.subr.bf16.mxu0 %v13411_v38  ;;  %v13507_v38 = vld [vmem:[%s13949_s23 + $0x2434] ss:$8 sps:$4 sm:$0xff]  }
 0x461   : > { %8883 = vmatpush1.bf16.msra.mxu1 %v13406_v39  ;;  %v13502_v39 = vld [vmem:[%s13949_s23 + $0x1130] ss:$8 sps:$4 sm:$0xff]  }
 0x462   : > { %9700 = vmatpush1.bf16.msra.mxu0 %v13409_v40  ;;  %8884 = vmatprep.subr.bf16.mxu1 %v13414_v41  ;;  %v13505_v40 = vld [vmem:[%s13949_s23 + $0x2430] ss:$8 sps:$4 sm:$0xff]   ;;  %v13510_v41 = vld [vmem:[%s13949_s23 + $0x1144] ss:$8 sps:$4 sm:$0xff]  }
 0x463   : > { %9701 = vmatprep.subr.bf16.mxu0 %v13417_v42  ;;  %v13513_v42 = vld [vmem:[%s13949_s23 + $0x2444] ss:$8 sps:$4 sm:$0xff]  }
 0x465   : > { %8885 = vmatpush1.bf16.msra.mxu1 %v13412_v43  ;;  %v13508_v43 = vld [vmem:[%s13949_s23 + $0x1140] ss:$8 sps:$4 sm:$0xff]  }
 0x466   : > { %9702 = vmatpush1.bf16.msra.mxu0 %v13415_v44  ;;  %8886 = vmatprep.subr.bf16.mxu1 %v13420_v45  ;;  %v13511_v44 = vld [vmem:[%s13949_s23 + $0x2440] ss:$8 sps:$4 sm:$0xff]   ;;  %v13516_v45 = vld [vmem:[%s13949_s23 + $0x1154] ss:$8 sps:$4 sm:$0xff]  }
 0x467   : > { %9703 = vmatprep.subr.bf16.mxu0 %v13423_v46  ;;  %v13519_v46 = vld [vmem:[%s13949_s23 + $0x2454] ss:$8 sps:$4 sm:$0xff]  }
 0x469   : > { %8887 = vmatpush1.bf16.msra.mxu1 %v13418_v47  ;;  %v13514_v47 = vld [vmem:[%s13949_s23 + $0x1150] ss:$8 sps:$4 sm:$0xff]  }
 0x46a   : > { %9704 = vmatpush1.bf16.msra.mxu0 %v13421_v48  ;;  %8888 = vmatprep.subr.bf16.mxu1 %v13426_v49  ;;  %v13517_v48 = vld [vmem:[%s13949_s23 + $0x2450] ss:$8 sps:$4 sm:$0xff]   ;;  %v13522_v49 = vld [vmem:[%s13949_s23 + $0x1164] ss:$8 sps:$4 sm:$0xff]  }
 0x46b   : > { %9705 = vmatprep.subr.bf16.mxu0 %v13429_v50  ;;  %v13525_v50 = vld [vmem:[%s13949_s23 + $0x2464] ss:$8 sps:$4 sm:$0xff]  }
 0x46d   : > { %8889 = vmatpush1.bf16.msra.mxu1 %v13424_v51  ;;  %v13520_v51 = vld [vmem:[%s13949_s23 + $0x1160] ss:$8 sps:$4 sm:$0xff]  }
 0x46e   : > { %9706 = vmatpush1.bf16.msra.mxu0 %v13427_v52  ;;  %8890 = vmatprep.subr.bf16.mxu1 %v13432_v53  ;;  %v13523_v52 = vld [vmem:[%s13949_s23 + $0x2460] ss:$8 sps:$4 sm:$0xff]   ;;  %v13528_v53 = vld [vmem:[%s13949_s23 + $0x1174] ss:$8 sps:$4 sm:$0xff]  }
 0x46f   : > { %9707 = vmatprep.subr.bf16.mxu0 %v13435_v54  ;;  %v13531_v54 = vld [vmem:[%s13949_s23 + $0x2474] ss:$8 sps:$4 sm:$0xff]  }
 0x471   : > { %8891 = vmatpush1.bf16.msra.mxu1 %v13430_v55  ;;  %v13526_v55 = vld [vmem:[%s13949_s23 + $0x1170] ss:$8 sps:$4 sm:$0xff]  }
 0x472   : > { %9708 = vmatpush1.bf16.msra.mxu0 %v13433_v56  ;;  %8892 = vmatprep.subr.bf16.mxu1 %v13438_v57  ;;  %v13529_v56 = vld [vmem:[%s13949_s23 + $0x2470] ss:$8 sps:$4 sm:$0xff]   ;;  %v13534_v57 = vld [vmem:[%s13949_s23 + $0x1184] ss:$8 sps:$4 sm:$0xff]  }
 0x473   : > { %9709 = vmatprep.subr.bf16.mxu0 %v13441_v58  ;;  %v13537_v58 = vld [vmem:[%s13949_s23 + $0x2484] ss:$8 sps:$4 sm:$0xff]  }
 0x475   : > { %8893 = vmatpush1.bf16.msra.mxu1 %v13436_v59  ;;  %v13532_v59 = vld [vmem:[%s13949_s23 + $0x1180] ss:$8 sps:$4 sm:$0xff]  }
 0x476   : > { %9710 = vmatpush1.bf16.msra.mxu0 %v13439_v60  ;;  %8894 = vmatprep.subr.bf16.mxu1 %v13444_v61  ;;  %v13535_v60 = vld [vmem:[%s13949_s23 + $0x2480] ss:$8 sps:$4 sm:$0xff]   ;;  %v13540_v61 = vld [vmem:[%s13949_s23 + $0x1194] ss:$8 sps:$4 sm:$0xff]  }
 0x477   : > { %9711 = vmatprep.subr.bf16.mxu0 %v13447_v62  ;;  %v13543_v62 = vld [vmem:[%s13949_s23 + $0x2494] ss:$8 sps:$4 sm:$0xff]  }
 0x479   : > { %8895 = vmatpush1.bf16.msra.mxu1 %v13442_v63  ;;  %v13538_v63 = vld [vmem:[%s13949_s23 + $0x1190] ss:$8 sps:$4 sm:$0xff]  }
 0x47a   : > { %9712 = vmatpush1.bf16.msra.mxu0 %v13445_v0  ;;  %8896 = vmatprep.subr.bf16.mxu1 %v13450_v1  ;;  %v13541_v0 = vld [vmem:[%s13949_s23 + $0x2490] ss:$8 sps:$4 sm:$0xff]   ;;  %v13546_v1 = vld [vmem:[%s13949_s23 + $0x11a4] ss:$8 sps:$4 sm:$0xff]  }
 0x47b   : > { %9713 = vmatprep.subr.bf16.mxu0 %v13453_v2  ;;  %v13549_v2 = vld [vmem:[%s13949_s23 + $0x24a4] ss:$8 sps:$4 sm:$0xff]  }
 0x47d   : > { %8897 = vmatpush1.bf16.msra.mxu1 %v13448_v3  ;;  %v13544_v3 = vld [vmem:[%s13949_s23 + $0x11a0] ss:$8 sps:$4 sm:$0xff]  }
 0x47e   : > { %9714 = vmatpush1.bf16.msra.mxu0 %v13451_v4  ;;  %8898 = vmatprep.subr.bf16.mxu1 %v13456_v5  ;;  %v13547_v4 = vld [vmem:[%s13949_s23 + $0x24a0] ss:$8 sps:$4 sm:$0xff]   ;;  %v13552_v5 = vld [vmem:[%s13949_s23 + $0x11b4] ss:$8 sps:$4 sm:$0xff]  }
 0x47f   : > { %9715 = vmatprep.subr.bf16.mxu0 %v13459_v6  ;;  %v13555_v6 = vld [vmem:[%s13949_s23 + $0x24b4] ss:$8 sps:$4 sm:$0xff]  }
 0x481   : > { %8899 = vmatpush1.bf16.msra.mxu1 %v13454_v7  ;;  %v13550_v7 = vld [vmem:[%s13949_s23 + $0x11b0] ss:$8 sps:$4 sm:$0xff]  }
 0x482   : > { %9716 = vmatpush1.bf16.msra.mxu0 %v13457_v8  ;;  %8900 = vmatprep.subr.bf16.mxu1 %v13462_v9  ;;  %v13553_v8 = vld [vmem:[%s13949_s23 + $0x24b0] ss:$8 sps:$4 sm:$0xff]   ;;  %v13558_v9 = vld [vmem:[%s13949_s23 + $0x11c4] ss:$8 sps:$4 sm:$0xff]  }
 0x483   : > { %9717 = vmatprep.subr.bf16.mxu0 %v13465_v10  ;;  %v13561_v10 = vld [vmem:[%s13949_s23 + $0x24c4] ss:$8 sps:$4 sm:$0xff]  }
 0x485   : > { %8901 = vmatpush1.bf16.msra.mxu1 %v13460_v11  ;;  %v13556_v11 = vld [vmem:[%s13949_s23 + $0x11c0] ss:$8 sps:$4 sm:$0xff]  }
 0x486   : > { %9718 = vmatpush1.bf16.msra.mxu0 %v13463_v12  ;;  %8902 = vmatprep.subr.bf16.mxu1 %v13468_v13  ;;  %v13559_v12 = vld [vmem:[%s13949_s23 + $0x24c0] ss:$8 sps:$4 sm:$0xff]   ;;  %v13564_v13 = vld [vmem:[%s13949_s23 + $0x11d4] ss:$8 sps:$4 sm:$0xff]  }
 0x487   : > { %9719 = vmatprep.subr.bf16.mxu0 %v13471_v14  ;;  %v13567_v14 = vld [vmem:[%s13949_s23 + $0x24d4] ss:$8 sps:$4 sm:$0xff]  }
 0x489   : > { %8903 = vmatpush1.bf16.msra.mxu1 %v13466_v15  ;;  %v13562_v15 = vld [vmem:[%s13949_s23 + $0x11d0] ss:$8 sps:$4 sm:$0xff]  }
 0x48a   : > { %9720 = vmatpush1.bf16.msra.mxu0 %v13469_v16  ;;  %8904 = vmatprep.subr.bf16.mxu1 %v13474_v17  ;;  %v13565_v16 = vld [vmem:[%s13949_s23 + $0x24d0] ss:$8 sps:$4 sm:$0xff]   ;;  %v13570_v17 = vld [vmem:[%s13949_s23 + $0x11e4] ss:$8 sps:$4 sm:$0xff]  }
 0x48b   : > { %9721 = vmatprep.subr.bf16.mxu0 %v13477_v18  ;;  %v13573_v18 = vld [vmem:[%s13949_s23 + $0x24e4] ss:$8 sps:$4 sm:$0xff]  }
 0x48d   : > { %8905 = vmatpush1.bf16.msra.mxu1 %v13472_v19  ;;  %v13568_v19 = vld [vmem:[%s13949_s23 + $0x11e0] ss:$8 sps:$4 sm:$0xff]  }
 0x48e   : > { %9722 = vmatpush1.bf16.msra.mxu0 %v13475_v20  ;;  %8917 = vmatprep.subr.bf16.mxu1 %v13483_v21  ;;  %v13571_v20 = vld [vmem:[%s13949_s23 + $0x24e0] ss:$8 sps:$4 sm:$0xff]   ;;  %v13576_v21 = vld [vmem:[%s13949_s23 + $0x11f4] ss:$8 sps:$4 sm:$0xff]  }
 0x48f   : > { %9734 = vmatprep.subr.bf16.mxu0 %v13489_v22  ;;  %v13579_v22 = vld [vmem:[%s13949_s23 + $0x24f4] ss:$8 sps:$4 sm:$0xff]  }
 0x490   : > { %8907 = vmatmul.mubr.bf16.vlgmr.msra.gmra.mrb[0].mxu1 %v13478_v23  ;;  %v13574_v23 = vld [vmem:[%s13949_s23 + $0x11f0] ss:$8 sps:$4 sm:$0xff]  }
 0x491   : > { %9724 = vmatmul.mubr.bf16.vlgmr.msra.gmra.mrb[0].mxu0 %v13484_v24  ;;  %8918 = vmatpush1.bf16.msra.mxu1 %v13481_v25  ;;  %v13577_v24 = vld [vmem:[%s13949_s23 + $0x24f0] ss:$8 sps:$4 sm:$0xff]   ;;  %v13585_v25 = vld [vmem:[%s13949_s23 + $0x1204] ss:$8 sps:$4 sm:$0xff]  }
 0x492   : > { %9735 = vmatpush1.bf16.msra.mxu0 %v13487_v26  ;;  %8919 = vmatprep.subr.bf16.mxu1 %v13492_v27  ;;  %v13591_v26 = vld [vmem:[%s13949_s23 + $0x2504] ss:$8 sps:$4 sm:$0xff]  }
 0x493   : > { %9736 = vmatprep.subr.bf16.mxu0 %v13495_v28  ;;  %8949 = vmatprep.mubr.bf16.mxu1 %v13582_v29  ;;  %v13580_v27 = vld [vmem:[%s13951_s30 + $0x88] ss:$300 sps:$4 sm:$0xff]   ;;  %v13586_v28 = vld [vmem:[%s13951_s30 + $0x120] ss:$300 sps:$4 sm:$0xff]  }
 0x494   : > { %9766 = vmatprep.mubr.bf16.mxu0 %v13588_v30  ;;  %v13583_v29 = vld [vmem:[%s13949_s23 + $0x1200] ss:$8 sps:$4 sm:$0xff]  }
 0x495   : > { %8920 = vmatpush1.bf16.msra.mxu1 %v13490_v31  ;;  %v13589_v30 = vld [vmem:[%s13949_s23 + $0x2500] ss:$8 sps:$4 sm:$0xff]   ;;  %v13594_v31 = vld [vmem:[%s13949_s23 + $0x1214] ss:$8 sps:$4 sm:$0xff]  }
 0x496   : > { %9737 = vmatpush1.bf16.msra.mxu0 %v13493_v32  ;;  %8921 = vmatprep.subr.bf16.mxu1 %v13498_v33  ;;  %v13597_v32 = vld [vmem:[%s13949_s23 + $0x2514] ss:$8 sps:$4 sm:$0xff]  }
 0x497   : > { %9738 = vmatprep.subr.bf16.mxu0 %v13501_v34  ;;  %v13661_v33 = vld [vmem:[%s13951_s30 + $0x94] ss:$300 sps:$4 sm:$0xff]  }
 0x498   : > { %v13592_v34 = vld [vmem:[%s13949_s23 + $0x1210] ss:$8 sps:$4 sm:$0xff]  }
 0x499   : > { %8922 = vmatpush1.bf16.msra.mxu1 %v13496_v35  ;;  %v13595_v35 = vld [vmem:[%s13949_s23 + $0x2510] ss:$8 sps:$4 sm:$0xff]  }
 0x49a   : > { %9739 = vmatpush1.bf16.msra.mxu0 %v13499_v36  ;;  %8923 = vmatprep.subr.bf16.mxu1 %v13504_v37  ;;  %v13600_v36 = vld [vmem:[%s13949_s23 + $0x1224] ss:$8 sps:$4 sm:$0xff]  }
 0x49b   : > { %9740 = vmatprep.subr.bf16.mxu0 %v13507_v38  ;;  %v13603_v37 = vld [vmem:[%s13949_s23 + $0x2524] ss:$8 sps:$4 sm:$0xff]   ;;  %v13702_v38 = vmov 0  }
 0x49d   : > { %8924 = vmatpush1.bf16.msra.mxu1 %v13502_v39  ;;  %v13598_v39 = vld [vmem:[%s13949_s23 + $0x1220] ss:$8 sps:$4 sm:$0xff]  }
 0x49e   : > { %9741 = vmatpush1.bf16.msra.mxu0 %v13505_v40  ;;  %8925 = vmatprep.subr.bf16.mxu1 %v13510_v41  ;;  %v13601_v40 = vld [vmem:[%s13949_s23 + $0x2520] ss:$8 sps:$4 sm:$0xff]   ;;  %v13606_v41 = vld [vmem:[%s13949_s23 + $0x1234] ss:$8 sps:$4 sm:$0xff]  }
 0x49f   : > { %9742 = vmatprep.subr.bf16.mxu0 %v13513_v42  ;;  %v13609_v42 = vld [vmem:[%s13949_s23 + $0x2534] ss:$8 sps:$4 sm:$0xff]  }
 0x4a1   : > { %8926 = vmatpush1.bf16.msra.mxu1 %v13508_v43  ;;  %v13604_v43 = vld [vmem:[%s13949_s23 + $0x1230] ss:$8 sps:$4 sm:$0xff]  }
 0x4a2   : > { %9743 = vmatpush1.bf16.msra.mxu0 %v13511_v44  ;;  %8927 = vmatprep.subr.bf16.mxu1 %v13516_v45  ;;  %v13607_v44 = vld [vmem:[%s13949_s23 + $0x2530] ss:$8 sps:$4 sm:$0xff]   ;;  %v13612_v45 = vld [vmem:[%s13949_s23 + $0x1244] ss:$8 sps:$4 sm:$0xff]  }
 0x4a3   : > { %9744 = vmatprep.subr.bf16.mxu0 %v13519_v46  ;;  %v13615_v46 = vld [vmem:[%s13949_s23 + $0x2544] ss:$8 sps:$4 sm:$0xff]  }
 0x4a5   : > { %8928 = vmatpush1.bf16.msra.mxu1 %v13514_v47  ;;  %v13610_v47 = vld [vmem:[%s13949_s23 + $0x1240] ss:$8 sps:$4 sm:$0xff]  }
 0x4a6   : > { %9745 = vmatpush1.bf16.msra.mxu0 %v13517_v48  ;;  %8929 = vmatprep.subr.bf16.mxu1 %v13522_v49  ;;  %v13613_v48 = vld [vmem:[%s13949_s23 + $0x2540] ss:$8 sps:$4 sm:$0xff]   ;;  %v13618_v49 = vld [vmem:[%s13949_s23 + $0x1254] ss:$8 sps:$4 sm:$0xff]  }
 0x4a7   : > { %9746 = vmatprep.subr.bf16.mxu0 %v13525_v50  ;;  %v13621_v50 = vld [vmem:[%s13949_s23 + $0x2554] ss:$8 sps:$4 sm:$0xff]  }
 0x4a9   : > { %8930 = vmatpush1.bf16.msra.mxu1 %v13520_v51  ;;  %v13616_v51 = vld [vmem:[%s13949_s23 + $0x1250] ss:$8 sps:$4 sm:$0xff]  }
 0x4aa   : > { %9747 = vmatpush1.bf16.msra.mxu0 %v13523_v52  ;;  %8931 = vmatprep.subr.bf16.mxu1 %v13528_v53  ;;  %v13619_v52 = vld [vmem:[%s13949_s23 + $0x2550] ss:$8 sps:$4 sm:$0xff]   ;;  %v13624_v53 = vld [vmem:[%s13949_s23 + $0x1264] ss:$8 sps:$4 sm:$0xff]  }
 0x4ab   : > { %9748 = vmatprep.subr.bf16.mxu0 %v13531_v54  ;;  %v13627_v54 = vld [vmem:[%s13949_s23 + $0x2564] ss:$8 sps:$4 sm:$0xff]  }
 0x4ad   : > { %8932 = vmatpush1.bf16.msra.mxu1 %v13526_v55  ;;  %v13622_v55 = vld [vmem:[%s13949_s23 + $0x1260] ss:$8 sps:$4 sm:$0xff]  }
 0x4ae   : > { %9749 = vmatpush1.bf16.msra.mxu0 %v13529_v56  ;;  %8933 = vmatprep.subr.bf16.mxu1 %v13534_v57  ;;  %v13625_v56 = vld [vmem:[%s13949_s23 + $0x2560] ss:$8 sps:$4 sm:$0xff]   ;;  %v13630_v57 = vld [vmem:[%s13949_s23 + $0x1274] ss:$8 sps:$4 sm:$0xff]  }
 0x4af   : > { %9750 = vmatprep.subr.bf16.mxu0 %v13537_v58  ;;  %v13633_v58 = vld [vmem:[%s13949_s23 + $0x2574] ss:$8 sps:$4 sm:$0xff]  }
 0x4b1   : > { %8934 = vmatpush1.bf16.msra.mxu1 %v13532_v59  ;;  %v13628_v59 = vld [vmem:[%s13949_s23 + $0x1270] ss:$8 sps:$4 sm:$0xff]  }
 0x4b2   : > { %9751 = vmatpush1.bf16.msra.mxu0 %v13535_v60  ;;  %8935 = vmatprep.subr.bf16.mxu1 %v13540_v61  ;;  %v13631_v60 = vld [vmem:[%s13949_s23 + $0x2570] ss:$8 sps:$4 sm:$0xff]   ;;  %v13636_v61 = vld [vmem:[%s13949_s23 + $0x1284] ss:$8 sps:$4 sm:$0xff]  }
 0x4b3   : > { %9752 = vmatprep.subr.bf16.mxu0 %v13543_v62  ;;  %v13637_v62 = vld [vmem:[%s13951_s30 + $0x128] ss:$300 sps:$4 sm:$0xff]  }
 0x4b5   : > { %8936 = vmatpush1.bf16.msra.mxu1 %v13538_v63  ;;  %v13634_v63 = vld [vmem:[%s13949_s23 + $0x1280] ss:$8 sps:$4 sm:$0xff]  }
 0x4b6   : > { %9753 = vmatpush1.bf16.msra.mxu0 %v13541_v0  ;;  %8937 = vmatprep.subr.bf16.mxu1 %v13546_v1  ;;  %v13640_v0 = vld [vmem:[%s13949_s23 + $0x1294] ss:$8 sps:$4 sm:$0xff]   ;;  %v13638_v1 = vld [vmem:[%s13949_s23 + $0x1290] ss:$8 sps:$4 sm:$0xff]  }
 0x4b7   : > { %9754 = vmatprep.subr.bf16.mxu0 %v13549_v2  ;;  %v13643_v2 = vld [vmem:[%s13949_s23 + $0x12a4] ss:$8 sps:$4 sm:$0xff]  }
 0x4b9   : > { %8938 = vmatpush1.bf16.msra.mxu1 %v13544_v3  ;;  %v13641_v3 = vld [vmem:[%s13949_s23 + $0x12a0] ss:$8 sps:$4 sm:$0xff]  }
 0x4ba   : > { %9755 = vmatpush1.bf16.msra.mxu0 %v13547_v4  ;;  %8939 = vmatprep.subr.bf16.mxu1 %v13552_v5  ;;  %v13646_v4 = vld [vmem:[%s13949_s23 + $0x12b4] ss:$8 sps:$4 sm:$0xff]   ;;  %v13644_v5 = vld [vmem:[%s13949_s23 + $0x12b0] ss:$8 sps:$4 sm:$0xff]  }
 0x4bb   : > { %9756 = vmatprep.subr.bf16.mxu0 %v13555_v6  ;;  %v13649_v6 = vld [vmem:[%s13949_s23 + $0x12c4] ss:$8 sps:$4 sm:$0xff]  }
 0x4bd   : > { %8940 = vmatpush1.bf16.msra.mxu1 %v13550_v7  ;;  %v13647_v7 = vld [vmem:[%s13949_s23 + $0x12c0] ss:$8 sps:$4 sm:$0xff]  }
 0x4be   : > { %9757 = vmatpush1.bf16.msra.mxu0 %v13553_v8  ;;  %8941 = vmatprep.subr.bf16.mxu1 %v13558_v9  ;;  %v13652_v8 = vld [vmem:[%s13949_s23 + $0x12d4] ss:$8 sps:$4 sm:$0xff]   ;;  %v13650_v9 = vld [vmem:[%s13949_s23 + $0x12d0] ss:$8 sps:$4 sm:$0xff]  }
 0x4bf   : > { %9758 = vmatprep.subr.bf16.mxu0 %v13561_v10  ;;  %v13655_v10 = vld [vmem:[%s13949_s23 + $0x12e4] ss:$8 sps:$4 sm:$0xff]  }
 0x4c1   : > { %8942 = vmatpush1.bf16.msra.mxu1 %v13556_v11  ;;  %v13653_v11 = vld [vmem:[%s13949_s23 + $0x12e0] ss:$8 sps:$4 sm:$0xff]  }
 0x4c2   : > { %9759 = vmatpush1.bf16.msra.mxu0 %v13559_v12  ;;  %8943 = vmatprep.subr.bf16.mxu1 %v13564_v13  ;;  %v13658_v12 = vld [vmem:[%s13949_s23 + $0x12f4] ss:$8 sps:$4 sm:$0xff]   ;;  %v13656_v13 = vld [vmem:[%s13949_s23 + $0x12f0] ss:$8 sps:$4 sm:$0xff]  }
 0x4c3   : > { %9760 = vmatprep.subr.bf16.mxu0 %v13567_v14  ;;  %v13659_v14 = vld [vmem:[%s13951_s30 + $0x90] ss:$300 sps:$4 sm:$0xff]  }
 0x4c5   : > { %8944 = vmatpush1.bf16.msra.mxu1 %v13562_v15 }
 0x4c6   : > { %9761 = vmatpush1.bf16.msra.mxu0 %v13565_v16  ;;  %8945 = vmatprep.subr.bf16.mxu1 %v13570_v17 }
 0x4c7   : > { %9762 = vmatprep.subr.bf16.mxu0 %v13573_v18 }
 0x4c9   : > { %8946 = vmatpush1.bf16.msra.mxu1 %v13568_v19  ;;  %v530_v19 = vld [vmem:[#allocation2] sm:$0xff] }
 0x4ca   : > { %9763 = vmatpush1.bf16.msra.mxu0 %v13571_v20  ;;  %8947 = vmatprep.subr.bf16.mxu1 %v13576_v21 }
 0x4cb   : > { %9764 = vmatprep.subr.bf16.mxu0 %v13579_v22  ;;  %v531_v22 = vld [vmem:[#allocation2 + $0x8] sm:$0xff] }
 0x4cd   : > { %8948 = vmatpush1.bf16.msra.mxu1 %v13574_v23 }
 0x4ce   : > { %9765 = vmatpush1.bf16.msra.mxu0 %v13577_v24  ;;  %8960 = vmatprep.subr.bf16.mxu1 %v13585_v25  ;;  %v532_v25 = vld [vmem:[#allocation2 + $0x10] sm:$0xff] }
 0x4cf   : > { %9777 = vmatprep.subr.bf16.mxu0 %v13591_v26 }
 0x4d0   : > { %8950 = vmatmul.mubr.bf16.vlgmr.msra.gmra.mrb[0].mxu1 %v13580_v27 }
 0x4d1   : > { %9767 = vmatmul.mubr.bf16.vlgmr.msra.gmra.mrb[0].mxu0 %v13586_v28  ;;  %8961 = vmatpush1.bf16.msra.mxu1 %v13583_v29  ;;  %v533_v29 = vld [vmem:[#allocation2 + $0x18] sm:$0xff] }
 0x4d2   : > { %9778 = vmatpush1.bf16.msra.mxu0 %v13589_v30  ;;  %8962 = vmatprep.subr.bf16.mxu1 %v13594_v31 }
 0x4d3   : > { %9779 = vmatprep.subr.bf16.mxu0 %v13597_v32  ;;  %9809 = vmatprep.mubr.bf16.mxu0 %v13702_v38 }
 0x4d4   : > { %8992 = vmatprep.mubr.bf16.mxu1 %v13661_v33 }
 0x4d5   : > { %8963 = vmatpush1.bf16.msra.mxu1 %v13592_v34 }
 0x4d6   : > { %9780 = vmatpush1.bf16.msra.mxu0 %v13595_v35  ;;  %8964 = vmatprep.subr.bf16.mxu1 %v13600_v36  ;;  %v9856_v35 = vld [vmem:[%s15383_s3 + $0x80] sm:$0xff] (!%p11433_p11)  ;;  %v9857_v36 = vld [vmem:[%s15383_s3 + $0x88] sm:$0xff] (!%p11433_p11) }
 0x4d7   : > { %9781 = vmatprep.subr.bf16.mxu0 %v13603_v37  ;;  %v9840_v37 = vld [vmem:[%s15383_s3] sm:$0xff] (!%p11433_p11)  ;;  %v11511_v38 = vpack.c.bf16 (!%p11433_p11), %v9857_v36, %v9856_v35  ;;  %v9962_v36 = vld [vmem:[%s15385_s5 + $0x30] sm:$0xff] (!%p11433_p11) }
 0x4d9   : > { %8965 = vmatpush1.bf16.msra.mxu1 %v13598_v39  ;;  %v9841_v39 = vld [vmem:[%s15383_s3 + $0x8] sm:$0xff] (!%p11433_p11) }
 0x4da   : > { %9782 = vmatpush1.bf16.msra.mxu0 %v13601_v40  ;;  %8966 = vmatprep.subr.bf16.mxu1 %v13606_v41  ;;  %v9858_v40 = vld [vmem:[%s15383_s3 + $0x90] sm:$0xff] (!%p11433_p11)  ;;  %v9859_v41 = vld [vmem:[%s15383_s3 + $0x98] sm:$0xff] (!%p11433_p11) }
 0x4db   : > { %9783 = vmatprep.subr.bf16.mxu0 %v13609_v42  ;;  %v11513_v42 = vpack.c.bf16 (!%p11433_p11), %v9841_v39, %v9840_v37  ;;  %v9963_v37 = vld [vmem:[%s15385_s5 + $0x38] sm:$0xff] (!%p11433_p11) }
 0x4dd   : > { %8967 = vmatpush1.bf16.msra.mxu1 %v13604_v43  ;;  %v11515_v43 = vpack.c.bf16 (!%p11433_p11), %v9859_v41, %v9858_v40  ;;  %v11434_v41 = vld [vmem:[%s15384_s4] ss:$0 sm:$0xff] (!%p11433_p11) }
 0x4de   : > { %9784 = vmatpush1.bf16.msra.mxu0 %v13607_v44  ;;  %8968 = vmatprep.subr.bf16.mxu1 %v13612_v45  ;;  %v9842_v44 = vld [vmem:[%s15383_s3 + $0x10] sm:$0xff] (!%p11433_p11)  ;;  %v9843_v45 = vld [vmem:[%s15383_s3 + $0x18] sm:$0xff] (!%p11433_p11) }
 0x4df   : > { %9785 = vmatprep.subr.bf16.mxu0 %v13615_v46  ;;  %v9860_v46 = vld [vmem:[%s15383_s3 + $0xa0] sm:$0xff] (!%p11433_p11) }
 0x4e1   : > { %8969 = vmatpush1.bf16.msra.mxu1 %v13610_v47  ;;  %v9861_v47 = vld [vmem:[%s15383_s3 + $0xa8] sm:$0xff] (!%p11433_p11) }
 0x4e2   : > { %9786 = vmatpush1.bf16.msra.mxu0 %v13613_v48  ;;  %8970 = vmatprep.subr.bf16.mxu1 %v13618_v49  ;;  %v11517_v48 = vpack.c.bf16 (!%p11433_p11), %v9843_v45, %v9842_v44  ;;  %v11519_v49 = vpack.c.bf16 (!%p11433_p11), %v9861_v47, %v9860_v46 }
 0x4e3   : > { %9787 = vmatprep.subr.bf16.mxu0 %v13621_v50  ;;  %v9844_v50 = vld [vmem:[%s15383_s3 + $0x20] sm:$0xff] (!%p11433_p11) }
 0x4e5   : > { %8971 = vmatpush1.bf16.msra.mxu1 %v13616_v51  ;;  %v9845_v51 = vld [vmem:[%s15383_s3 + $0x28] sm:$0xff] (!%p11433_p11) }
 0x4e6   : > { %9788 = vmatpush1.bf16.msra.mxu0 %v13619_v52  ;;  %8972 = vmatprep.subr.bf16.mxu1 %v13624_v53  ;;  %v9862_v52 = vld [vmem:[%s15383_s3 + $0xb0] sm:$0xff] (!%p11433_p11)  ;;  %v9863_v53 = vld [vmem:[%s15383_s3 + $0xb8] sm:$0xff] (!%p11433_p11) }
 0x4e7   : > { %9789 = vmatprep.subr.bf16.mxu0 %v13627_v54  ;;  %v11521_v54 = vpack.c.bf16 (!%p11433_p11), %v9845_v51, %v9844_v50  ;;  %v11435_v50 = vld [vmem:[%s15386_s6] ss:$0 sm:$0xff] (!%p11433_p11) }
 0x4e9   : > { %8973 = vmatpush1.bf16.msra.mxu1 %v13622_v55  ;;  %v11523_v55 = vpack.c.bf16 (!%p11433_p11), %v9863_v53, %v9862_v52 }
 0x4ea   : > { %9790 = vmatpush1.bf16.msra.mxu0 %v13625_v56  ;;  %8974 = vmatprep.subr.bf16.mxu1 %v13630_v57  ;;  %v9846_v56 = vld [vmem:[%s15383_s3 + $0x30] sm:$0xff] (!%p11433_p11)  ;;  %v9847_v57 = vld [vmem:[%s15383_s3 + $0x38] sm:$0xff] (!%p11433_p11) }
 0x4eb   : > { %9791 = vmatprep.subr.bf16.mxu0 %v13633_v58  ;;  %v9864_v58 = vld [vmem:[%s15383_s3 + $0xc0] sm:$0xff] (!%p11433_p11) }
 0x4ed   : > { %8975 = vmatpush1.bf16.msra.mxu1 %v13628_v59  ;;  %v9865_v59 = vld [vmem:[%s15383_s3 + $0xc8] sm:$0xff] (!%p11433_p11) }
 0x4ee   : > { %9792 = vmatpush1.bf16.msra.mxu0 %v13631_v60  ;;  %8976 = vmatprep.subr.bf16.mxu1 %v13636_v61 }
 0x4ef   : > { %11512 = vmatprep.subr.bf16.mxu0 (!%p11433_p11), %v11511_v38  ;;  %v11555_v38 = vpack.c.bf16 (!%p11433_p11), %v9963_v37, %v9962_v36 }
 0x4f1   : > { %9810 = vmatmul.mubr.bf16.vlgmr.msra.gmra.mrb[0].mxu0 %v13637_v62  ;;  %8977 = vmatpush1.bf16.msra.mxu1 %v13634_v63  ;;  %v11525_v62 = vpack.c.bf16 (!%p11433_p11), %v9847_v57, %v9846_v56  ;;  %v9956_v63 = vld [vmem:[%s15385_s5] sm:$0xff] (!%p11433_p11) }
 0x4f2   : > { %8978 = vmatprep.subr.bf16.mxu1 %v13640_v0  ;;  %11514 = vmatpush3.bf16.msra.mxu0 (!%p11433_p11), %v11513_v42  ;;  %v9957_v0 = vld [vmem:[%s15385_s5 + $0x8] sm:$0xff] (!%p11433_p11) }
 0x4f3   : > { %11516 = vmatprep.subr.bf16.mxu0 (!%p11433_p11), %v11515_v43 }
 0x4f5   : > { %8979 = vmatpush1.bf16.msra.mxu1 %v13638_v1  ;;  %v11527_v1 = vpack.c.bf16 (!%p11433_p11), %v9865_v59, %v9864_v58 }
 0x4f6   : > { %8980 = vmatprep.subr.bf16.mxu1 %v13643_v2  ;;  %11518 = vmatpush3.bf16.msra.mxu0 (!%p11433_p11), %v11517_v48  ;;  %v9848_v2 = vld [vmem:[%s15383_s3 + $0x40] sm:$0xff] (!%p11433_p11) }
 0x4f7   : > { %11520 = vmatprep.subr.bf16.mxu0 (!%p11433_p11), %v11519_v49 }
 0x4f9   : > { %8981 = vmatpush1.bf16.msra.mxu1 %v13641_v3  ;;  %v9849_v3 = vld [vmem:[%s15383_s3 + $0x48] sm:$0xff] (!%p11433_p11) }
 0x4fa   : > { %8982 = vmatprep.subr.bf16.mxu1 %v13646_v4  ;;  %11522 = vmatpush3.bf16.msra.mxu0 (!%p11433_p11), %v11521_v54  ;;  %v11543_v4 = vpack.c.bf16 (!%p11433_p11), %v9957_v0, %v9956_v63 }
 0x4fb   : > { %11524 = vmatprep.subr.bf16.mxu0 (!%p11433_p11), %v11523_v55 }
 0x4fd   : > { %8983 = vmatpush1.bf16.msra.mxu1 %v13644_v5  ;;  %v9866_v5 = vld [vmem:[%s15383_s3 + $0xd0] sm:$0xff] (!%p11433_p11) }
 0x4fe   : > { %8984 = vmatprep.subr.bf16.mxu1 %v13649_v6  ;;  %v9867_v6 = vld [vmem:[%s15383_s3 + $0xd8] sm:$0xff] (!%p11433_p11)  ;;  %11526 = vmatpush3.bf16.msra.mxu0 (!%p11433_p11), %v11525_v62 }
 0x4ff   : > { %11528 = vmatprep.subr.bf16.mxu0 (!%p11433_p11), %v11527_v1 }
 0x501   : > { %8985 = vmatpush1.bf16.msra.mxu1 %v13647_v7  ;;  %v11529_v7 = vpack.c.bf16 (!%p11433_p11), %v9849_v3, %v9848_v2 }
 0x502   : > { %8986 = vmatprep.subr.bf16.mxu1 %v13652_v8  ;;  %v11531_v8 = vpack.c.bf16 (!%p11433_p11), %v9867_v6, %v9866_v5 }
 0x503   : > { %11530 = vmatpush3.bf16.msra.mxu0 (!%p11433_p11), %v11529_v7 }
 0x504   : > { %11532 = vmatprep.subr.bf16.mxu0 (!%p11433_p11), %v11531_v8 }
 0x505   : > { %8987 = vmatpush1.bf16.msra.mxu1 %v13650_v9  ;;  %v9850_v9 = vld [vmem:[%s15383_s3 + $0x50] sm:$0xff] (!%p11433_p11) }
 0x506   : > { %8988 = vmatprep.subr.bf16.mxu1 %v13655_v10  ;;  %v9851_v10 = vld [vmem:[%s15383_s3 + $0x58] sm:$0xff] (!%p11433_p11) }
 0x509   : > { %8989 = vmatpush1.bf16.msra.mxu1 %v13653_v11  ;;  %v9868_v11 = vld [vmem:[%s15383_s3 + $0xe0] sm:$0xff] (!%p11433_p11) }
 0x50a   : > { %8990 = vmatprep.subr.bf16.mxu1 %v13658_v12  ;;  %v9869_v12 = vld [vmem:[%s15383_s3 + $0xe8] sm:$0xff] (!%p11433_p11) }
 0x50d   : > { %8991 = vmatpush1.bf16.msra.mxu1 %v13656_v13  ;;  %v11533_v13 = vpack.c.bf16 (!%p11433_p11), %v9851_v10, %v9850_v9 }
 0x50e   : > { %11544 = vmatprep.subr.bf16.mxu1 (!%p11433_p11), %v11543_v4 }
 0x50f   : > { %11534 = vmatpush3.bf16.msra.mxu0 (!%p11433_p11), %v11533_v13 }
 0x510   : > { %8993 = vmatmul.mubr.bf16.vlgmr.msra.gmra.mrb[0].mxu1 %v13659_v14  ;;  %v11535_v14 = vpack.c.bf16 (!%p11433_p11), %v9869_v12, %v9868_v11 }
 0x511   : > { %11546 = vmatpush3.bf16.msra.mxu1 (!%p11433_p11), %v11543_v4 }
 0x512   : > { %11536 = vmatprep.subr.bf16.mxu0 (!%p11433_p11), %v11535_v14 }
 0x5c4   : > { %v9811_v15 = vpop.f32.mrb[0].mxu0 }
 0x5c5   : > { %v9813_v16 = vpop.f32.mrb[1].mxu0 }
 0x5c6   : > { %v9815_v17 = vpop.f32.mrb[2].mxu0 }
 0x5c7   : > { %v9817_v18 = vpop.f32.mrb[3].mxu0 }
 0x5e3   : > { %v8994_v20 = vpop.f32.mrb[0].mxu1 }
 0x5e4   : > { %v11559_v21 = vadd.f32 %v9811_v15, %v8994_v20  ;;  %v8996_v23 = vpop.f32.mrb[1].mxu1  ;;  %v9852_v15 = vld [vmem:[%s15383_s3 + $0x60] sm:$0xff] (!%p11433_p11) }
 0x5e5   : > { %v11560_v24 = vadd.f32 %v9813_v16, %v8996_v23  ;;  %v8998_v26 = vpop.f32.mrb[2].mxu1  ;;  %9831 = sbr.rel (%p11433_p11) target bundleno = 1963 (0x7ab), region = 82  ;;  %v9853_v16 = vld [vmem:[%s15383_s3 + $0x68] sm:$0xff] (!%p11433_p11) }
 0x5e6   : > { %v9820_v27 = vadd.f32 %v11559_v21, %v530_v19  ;;  %v11561_v28 = vadd.f32 %v9815_v17, %v8998_v26  ;;  %v9000_v30 = vpop.f32.mrb[3].mxu1  ;;  %v9870_v17 = vld [vmem:[%s15383_s3 + $0xf0] sm:$0xff] (!%p11433_p11)  ;;  %v11537_v19 = vpack.c.bf16 (!%p11433_p11), %v9853_v16, %v9852_v15 }
 0x5e7   : > { %v9821_v31 = vadd.f32 %v11560_v24, %v531_v22  ;;  %v11562_v32 = vadd.f32 %v9817_v18, %v9000_v30  ;;  %v9871_v18 = vld [vmem:[%s15383_s3 + $0xf8] sm:$0xff] (!%p11433_p11)  ;;  %v9854_v21 = vld [vmem:[%s15383_s3 + $0x70] sm:$0xff] (!%p11433_p11) }
 0x5e8   : > { %9824 = vst [vmem:[#allocation2] sm:$0xff] %v9820_v27  ;;  %v9822_v33 = vadd.f32 %v11561_v28, %v532_v25  ;;  %v11539_v20 = vpack.c.bf16 (!%p11433_p11), %v9871_v18, %v9870_v17  ;;  %v9855_v22 = vld [vmem:[%s15383_s3 + $0x78] sm:$0xff] (!%p11433_p11)  ;;  %11538 = vmatpush3.bf16.msra.mxu0 (!%p11433_p11), %v11537_v19  ;;  %v9958_v30 = vld [vmem:[%s15385_s5 + $0x10] sm:$0xff] (!%p11433_p11) }
 0x5e9   : > { %9825 = vst [vmem:[#allocation2 + $0x8] sm:$0xff] %v9821_v31  ;;  %v9823_v34 = vadd.f32 %v11562_v32, %v533_v29  ;;  %v11541_v23 = vpack.c.bf16 (!%p11433_p11), %v9855_v22, %v9854_v21  ;;  %v9959_v31 = vld [vmem:[%s15385_s5 + $0x18] sm:$0xff] (!%p11433_p11) }
 0x5ea   : > { %9826 = vst [vmem:[#allocation2 + $0x10] sm:$0xff] %v9822_v33  ;;  %11540 = vmatprep.subr.bf16.mxu0 (!%p11433_p11), %v11539_v20  ;;  %v11547_v32 = vpack.c.bf16 (!%p11433_p11), %v9959_v31, %v9958_v30  ;;  %v9960_v33 = vld [vmem:[%s15385_s5 + $0x20] sm:$0xff] (!%p11433_p11) }
 0x5eb   : > { %9827 = vst [vmem:[#allocation2 + $0x18] sm:$0xff] %v9823_v34  ;;  %v9961_v34 = vld [vmem:[%s15385_s5 + $0x28] sm:$0xff] (!%p11433_p11) }
 0x5ec   : > { %11542 = vmatpush3.bf16.msra.mxu0 %v11541_v23  ;;  %11548 = vmatprep.subr.bf16.mxu1 %v11547_v32  ;;  %v11551_v35 = vpack.c.bf16 %v9961_v34, %v9960_v33 }
 0x5ed   : > { %11550 = vmatpush3.bf16.msra.mxu1 %v11547_v32 }
 0x5ee   : > { %11552 = vmatprep.subr.bf16.mxu1 %v11551_v35 }
 0x5ef   : > { %v9832_v24 = vld [vmem:[#allocation2] sm:$0xff] }
 0x5f0   : > { %v9833_v60 = vld [vmem:[#allocation2 + $0x8] sm:$0xff]  ;;  %v9836_v26 = vmax.f32 %v9832_v24, 0.0 }
 0x5f1   : > { %v9837_v61 = vmax.f32 %v9833_v60, 0.0  ;;  %v9834_v28 = vld [vmem:[#allocation2 + $0x10] sm:$0xff]  ;;  %11554 = vmatpush3.bf16.msra.mxu1 %v11551_v35 }
 0x5f2   : > { %v9835_v25 = vld [vmem:[#allocation2 + $0x18] sm:$0xff]  ;;  %v9838_v29 = vmax.f32 %v9834_v28, 0.0  ;;  %11556 = vmatprep.subr.bf16.mxu1 %v11555_v38 }
 0x5f3   : > { %9943 = vmatprep.mubr.f32.mxu0 %v9837_v61  ;;  %v9839_v27 = vmax.f32 %v9835_v25, 0.0 }
 0x5f4   : > { %9944 = vmatmul.mubr.f32.vlgmr.msra.gmra.mrb[0].mxu0 %v9836_v26 }
 0x5f5   : > { %9948 = vmatprep.mubr.f32.mxu0 %v9839_v27  ;;  %11558 = vmatpush3.bf16.msra.mxu1 %v11555_v38 }
 0x5f8   : > { %9949 = vmatmul.mubr.f32.gmra.mrb[2].mxu0 %v9838_v29 }
 0x6c7   : > { %v11476_v39 = vpop.f32.mrb[0].mxu0 }
 0x6c8   : > { %v11477_v40 = vpop.f32.mrb[1].mxu0 }
 0x6c9   : > { %v11478_v42 = vadd.f32 %v11477_v40, %v11476_v39 }
 0x6cb   : > { %v11479_v43 = vpop.f32.mrb[2].mxu0  ;;  %v9946_v44 = vadd.f32 %v11478_v42, %v11434_v41 }
 0x6cc   : > { %v11480_v45 = vpop.f32.mrb[3].mxu0 }
 0x6cd   : > { %v11481_v46 = vadd.f32 %v11480_v45, %v11479_v43  ;;  %v9954_v47 = vmax.f32 %v9946_v44, 0.0 }
 0x6cf   : > { %v9951_v48 = vadd.f32 %v11481_v46, %v11434_v41  ;;  %11508 = vmatprep.mubr.msk.f32.mxu1 %vm9971_vm0, %v9954_v47 }
 0x6d1   : > { %v9955_v49 = vmax.f32 %v9951_v48, 0.0 }
 0x6d3   : > { %11509 = vmatmul.mubr.msk.f32.vlgmr.msra.gmra.mrb[0].mxu1 %vm9971_vm0, %v9955_v49 }
 0x7a6   : > { %v11510_v51 = vpop.f32.mrb[0].mxu1 }
 0x7a7   : > { %v10050_v52 = vadd.f32 %v11510_v51, %v11435_v50  ;;  %v10044_v53 = vpop.f32.mrb[1].mxu1 }
 0x7a8   : > { %v10045_v54 = vadd.f32 %v11435_v50, %v10044_v53 }
 0x7a9   : > { %10054 = vst [vmem:[%s15387_s7 + $0x8] sm:$0xff] %v10050_v52 }
 0x7aa   : > { %10053 = vst [vmem:[%s15387_s7] sm:$0xff] %v10045_v54 }
 0x7ab PF: > { %s17_s28 = sadd.s32 1, %s13700_s28   ;;  %s15388_s24 = smov %s13688_s25 }
 0x7ac   : > { %p14_p12 = scmp.ge.s32.totalorder %s17_s28, 5   ;;  %s15389_s25 = smov %s13778_s9 }
 0x7ad   : > { %s15390_s26 = smov %s13696_s27  ;;  %s15391_s27 = smov %s15393_s29 }
 0x7ae   :  { %16 = sbr.rel (!%p14_p12) target bundleno = 3 (0x3), region = 128 }

</bundles_post_ra>
